<compile_context>
chip_gen: v5e
topology: v5e:2x2
jax: 0.10.0
libtpu: 0.0.40
codegen_flags: <defaults>
</compile_context>

<pallas_src>
from collections import OrderedDict

import numpy as np
import jax
import jax.numpy as jnp
from jax.experimental import pallas as pl
from jax.experimental.pallas import tpu as pltpu

CPAD = 128      # lane-padded channel width
KSIZE = 3
STRIDE = 2
PAD = 1
NTAPS = KSIZE * KSIZE


# ----------------------------------------------------------------------------
# Constant builders (wrapper side, trace-time only)
# ----------------------------------------------------------------------------
def _conv_out(n):
    return (n + 2 * PAD - KSIZE) // STRIDE + 1


def _build_tap_selectors(hin, win, ho, wo):
    """(9, ho*wo, hin*win) 0/1 matrices: S[t] @ flat_input gathers the input
    row feeding tap t of every output position (zero row where the tap falls
    into the zero-padding border)."""
    sel = np.zeros((NTAPS, ho * wo, hin * win), np.float32)
    for kh in range(KSIZE):
        for kw in range(KSIZE):
            t = kh * KSIZE + kw
            for i in range(ho):
                r = STRIDE * i - PAD + kh
                if r < 0 or r >= hin:
                    continue
                for j in range(wo):
                    c = STRIDE * j - PAD + kw
                    if c < 0 or c >= win:
                        continue
                    sel[t, i * wo + j, r * win + c] = 1.0
    return jnp.asarray(sel, dtype=jnp.bfloat16)       # 0/1 exact in bf16


def _pack_weight(w_oihw):
    """(Cout, Cin, 3, 3) -> (9*CPAD, CPAD) bf16, tap-major rows [t*CPAD+ci]."""
    cout, cin = int(w_oihw.shape[0]), int(w_oihw.shape[1])
    taps = []
    for kh in range(KSIZE):
        for kw in range(KSIZE):
            wt = jnp.transpose(w_oihw[:, :, kh, kw], (1, 0))        # (Cin, Cout)
            wt = jnp.pad(wt, ((0, CPAD - cin), (0, CPAD - cout)))   # zero pad
            taps.append(wt)
    return jnp.concatenate(taps, axis=0).astype(jnp.bfloat16)       # (9*CPAD, CPAD)


def _pack_bias(b):
    cout = int(b.shape[0])
    return jnp.pad(b, (0, CPAD - cout)).reshape(1, CPAD).astype(jnp.float32)


# ----------------------------------------------------------------------------
# Fused Pallas kernel: whole encoder chain for one batch element per grid step
# ----------------------------------------------------------------------------
def _make_fused_kernel(num_layers):
    def kernel(*refs):
        x_ref = refs[0]
        layer_refs = refs[1:1 + 3 * num_layers]
        out_refs = refs[1 + 3 * num_layers:]

        act = x_ref[...]                                   # (rows_in, CPAD) bf16
        for l in range(num_layers):
            s_ref = layer_refs[3 * l + 0]                  # (9, rows_out, rows_in) bf16
            w_ref = layer_refs[3 * l + 1]                  # (9*CPAD, CPAD)         bf16
            b_ref = layer_refs[3 * l + 2]                  # (1, CPAD)              f32

            # Gather the 9 tap inputs (exact 0/1 selection matmuls on the MXU).
            gs = []
            for t in range(NTAPS):
                g = jnp.dot(s_ref[t], act,
                            preferred_element_type=jnp.float32)
                gs.append(g.astype(jnp.bfloat16))          # exact: values are bf16
            # Lane-aligned concat (each g is a full 128-lane tile) -> one deep-K
            # channel contraction on the MXU with f32 accumulation.
            g_cat = jnp.concatenate(gs, axis=-1)           # (rows_out, 9*CPAD)
            acc = jnp.dot(g_cat, w_ref[...],
                          preferred_element_type=jnp.float32)

            act_f32 = jnp.maximum(acc + b_ref[...], 0.0)   # bias + ReLU in f32
            out_refs[l][...] = act_f32                     # lane-dense (rows, 128) store
            act = act_f32.astype(jnp.bfloat16)             # feed next block (stays in VMEM)
    return kernel


def _fused_forward(x_rows, selectors, weights, biases, out_rows):
    """x_rows: (N, rows_in, CPAD) bf16 -> tuple of (N, rows_out_l, CPAD) f32."""
    n = int(x_rows.shape[0])
    rows_in = int(x_rows.shape[1])
    num_layers = len(selectors)

    inputs = [x_rows]
    in_specs = [pl.BlockSpec((None, rows_in, CPAD), lambda b: (b, 0, 0))]
    for s, w, bia in zip(selectors, weights, biases):
        inputs += [s, w, bia]
        in_specs += [
            pl.BlockSpec(s.shape, lambda b: (0, 0, 0)),    # shared across batch
            pl.BlockSpec(w.shape, lambda b: (0, 0)),
            pl.BlockSpec(bia.shape, lambda b: (0, 0)),
        ]

    out_shape = tuple(jax.ShapeDtypeStruct((n, r, CPAD), jnp.float32)
                      for r in out_rows)
    out_specs = tuple(pl.BlockSpec((None, r, CPAD), lambda b: (b, 0, 0))
                      for r in out_rows)

    # Advisory cost estimate: gather matmuls + one deep-K channel matmul per layer.
    flops = 0
    bytes_accessed = x_rows.size * x_rows.dtype.itemsize
    for s, r in zip(selectors, out_rows):
        hw_in = int(s.shape[2])
        flops += n * (NTAPS * 2 * r * hw_in * CPAD          # tap gathers
                      + 2 * r * (NTAPS * CPAD) * CPAD)       # channel contraction
        bytes_accessed += n * r * CPAD * 4
    for arr in inputs[1:]:
        bytes_accessed += arr.size * arr.dtype.itemsize

    return pl.pallas_call(
        _make_fused_kernel(num_layers),
        out_shape=out_shape,
        grid=(n,),
        in_specs=in_specs,
        out_specs=out_specs,
        compiler_params=pltpu.CompilerParams(
            dimension_semantics=("parallel",),          # megacore sharding on v7x
            vmem_limit_bytes=32 * 1024 * 1024,          # safe on v5e/v6e/v7x, huge headroom
        ),
        cost_estimate=pl.CostEstimate(
            flops=int(flops), transcendentals=0,
            bytes_accessed=int(bytes_accessed)),
    )(*inputs)


# ----------------------------------------------------------------------------
# Blocks + FeatureExtractor (module semantics: sequential blocks, features
# keyed by spatial height)
# ----------------------------------------------------------------------------
class Conv3x3s2Block:
    """Parameters of one Conv2d(cin, cout, 3, stride=2, padding=1) + ReLU
    block, deterministic PyTorch-style init (uniform +-1/sqrt(fan_in))."""

    def __init__(self, key, cin, cout):
        k_w, k_b = jax.random.split(key)
        fan_in = cin * KSIZE * KSIZE
        bound = 1.0 / float(np.sqrt(fan_in))
        self.weight = jax.random.uniform(k_w, (cout, cin, KSIZE, KSIZE),
                                         jnp.float32, -bound, bound)
        self.bias = jax.random.uniform(k_b, (cout,), jnp.float32, -bound, bound)
        self.cin = cin
        self.cout = cout


class FeatureExtractor:
    """Applies the blocks sequentially (fused into ONE Pallas kernel) and
    records every intermediate feature keyed by its spatial height, exactly
    like the PyTorch module."""

    def __init__(self, blocks):
        self.enc_blocks = list(blocks)
        self._weights = [_pack_weight(b.weight) for b in self.enc_blocks]
        self._biases = [_pack_bias(b.bias) for b in self.enc_blocks]
        self._forward = jax.jit(self._forward_impl)

    def _forward_impl(self, x_nchw):
        n, cin, h, w = x_nchw.shape
        assert cin == self.enc_blocks[0].cin

        # Single NCHW -> NHWC transpose, lane-pad channels, flatten spatial.
        x = jnp.transpose(x_nchw, (0, 2, 3, 1))
        x = jnp.pad(x, ((0, 0), (0, 0), (0, 0), (0, CPAD - cin)))
        x_rows = x.reshape(n, h * w, CPAD).astype(jnp.bfloat16)

        selectors, out_rows, spatial = [], [], []
        hin, win = h, w
        for _ in self.enc_blocks:
            ho, wo = _conv_out(hin), _conv_out(win)
            selectors.append(_build_tap_selectors(hin, win, ho, wo))
            out_rows.append(ho * wo)
            spatial.append((ho, wo))
            hin, win = ho, wo

        outs = _fused_forward(x_rows, selectors, self._weights, self._biases,
                              out_rows)

        enc_features = OrderedDict()
        for blk, (ho, wo), o in zip(self.enc_blocks, spatial, outs):
            f = o.reshape(n, ho, wo, CPAD)[..., :blk.cout]   # drop lane padding
            f = jnp.transpose(f, (0, 3, 1, 2))               # back to NCHW
            enc_features[int(f.shape[2])] = f                # key = spatial height
        return enc_features

    def __call__(self, x):
        return self._forward(x)


# ----------------------------------------------------------------------------
# Reference (pure JAX/XLA) conv block for a correctness sanity check
# ----------------------------------------------------------------------------
def conv3x3_relu_ref(x_nchw, w_oihw, bias):
    out = jax.lax.conv_general_dilated(
        x_nchw, w_oihw,
        window_strides=(STRIDE, STRIDE),
        padding=((PAD, PAD), (PAD, PAD)),
        dimension_numbers=("NCHW", "OIHW", "NCHW"),
    )
    return jnp.maximum(out + bias.reshape(1, -1, 1, 1), 0.0)


if __name__ == "__main__":
    key = jax.random.PRNGKey(0)
    k_x, k_b1, k_b2, k_b3 = jax.random.split(key, 4)

    # small shapes: batch=2, channels=4, spatial=16
    x = jax.random.normal(k_x, (2, 4, 16, 16), jnp.float32)

    channels = [(4, 8), (8, 16), (16, 32)]
    blocks = [Conv3x3s2Block(k, cin, cout)
              for k, (cin, cout) in zip([k_b1, k_b2, k_b3], channels)]

    extractor = FeatureExtractor(blocks)
    enc_features = extractor(x)
    for v in enc_features.values():
        jax.block_until_ready(v)

    # sanity: keys & shapes (16x16 -> 8 -> 4 -> 2)
    assert list(enc_features.keys()) == [8, 4, 2]
    assert enc_features[8].shape == (2, 8, 8, 8)
    assert enc_features[4].shape == (2, 16, 4, 4)
    assert enc_features[2].shape == (2, 32, 2, 2)

    # numerics vs XLA conv reference (bf16 MXU inputs, f32 accumulation)
    feat = x
    for blk in blocks:
        feat = conv3x3_relu_ref(feat, blk.weight, blk.bias)
        got = enc_features[int(feat.shape[2])]
        assert jnp.allclose(got, feat, rtol=2e-2, atol=2e-2), \
            f"mismatch vs reference at height {int(feat.shape[2])}"

    print("KERNEL_OK")
</pallas_src>

<mosaic_0001>
module attributes {stable_mosaic.version = 11 : i64} {
  func.func @kernel(%arg0: i32, %arg1: memref<1x256x128xbf16, #tpu.memory_space<vmem>>, %arg2: memref<9x64x256xbf16, #tpu.memory_space<vmem>>, %arg3: memref<1152x128xbf16, #tpu.memory_space<vmem>>, %arg4: memref<1x128xf32, #tpu.memory_space<vmem>>, %arg5: memref<9x16x64xbf16, #tpu.memory_space<vmem>>, %arg6: memref<1152x128xbf16, #tpu.memory_space<vmem>>, %arg7: memref<1x128xf32, #tpu.memory_space<vmem>>, %arg8: memref<9x4x16xbf16, #tpu.memory_space<vmem>>, %arg9: memref<1152x128xbf16, #tpu.memory_space<vmem>>, %arg10: memref<1x128xf32, #tpu.memory_space<vmem>>, %arg11: memref<1x64x128xf32, #tpu.memory_space<vmem>>, %arg12: memref<1x16x128xf32, #tpu.memory_space<vmem>>, %arg13: memref<1x4x128xf32, #tpu.memory_space<vmem>>) attributes {dimension_semantics = [#tpu.dimension_semantics<parallel>], iteration_bounds = array<i64: 2>, scalar_prefetch = 0 : i64, scratch_operands = 0 : i64, tpu.core_type = #tpu.core_type<tc>, window_params = [{transform_indices = @transform_0, window_bounds = array<i64: 1, 256, 128>}, {pipeline_mode = #tpu.pipeline_mode<synchronous>, transform_indices = @transform_1, window_bounds = array<i64: 9, 64, 256>}, {pipeline_mode = #tpu.pipeline_mode<synchronous>, transform_indices = @transform_2, window_bounds = array<i64: 1152, 128>}, {pipeline_mode = #tpu.pipeline_mode<synchronous>, transform_indices = @transform_3, window_bounds = array<i64: 1, 128>}, {pipeline_mode = #tpu.pipeline_mode<synchronous>, transform_indices = @transform_4, window_bounds = array<i64: 9, 16, 64>}, {pipeline_mode = #tpu.pipeline_mode<synchronous>, transform_indices = @transform_5, window_bounds = array<i64: 1152, 128>}, {pipeline_mode = #tpu.pipeline_mode<synchronous>, transform_indices = @transform_6, window_bounds = array<i64: 1, 128>}, {pipeline_mode = #tpu.pipeline_mode<synchronous>, transform_indices = @transform_7, window_bounds = array<i64: 9, 4, 16>}, {pipeline_mode = #tpu.pipeline_mode<synchronous>, transform_indices = @transform_8, window_bounds = array<i64: 1152, 128>}, {pipeline_mode = #tpu.pipeline_mode<synchronous>, transform_indices = @transform_9, window_bounds = array<i64: 1, 128>}, {transform_indices = @transform_10, window_bounds = array<i64: 1, 64, 128>}, {transform_indices = @transform_11, window_bounds = array<i64: 1, 16, 128>}, {transform_indices = @transform_12, window_bounds = array<i64: 1, 4, 128>}]} {
    %c0 = arith.constant 0 : index
    %c0_0 = arith.constant 0 : index
    %c0_1 = arith.constant 0 : index
    %0 = vector.load %arg1[%c0, %c0_0, %c0_1] : memref<1x256x128xbf16, #tpu.memory_space<vmem>>, vector<1x256x128xbf16>
    %1 = vector.shape_cast %0 : vector<1x256x128xbf16> to vector<256x128xbf16>
    %c0_2 = arith.constant 0 : index
    %c0_3 = arith.constant 0 : index
    %c0_4 = arith.constant 0 : index
    %2 = vector.load %arg2[%c0_2, %c0_3, %c0_4] : memref<9x64x256xbf16, #tpu.memory_space<vmem>>, vector<1x64x256xbf16>
    %3 = vector.shape_cast %2 : vector<1x64x256xbf16> to vector<64x256xbf16>
    %cst = arith.constant dense<0.000000e+00> : vector<64x128xf32>
    %4 = tpu.matmul %3, %1, %cst {dimension_numbers = #tpu.dot_dimension_numbers<[1], [0], [0], [1], [0, 0, 1, 1], [], []>} : vector<64x256xbf16>, vector<256x128xbf16>, vector<64x128xf32> -> vector<64x128xf32>
    %5 = arith.truncf %4 : vector<64x128xf32> to vector<64x128xbf16>
    %c1 = arith.constant 1 : index
    %c0_5 = arith.constant 0 : index
    %c0_6 = arith.constant 0 : index
    %6 = vector.load %arg2[%c1, %c0_5, %c0_6] : memref<9x64x256xbf16, #tpu.memory_space<vmem>>, vector<1x64x256xbf16>
    %7 = vector.shape_cast %6 : vector<1x64x256xbf16> to vector<64x256xbf16>
    %cst_7 = arith.constant dense<0.000000e+00> : vector<64x128xf32>
    %8 = tpu.matmul %7, %1, %cst_7 {dimension_numbers = #tpu.dot_dimension_numbers<[1], [0], [0], [1], [0, 0, 1, 1], [], []>} : vector<64x256xbf16>, vector<256x128xbf16>, vector<64x128xf32> -> vector<64x128xf32>
    %9 = arith.truncf %8 : vector<64x128xf32> to vector<64x128xbf16>
    %c2 = arith.constant 2 : index
    %c0_8 = arith.constant 0 : index
    %c0_9 = arith.constant 0 : index
    %10 = vector.load %arg2[%c2, %c0_8, %c0_9] : memref<9x64x256xbf16, #tpu.memory_space<vmem>>, vector<1x64x256xbf16>
    %11 = vector.shape_cast %10 : vector<1x64x256xbf16> to vector<64x256xbf16>
    %cst_10 = arith.constant dense<0.000000e+00> : vector<64x128xf32>
    %12 = tpu.matmul %11, %1, %cst_10 {dimension_numbers = #tpu.dot_dimension_numbers<[1], [0], [0], [1], [0, 0, 1, 1], [], []>} : vector<64x256xbf16>, vector<256x128xbf16>, vector<64x128xf32> -> vector<64x128xf32>
    %13 = arith.truncf %12 : vector<64x128xf32> to vector<64x128xbf16>
    %c3 = arith.constant 3 : index
    %c0_11 = arith.constant 0 : index
    %c0_12 = arith.constant 0 : index
    %14 = vector.load %arg2[%c3, %c0_11, %c0_12] : memref<9x64x256xbf16, #tpu.memory_space<vmem>>, vector<1x64x256xbf16>
    %15 = vector.shape_cast %14 : vector<1x64x256xbf16> to vector<64x256xbf16>
    %cst_13 = arith.constant dense<0.000000e+00> : vector<64x128xf32>
    %16 = tpu.matmul %15, %1, %cst_13 {dimension_numbers = #tpu.dot_dimension_numbers<[1], [0], [0], [1], [0, 0, 1, 1], [], []>} : vector<64x256xbf16>, vector<256x128xbf16>, vector<64x128xf32> -> vector<64x128xf32>
    %17 = arith.truncf %16 : vector<64x128xf32> to vector<64x128xbf16>
    %c4 = arith.constant 4 : index
    %c0_14 = arith.constant 0 : index
    %c0_15 = arith.constant 0 : index
    %18 = vector.load %arg2[%c4, %c0_14, %c0_15] : memref<9x64x256xbf16, #tpu.memory_space<vmem>>, vector<1x64x256xbf16>
    %19 = vector.shape_cast %18 : vector<1x64x256xbf16> to vector<64x256xbf16>
    %cst_16 = arith.constant dense<0.000000e+00> : vector<64x128xf32>
    %20 = tpu.matmul %19, %1, %cst_16 {dimension_numbers = #tpu.dot_dimension_numbers<[1], [0], [0], [1], [0, 0, 1, 1], [], []>} : vector<64x256xbf16>, vector<256x128xbf16>, vector<64x128xf32> -> vector<64x128xf32>
    %21 = arith.truncf %20 : vector<64x128xf32> to vector<64x128xbf16>
    %c5 = arith.constant 5 : index
    %c0_17 = arith.constant 0 : index
    %c0_18 = arith.constant 0 : index
    %22 = vector.load %arg2[%c5, %c0_17, %c0_18] : memref<9x64x256xbf16, #tpu.memory_space<vmem>>, vector<1x64x256xbf16>
    %23 = vector.shape_cast %22 : vector<1x64x256xbf16> to vector<64x256xbf16>
    %cst_19 = arith.constant dense<0.000000e+00> : vector<64x128xf32>
    %24 = tpu.matmul %23, %1, %cst_19 {dimension_numbers = #tpu.dot_dimension_numbers<[1], [0], [0], [1], [0, 0, 1, 1], [], []>} : vector<64x256xbf16>, vector<256x128xbf16>, vector<64x128xf32> -> vector<64x128xf32>
    %25 = arith.truncf %24 : vector<64x128xf32> to vector<64x128xbf16>
    %c6 = arith.constant 6 : index
    %c0_20 = arith.constant 0 : index
    %c0_21 = arith.constant 0 : index
    %26 = vector.load %arg2[%c6, %c0_20, %c0_21] : memref<9x64x256xbf16, #tpu.memory_space<vmem>>, vector<1x64x256xbf16>
    %27 = vector.shape_cast %26 : vector<1x64x256xbf16> to vector<64x256xbf16>
    %cst_22 = arith.constant dense<0.000000e+00> : vector<64x128xf32>
    %28 = tpu.matmul %27, %1, %cst_22 {dimension_numbers = #tpu.dot_dimension_numbers<[1], [0], [0], [1], [0, 0, 1, 1], [], []>} : vector<64x256xbf16>, vector<256x128xbf16>, vector<64x128xf32> -> vector<64x128xf32>
    %29 = arith.truncf %28 : vector<64x128xf32> to vector<64x128xbf16>
    %c7 = arith.constant 7 : index
    %c0_23 = arith.constant 0 : index
    %c0_24 = arith.constant 0 : index
    %30 = vector.load %arg2[%c7, %c0_23, %c0_24] : memref<9x64x256xbf16, #tpu.memory_space<vmem>>, vector<1x64x256xbf16>
    %31 = vector.shape_cast %30 : vector<1x64x256xbf16> to vector<64x256xbf16>
    %cst_25 = arith.constant dense<0.000000e+00> : vector<64x128xf32>
    %32 = tpu.matmul %31, %1, %cst_25 {dimension_numbers = #tpu.dot_dimension_numbers<[1], [0], [0], [1], [0, 0, 1, 1], [], []>} : vector<64x256xbf16>, vector<256x128xbf16>, vector<64x128xf32> -> vector<64x128xf32>
    %33 = arith.truncf %32 : vector<64x128xf32> to vector<64x128xbf16>
    %c8 = arith.constant 8 : index
    %c0_26 = arith.constant 0 : index
    %c0_27 = arith.constant 0 : index
    %34 = vector.load %arg2[%c8, %c0_26, %c0_27] : memref<9x64x256xbf16, #tpu.memory_space<vmem>>, vector<1x64x256xbf16>
    %35 = vector.shape_cast %34 : vector<1x64x256xbf16> to vector<64x256xbf16>
    %cst_28 = arith.constant dense<0.000000e+00> : vector<64x128xf32>
    %36 = tpu.matmul %35, %1, %cst_28 {dimension_numbers = #tpu.dot_dimension_numbers<[1], [0], [0], [1], [0, 0, 1, 1], [], []>} : vector<64x256xbf16>, vector<256x128xbf16>, vector<64x128xf32> -> vector<64x128xf32>
    %37 = arith.truncf %36 : vector<64x128xf32> to vector<64x128xbf16>
    %38 = tpu.concatenate %5, %9, %13, %17, %21, %25, %29, %33, %37 in 1 : vector<64x128xbf16>, vector<64x128xbf16>, vector<64x128xbf16>, vector<64x128xbf16>, vector<64x128xbf16>, vector<64x128xbf16>, vector<64x128xbf16>, vector<64x128xbf16>, vector<64x128xbf16> -> vector<64x1152xbf16>
    %c0_29 = arith.constant 0 : index
    %c0_30 = arith.constant 0 : index
    %39 = vector.load %arg3[%c0_29, %c0_30] : memref<1152x128xbf16, #tpu.memory_space<vmem>>, vector<1152x128xbf16>
    %cst_31 = arith.constant dense<0.000000e+00> : vector<64x128xf32>
    %40 = tpu.matmul %38, %39, %cst_31 {dimension_numbers = #tpu.dot_dimension_numbers<[1], [0], [0], [1], [0, 0, 1, 1], [], []>} : vector<64x1152xbf16>, vector<1152x128xbf16>, vector<64x128xf32> -> vector<64x128xf32>
    %c0_32 = arith.constant 0 : index
    %c0_33 = arith.constant 0 : index
    %41 = vector.load %arg4[%c0_32, %c0_33] : memref<1x128xf32, #tpu.memory_space<vmem>>, vector<1x128xf32>
    %42 = vector.broadcast %41 : vector<1x128xf32> to vector<64x128xf32>
    %43 = arith.addf %40, %42 : vector<64x128xf32>
    %cst_34 = arith.constant 0.000000e+00 : f32
    %44 = vector.broadcast %cst_34 : f32 to vector<64x128xf32>
    %45 = arith.maximumf %43, %44 : vector<64x128xf32>
    %c0_35 = arith.constant 0 : index
    %c0_36 = arith.constant 0 : index
    %c0_37 = arith.constant 0 : index
    %46 = vector.load %arg11[%c0_35, %c0_36, %c0_37] : memref<1x64x128xf32, #tpu.memory_space<vmem>>, vector<1x64x128xf32>
    %47 = vector.shape_cast %46 : vector<1x64x128xf32> to vector<64x128xf32>
    %48 = vector.shape_cast %45 : vector<64x128xf32> to vector<1x64x128xf32>
    tpu.vector_store %arg11[%c0_35, %c0_36, %c0_37], %48 {strides = array<i32>} : memref<1x64x128xf32, #tpu.memory_space<vmem>>, vector<1x64x128xf32>,
    %49 = arith.truncf %45 : vector<64x128xf32> to vector<64x128xbf16>
    %c0_38 = arith.constant 0 : index
    %c0_39 = arith.constant 0 : index
    %c0_40 = arith.constant 0 : index
    %50 = vector.load %arg5[%c0_38, %c0_39, %c0_40] : memref<9x16x64xbf16, #tpu.memory_space<vmem>>, vector<1x16x64xbf16>
    %51 = vector.shape_cast %50 : vector<1x16x64xbf16> to vector<16x64xbf16>
    %cst_41 = arith.constant dense<0.000000e+00> : vector<16x128xf32>
    %52 = tpu.matmul %51, %49, %cst_41 {dimension_numbers = #tpu.dot_dimension_numbers<[1], [0], [0], [1], [0, 0, 1, 1], [], []>} : vector<16x64xbf16>, vector<64x128xbf16>, vector<16x128xf32> -> vector<16x128xf32>
    %53 = arith.truncf %52 : vector<16x128xf32> to vector<16x128xbf16>
    %c1_42 = arith.constant 1 : index
    %c0_43 = arith.constant 0 : index
    %c0_44 = arith.constant 0 : index
    %54 = vector.load %arg5[%c1_42, %c0_43, %c0_44] : memref<9x16x64xbf16, #tpu.memory_space<vmem>>, vector<1x16x64xbf16>
    %55 = vector.shape_cast %54 : vector<1x16x64xbf16> to vector<16x64xbf16>
    %cst_45 = arith.constant dense<0.000000e+00> : vector<16x128xf32>
    %56 = tpu.matmul %55, %49, %cst_45 {dimension_numbers = #tpu.dot_dimension_numbers<[1], [0], [0], [1], [0, 0, 1, 1], [], []>} : vector<16x64xbf16>, vector<64x128xbf16>, vector<16x128xf32> -> vector<16x128xf32>
    %57 = arith.truncf %56 : vector<16x128xf32> to vector<16x128xbf16>
    %c2_46 = arith.constant 2 : index
    %c0_47 = arith.constant 0 : index
    %c0_48 = arith.constant 0 : index
    %58 = vector.load %arg5[%c2_46, %c0_47, %c0_48] : memref<9x16x64xbf16, #tpu.memory_space<vmem>>, vector<1x16x64xbf16>
    %59 = vector.shape_cast %58 : vector<1x16x64xbf16> to vector<16x64xbf16>
    %cst_49 = arith.constant dense<0.000000e+00> : vector<16x128xf32>
    %60 = tpu.matmul %59, %49, %cst_49 {dimension_numbers = #tpu.dot_dimension_numbers<[1], [0], [0], [1], [0, 0, 1, 1], [], []>} : vector<16x64xbf16>, vector<64x128xbf16>, vector<16x128xf32> -> vector<16x128xf32>
    %61 = arith.truncf %60 : vector<16x128xf32> to vector<16x128xbf16>
    %c3_50 = arith.constant 3 : index
    %c0_51 = arith.constant 0 : index
    %c0_52 = arith.constant 0 : index
    %62 = vector.load %arg5[%c3_50, %c0_51, %c0_52] : memref<9x16x64xbf16, #tpu.memory_space<vmem>>, vector<1x16x64xbf16>
    %63 = vector.shape_cast %62 : vector<1x16x64xbf16> to vector<16x64xbf16>
    %cst_53 = arith.constant dense<0.000000e+00> : vector<16x128xf32>
    %64 = tpu.matmul %63, %49, %cst_53 {dimension_numbers = #tpu.dot_dimension_numbers<[1], [0], [0], [1], [0, 0, 1, 1], [], []>} : vector<16x64xbf16>, vector<64x128xbf16>, vector<16x128xf32> -> vector<16x128xf32>
    %65 = arith.truncf %64 : vector<16x128xf32> to vector<16x128xbf16>
    %c4_54 = arith.constant 4 : index
    %c0_55 = arith.constant 0 : index
    %c0_56 = arith.constant 0 : index
    %66 = vector.load %arg5[%c4_54, %c0_55, %c0_56] : memref<9x16x64xbf16, #tpu.memory_space<vmem>>, vector<1x16x64xbf16>
    %67 = vector.shape_cast %66 : vector<1x16x64xbf16> to vector<16x64xbf16>
    %cst_57 = arith.constant dense<0.000000e+00> : vector<16x128xf32>
    %68 = tpu.matmul %67, %49, %cst_57 {dimension_numbers = #tpu.dot_dimension_numbers<[1], [0], [0], [1], [0, 0, 1, 1], [], []>} : vector<16x64xbf16>, vector<64x128xbf16>, vector<16x128xf32> -> vector<16x128xf32>
    %69 = arith.truncf %68 : vector<16x128xf32> to vector<16x128xbf16>
    %c5_58 = arith.constant 5 : index
    %c0_59 = arith.constant 0 : index
    %c0_60 = arith.constant 0 : index
    %70 = vector.load %arg5[%c5_58, %c0_59, %c0_60] : memref<9x16x64xbf16, #tpu.memory_space<vmem>>, vector<1x16x64xbf16>
    %71 = vector.shape_cast %70 : vector<1x16x64xbf16> to vector<16x64xbf16>
    %cst_61 = arith.constant dense<0.000000e+00> : vector<16x128xf32>
    %72 = tpu.matmul %71, %49, %cst_61 {dimension_numbers = #tpu.dot_dimension_numbers<[1], [0], [0], [1], [0, 0, 1, 1], [], []>} : vector<16x64xbf16>, vector<64x128xbf16>, vector<16x128xf32> -> vector<16x128xf32>
    %73 = arith.truncf %72 : vector<16x128xf32> to vector<16x128xbf16>
    %c6_62 = arith.constant 6 : index
    %c0_63 = arith.constant 0 : index
    %c0_64 = arith.constant 0 : index
    %74 = vector.load %arg5[%c6_62, %c0_63, %c0_64] : memref<9x16x64xbf16, #tpu.memory_space<vmem>>, vector<1x16x64xbf16>
    %75 = vector.shape_cast %74 : vector<1x16x64xbf16> to vector<16x64xbf16>
    %cst_65 = arith.constant dense<0.000000e+00> : vector<16x128xf32>
    %76 = tpu.matmul %75, %49, %cst_65 {dimension_numbers = #tpu.dot_dimension_numbers<[1], [0], [0], [1], [0, 0, 1, 1], [], []>} : vector<16x64xbf16>, vector<64x128xbf16>, vector<16x128xf32> -> vector<16x128xf32>
    %77 = arith.truncf %76 : vector<16x128xf32> to vector<16x128xbf16>
    %c7_66 = arith.constant 7 : index
    %c0_67 = arith.constant 0 : index
    %c0_68 = arith.constant 0 : index
    %78 = vector.load %arg5[%c7_66, %c0_67, %c0_68] : memref<9x16x64xbf16, #tpu.memory_space<vmem>>, vector<1x16x64xbf16>
    %79 = vector.shape_cast %78 : vector<1x16x64xbf16> to vector<16x64xbf16>
    %cst_69 = arith.constant dense<0.000000e+00> : vector<16x128xf32>
    %80 = tpu.matmul %79, %49, %cst_69 {dimension_numbers = #tpu.dot_dimension_numbers<[1], [0], [0], [1], [0, 0, 1, 1], [], []>} : vector<16x64xbf16>, vector<64x128xbf16>, vector<16x128xf32> -> vector<16x128xf32>
    %81 = arith.truncf %80 : vector<16x128xf32> to vector<16x128xbf16>
    %c8_70 = arith.constant 8 : index
    %c0_71 = arith.constant 0 : index
    %c0_72 = arith.constant 0 : index
    %82 = vector.load %arg5[%c8_70, %c0_71, %c0_72] : memref<9x16x64xbf16, #tpu.memory_space<vmem>>, vector<1x16x64xbf16>
    %83 = vector.shape_cast %82 : vector<1x16x64xbf16> to vector<16x64xbf16>
    %cst_73 = arith.constant dense<0.000000e+00> : vector<16x128xf32>
    %84 = tpu.matmul %83, %49, %cst_73 {dimension_numbers = #tpu.dot_dimension_numbers<[1], [0], [0], [1], [0, 0, 1, 1], [], []>} : vector<16x64xbf16>, vector<64x128xbf16>, vector<16x128xf32> -> vector<16x128xf32>
    %85 = arith.truncf %84 : vector<16x128xf32> to vector<16x128xbf16>
    %86 = tpu.concatenate %53, %57, %61, %65, %69, %73, %77, %81, %85 in 1 : vector<16x128xbf16>, vector<16x128xbf16>, vector<16x128xbf16>, vector<16x128xbf16>, vector<16x128xbf16>, vector<16x128xbf16>, vector<16x128xbf16>, vector<16x128xbf16>, vector<16x128xbf16> -> vector<16x1152xbf16>
    %c0_74 = arith.constant 0 : index
    %c0_75 = arith.constant 0 : index
    %87 = vector.load %arg6[%c0_74, %c0_75] : memref<1152x128xbf16, #tpu.memory_space<vmem>>, vector<1152x128xbf16>
    %cst_76 = arith.constant dense<0.000000e+00> : vector<16x128xf32>
    %88 = tpu.matmul %86, %87, %cst_76 {dimension_numbers = #tpu.dot_dimension_numbers<[1], [0], [0], [1], [0, 0, 1, 1], [], []>} : vector<16x1152xbf16>, vector<1152x128xbf16>, vector<16x128xf32> -> vector<16x128xf32>
    %c0_77 = arith.constant 0 : index
    %c0_78 = arith.constant 0 : index
    %89 = vector.load %arg7[%c0_77, %c0_78] : memref<1x128xf32, #tpu.memory_space<vmem>>, vector<1x128xf32>
    %90 = vector.broadcast %89 : vector<1x128xf32> to vector<16x128xf32>
    %91 = arith.addf %88, %90 : vector<16x128xf32>
    %cst_79 = arith.constant 0.000000e+00 : f32
    %92 = vector.broadcast %cst_79 : f32 to vector<16x128xf32>
    %93 = arith.maximumf %91, %92 : vector<16x128xf32>
    %c0_80 = arith.constant 0 : index
    %c0_81 = arith.constant 0 : index
    %c0_82 = arith.constant 0 : index
    %94 = vector.load %arg12[%c0_80, %c0_81, %c0_82] : memref<1x16x128xf32, #tpu.memory_space<vmem>>, vector<1x16x128xf32>
    %95 = vector.shape_cast %94 : vector<1x16x128xf32> to vector<16x128xf32>
    %96 = vector.shape_cast %93 : vector<16x128xf32> to vector<1x16x128xf32>
    tpu.vector_store %arg12[%c0_80, %c0_81, %c0_82], %96 {strides = array<i32>} : memref<1x16x128xf32, #tpu.memory_space<vmem>>, vector<1x16x128xf32>,
    %97 = arith.truncf %93 : vector<16x128xf32> to vector<16x128xbf16>
    %c0_83 = arith.constant 0 : index
    %c0_84 = arith.constant 0 : index
    %c0_85 = arith.constant 0 : index
    %98 = vector.load %arg8[%c0_83, %c0_84, %c0_85] : memref<9x4x16xbf16, #tpu.memory_space<vmem>>, vector<1x4x16xbf16>
    %99 = vector.shape_cast %98 : vector<1x4x16xbf16> to vector<4x16xbf16>
    %cst_86 = arith.constant dense<0.000000e+00> : vector<4x128xf32>
    %100 = tpu.matmul %99, %97, %cst_86 {dimension_numbers = #tpu.dot_dimension_numbers<[1], [0], [0], [1], [0, 0, 1, 1], [], []>} : vector<4x16xbf16>, vector<16x128xbf16>, vector<4x128xf32> -> vector<4x128xf32>
    %101 = arith.truncf %100 : vector<4x128xf32> to vector<4x128xbf16>
    %c1_87 = arith.constant 1 : index
    %c0_88 = arith.constant 0 : index
    %c0_89 = arith.constant 0 : index
    %102 = vector.load %arg8[%c1_87, %c0_88, %c0_89] : memref<9x4x16xbf16, #tpu.memory_space<vmem>>, vector<1x4x16xbf16>
    %103 = vector.shape_cast %102 : vector<1x4x16xbf16> to vector<4x16xbf16>
    %cst_90 = arith.constant dense<0.000000e+00> : vector<4x128xf32>
    %104 = tpu.matmul %103, %97, %cst_90 {dimension_numbers = #tpu.dot_dimension_numbers<[1], [0], [0], [1], [0, 0, 1, 1], [], []>} : vector<4x16xbf16>, vector<16x128xbf16>, vector<4x128xf32> -> vector<4x128xf32>
    %105 = arith.truncf %104 : vector<4x128xf32> to vector<4x128xbf16>
    %c2_91 = arith.constant 2 : index
    %c0_92 = arith.constant 0 : index
    %c0_93 = arith.constant 0 : index
    %106 = vector.load %arg8[%c2_91, %c0_92, %c0_93] : memref<9x4x16xbf16, #tpu.memory_space<vmem>>, vector<1x4x16xbf16>
    %107 = vector.shape_cast %106 : vector<1x4x16xbf16> to vector<4x16xbf16>
    %cst_94 = arith.constant dense<0.000000e+00> : vector<4x128xf32>
    %108 = tpu.matmul %107, %97, %cst_94 {dimension_numbers = #tpu.dot_dimension_numbers<[1], [0], [0], [1], [0, 0, 1, 1], [], []>} : vector<4x16xbf16>, vector<16x128xbf16>, vector<4x128xf32> -> vector<4x128xf32>
    %109 = arith.truncf %108 : vector<4x128xf32> to vector<4x128xbf16>
    %c3_95 = arith.constant 3 : index
    %c0_96 = arith.constant 0 : index
    %c0_97 = arith.constant 0 : index
    %110 = vector.load %arg8[%c3_95, %c0_96, %c0_97] : memref<9x4x16xbf16, #tpu.memory_space<vmem>>, vector<1x4x16xbf16>
    %111 = vector.shape_cast %110 : vector<1x4x16xbf16> to vector<4x16xbf16>
    %cst_98 = arith.constant dense<0.000000e+00> : vector<4x128xf32>
    %112 = tpu.matmul %111, %97, %cst_98 {dimension_numbers = #tpu.dot_dimension_numbers<[1], [0], [0], [1], [0, 0, 1, 1], [], []>} : vector<4x16xbf16>, vector<16x128xbf16>, vector<4x128xf32> -> vector<4x128xf32>
    %113 = arith.truncf %112 : vector<4x128xf32> to vector<4x128xbf16>
    %c4_99 = arith.constant 4 : index
    %c0_100 = arith.constant 0 : index
    %c0_101 = arith.constant 0 : index
    %114 = vector.load %arg8[%c4_99, %c0_100, %c0_101] : memref<9x4x16xbf16, #tpu.memory_space<vmem>>, vector<1x4x16xbf16>
    %115 = vector.shape_cast %114 : vector<1x4x16xbf16> to vector<4x16xbf16>
    %cst_102 = arith.constant dense<0.000000e+00> : vector<4x128xf32>
    %116 = tpu.matmul %115, %97, %cst_102 {dimension_numbers = #tpu.dot_dimension_numbers<[1], [0], [0], [1], [0, 0, 1, 1], [], []>} : vector<4x16xbf16>, vector<16x128xbf16>, vector<4x128xf32> -> vector<4x128xf32>
    %117 = arith.truncf %116 : vector<4x128xf32> to vector<4x128xbf16>
    %c5_103 = arith.constant 5 : index
    %c0_104 = arith.constant 0 : index
    %c0_105 = arith.constant 0 : index
    %118 = vector.load %arg8[%c5_103, %c0_104, %c0_105] : memref<9x4x16xbf16, #tpu.memory_space<vmem>>, vector<1x4x16xbf16>
    %119 = vector.shape_cast %118 : vector<1x4x16xbf16> to vector<4x16xbf16>
    %cst_106 = arith.constant dense<0.000000e+00> : vector<4x128xf32>
    %120 = tpu.matmul %119, %97, %cst_106 {dimension_numbers = #tpu.dot_dimension_numbers<[1], [0], [0], [1], [0, 0, 1, 1], [], []>} : vector<4x16xbf16>, vector<16x128xbf16>, vector<4x128xf32> -> vector<4x128xf32>
    %121 = arith.truncf %120 : vector<4x128xf32> to vector<4x128xbf16>
    %c6_107 = arith.constant 6 : index
    %c0_108 = arith.constant 0 : index
    %c0_109 = arith.constant 0 : index
    %122 = vector.load %arg8[%c6_107, %c0_108, %c0_109] : memref<9x4x16xbf16, #tpu.memory_space<vmem>>, vector<1x4x16xbf16>
    %123 = vector.shape_cast %122 : vector<1x4x16xbf16> to vector<4x16xbf16>
    %cst_110 = arith.constant dense<0.000000e+00> : vector<4x128xf32>
    %124 = tpu.matmul %123, %97, %cst_110 {dimension_numbers = #tpu.dot_dimension_numbers<[1], [0], [0], [1], [0, 0, 1, 1], [], []>} : vector<4x16xbf16>, vector<16x128xbf16>, vector<4x128xf32> -> vector<4x128xf32>
    %125 = arith.truncf %124 : vector<4x128xf32> to vector<4x128xbf16>
    %c7_111 = arith.constant 7 : index
    %c0_112 = arith.constant 0 : index
    %c0_113 = arith.constant 0 : index
    %126 = vector.load %arg8[%c7_111, %c0_112, %c0_113] : memref<9x4x16xbf16, #tpu.memory_space<vmem>>, vector<1x4x16xbf16>
    %127 = vector.shape_cast %126 : vector<1x4x16xbf16> to vector<4x16xbf16>
    %cst_114 = arith.constant dense<0.000000e+00> : vector<4x128xf32>
    %128 = tpu.matmul %127, %97, %cst_114 {dimension_numbers = #tpu.dot_dimension_numbers<[1], [0], [0], [1], [0, 0, 1, 1], [], []>} : vector<4x16xbf16>, vector<16x128xbf16>, vector<4x128xf32> -> vector<4x128xf32>
    %129 = arith.truncf %128 : vector<4x128xf32> to vector<4x128xbf16>
    %c8_115 = arith.constant 8 : index
    %c0_116 = arith.constant 0 : index
    %c0_117 = arith.constant 0 : index
    %130 = vector.load %arg8[%c8_115, %c0_116, %c0_117] : memref<9x4x16xbf16, #tpu.memory_space<vmem>>, vector<1x4x16xbf16>
    %131 = vector.shape_cast %130 : vector<1x4x16xbf16> to vector<4x16xbf16>
    %cst_118 = arith.constant dense<0.000000e+00> : vector<4x128xf32>
    %132 = tpu.matmul %131, %97, %cst_118 {dimension_numbers = #tpu.dot_dimension_numbers<[1], [0], [0], [1], [0, 0, 1, 1], [], []>} : vector<4x16xbf16>, vector<16x128xbf16>, vector<4x128xf32> -> vector<4x128xf32>
    %133 = arith.truncf %132 : vector<4x128xf32> to vector<4x128xbf16>
    %134 = tpu.concatenate %101, %105, %109, %113, %117, %121, %125, %129, %133 in 1 : vector<4x128xbf16>, vector<4x128xbf16>, vector<4x128xbf16>, vector<4x128xbf16>, vector<4x128xbf16>, vector<4x128xbf16>, vector<4x128xbf16>, vector<4x128xbf16>, vector<4x128xbf16> -> vector<4x1152xbf16>
    %c0_119 = arith.constant 0 : index
    %c0_120 = arith.constant 0 : index
    %135 = vector.load %arg9[%c0_119, %c0_120] : memref<1152x128xbf16, #tpu.memory_space<vmem>>, vector<1152x128xbf16>
    %cst_121 = arith.constant dense<0.000000e+00> : vector<4x128xf32>
    %136 = tpu.matmul %134, %135, %cst_121 {dimension_numbers = #tpu.dot_dimension_numbers<[1], [0], [0], [1], [0, 0, 1, 1], [], []>} : vector<4x1152xbf16>, vector<1152x128xbf16>, vector<4x128xf32> -> vector<4x128xf32>
    %c0_122 = arith.constant 0 : index
    %c0_123 = arith.constant 0 : index
    %137 = vector.load %arg10[%c0_122, %c0_123] : memref<1x128xf32, #tpu.memory_space<vmem>>, vector<1x128xf32>
    %138 = vector.broadcast %137 : vector<1x128xf32> to vector<4x128xf32>
    %139 = arith.addf %136, %138 : vector<4x128xf32>
    %cst_124 = arith.constant 0.000000e+00 : f32
    %140 = vector.broadcast %cst_124 : f32 to vector<4x128xf32>
    %141 = arith.maximumf %139, %140 : vector<4x128xf32>
    %c0_125 = arith.constant 0 : index
    %c0_126 = arith.constant 0 : index
    %c0_127 = arith.constant 0 : index
    %142 = vector.load %arg13[%c0_125, %c0_126, %c0_127] : memref<1x4x128xf32, #tpu.memory_space<vmem>>, vector<1x4x128xf32>
    %143 = vector.shape_cast %142 : vector<1x4x128xf32> to vector<4x128xf32>
    %144 = vector.shape_cast %141 : vector<4x128xf32> to vector<1x4x128xf32>
    tpu.vector_store %arg13[%c0_125, %c0_126, %c0_127], %144 {strides = array<i32>} : memref<1x4x128xf32, #tpu.memory_space<vmem>>, vector<1x4x128xf32>,
    return
  }
  func.func @transform_0(%arg0: i32) -> (i32, i32, i32) {
    %c0_i32 = arith.constant 0 : i32
    %c0_i32_0 = arith.constant 0 : i32
    %c0_i32_1 = arith.constant 0 : i32
    return %arg0, %c0_i32, %c0_i32_0 : i32, i32, i32
  }
  func.func @transform_1(%arg0: i32) -> (i32, i32, i32) {
    %c0_i32 = arith.constant 0 : i32
    %c0_i32_0 = arith.constant 0 : i32
    %c0_i32_1 = arith.constant 0 : i32
    %c0_i32_2 = arith.constant 0 : i32
    return %c0_i32, %c0_i32_0, %c0_i32_1 : i32, i32, i32
  }
  func.func @transform_2(%arg0: i32) -> (i32, i32) {
    %c0_i32 = arith.constant 0 : i32
    %c0_i32_0 = arith.constant 0 : i32
    %c0_i32_1 = arith.constant 0 : i32
    return %c0_i32, %c0_i32_0 : i32, i32
  }
  func.func @transform_3(%arg0: i32) -> (i32, i32) {
    %c0_i32 = arith.constant 0 : i32
    %c0_i32_0 = arith.constant 0 : i32
    %c0_i32_1 = arith.constant 0 : i32
    return %c0_i32, %c0_i32_0 : i32, i32
  }
  func.func @transform_4(%arg0: i32) -> (i32, i32, i32) {
    %c0_i32 = arith.constant 0 : i32
    %c0_i32_0 = arith.constant 0 : i32
    %c0_i32_1 = arith.constant 0 : i32
    %c0_i32_2 = arith.constant 0 : i32
    return %c0_i32, %c0_i32_0, %c0_i32_1 : i32, i32, i32
  }
  func.func @transform_5(%arg0: i32) -> (i32, i32) {
    %c0_i32 = arith.constant 0 : i32
    %c0_i32_0 = arith.constant 0 : i32
    %c0_i32_1 = arith.constant 0 : i32
    return %c0_i32, %c0_i32_0 : i32, i32
  }
  func.func @transform_6(%arg0: i32) -> (i32, i32) {
    %c0_i32 = arith.constant 0 : i32
    %c0_i32_0 = arith.constant 0 : i32
    %c0_i32_1 = arith.constant 0 : i32
    return %c0_i32, %c0_i32_0 : i32, i32
  }
  func.func @transform_7(%arg0: i32) -> (i32, i32, i32) {
    %c0_i32 = arith.constant 0 : i32
    %c0_i32_0 = arith.constant 0 : i32
    %c0_i32_1 = arith.constant 0 : i32
    %c0_i32_2 = arith.constant 0 : i32
    return %c0_i32, %c0_i32_0, %c0_i32_1 : i32, i32, i32
  }
  func.func @transform_8(%arg0: i32) -> (i32, i32) {
    %c0_i32 = arith.constant 0 : i32
    %c0_i32_0 = arith.constant 0 : i32
    %c0_i32_1 = arith.constant 0 : i32
    return %c0_i32, %c0_i32_0 : i32, i32
  }
  func.func @transform_9(%arg0: i32) -> (i32, i32) {
    %c0_i32 = arith.constant 0 : i32
    %c0_i32_0 = arith.constant 0 : i32
    %c0_i32_1 = arith.constant 0 : i32
    return %c0_i32, %c0_i32_0 : i32, i32
  }
  func.func @transform_10(%arg0: i32) -> (i32, i32, i32) {
    %c0_i32 = arith.constant 0 : i32
    %c0_i32_0 = arith.constant 0 : i32
    %c0_i32_1 = arith.constant 0 : i32
    return %arg0, %c0_i32, %c0_i32_0 : i32, i32, i32
  }
  func.func @transform_11(%arg0: i32) -> (i32, i32, i32) {
    %c0_i32 = arith.constant 0 : i32
    %c0_i32_0 = arith.constant 0 : i32
    %c0_i32_1 = arith.constant 0 : i32
    return %arg0, %c0_i32, %c0_i32_0 : i32, i32, i32
  }
  func.func @transform_12(%arg0: i32) -> (i32, i32, i32) {
    %c0_i32 = arith.constant 0 : i32
    %c0_i32_0 = arith.constant 0 : i32
    %c0_i32_1 = arith.constant 0 : i32
    return %arg0, %c0_i32, %c0_i32_0 : i32, i32, i32
  }
}

</mosaic_0001>

<bundles_post_ra>
// kernel: _forward_impl.1
= control target key start
LH: loop header
LB: loop body
LE: loop exit
PB: predicated region body
PF: predicated region fallthrough
CT: control target
= control target key end

     0   :  { %18 = vsyncpa [#allocation3], 0  ;;  %s7587_s0 = inlined_call_operand.vmem [shape: bf16[2,256,128], index: 0, kind: input, shape index: {}]   ;;  %s7588_s1 = inlined_call_operand.hbm [shape: bf16[9,64,256], index: 1, kind: input, shape index: {}]   ;;  %s7589_s2 = inlined_call_operand.hbm [shape: bf16[1152,128], index: 2, kind: input, shape index: {}]   ;;  %s7590_s3 = inlined_call_operand.vmem [shape: f32[1,128], index: 3, kind: input, shape index: {}]   ;;  %s7591_s4 = inlined_call_operand.vmem [shape: bf16[9,16,64], index: 4, kind: input, shape index: {}]   ;;  %s7592_s5 = inlined_call_operand.hbm [shape: bf16[1152,128], index: 5, kind: input, shape index: {}]   ;;  %s7593_s6 = inlined_call_operand.vmem [shape: f32[1,128], index: 6, kind: input, shape index: {}]   ;;  %s7594_s7 = inlined_call_operand.vmem [shape: bf16[9,4,16], index: 7, kind: input, shape index: {}]   ;;  %s7595_s8 = inlined_call_operand.vmem [shape: bf16[1152,128], index: 8, kind: input, shape index: {}]   ;;  %s7596_s9 = inlined_call_operand.vmem [shape: f32[1,128], index: 9, kind: input, shape index: {}]   ;;  %s7597_s10 = inlined_call_operand.vmem [shape: f32[2,64,128], index: 10, kind: output, shape index: {0}]   ;;  %s7598_s11 = inlined_call_operand.vmem [shape: f32[2,16,128], index: 11, kind: output, shape index: {1}]   ;;  %s7599_s12 = inlined_call_operand.vmem [shape: f32[2,4,128], index: 12, kind: output, shape index: {2}]  }
   0x1   :  { %19 = vsyncpa [#allocation5], 0  ;;  %s6609_s21 = smov 0  }
   0x2 LB: > { %s348_s24 = sshll.u32 %s7589_s2, 4  ;;  %s6618_s25 = sadd.s32 4294967295, %s6535_s21   ;;  %s6535_s21 = sphi %s6609_s21, %s25_s21   ;;  %s349_s24 = int_to_ptr.hbm [resolvable:$true] %s348_s24 }
   0x3   : > { %p4757_p0 = scmp.ge.s32.totalorder %s6535_s21, 1  ;;  %p323_p1 = scmp.lt.s32.totalorder %s6535_s21, 3 }
   0x4   : > { %p6407_p2 = scmp.eq.s32.totalorder %s6618_s25, 0  ;;  %s6537_s27 = smov [#allocation4]  }
   0x5   : > { %p6623_p3 = pnand %p4757_p0, %p323_p1  ;;  %s350_s28 = sshll.u32 %s6537_s27, 4  ;;  %s351_s28 = int_to_ptr.vmem [resolvable:$true] %s350_s28 }
   0x6   : > { %s334_s13 = sshll.u32 %s7588_s1, 4  ;;  %s6538_s15 = smov [#allocation2]   ;;  %s335_s13 = int_to_ptr.hbm [resolvable:$true] %s334_s13 }
   0x7   : > { %p6397_p4 = pneg %p6623_p3  ;;  %s336_s16 = sshll.u32 %s6538_s15, 4  ;;  %s337_s16 = int_to_ptr.vmem [resolvable:$true] %s336_s16 }
   0x8   : > { %s6539_s17 = smov 64   ;;  %s6540_s18 = smov 4  }
   0x9   : > { %p6634_p5 = pnand %p6407_p2, %p6397_p4  ;;  %s368_s22 = sshll.u32 %s7592_s5, 4  ;;  %s369_s22 = int_to_ptr.hbm [resolvable:$true] %s368_s22 }
   0xa   : > { %s6541_s23 = smov 128   ;;  %s6542_s27 = smov 8  }
   0xb   : > { %6403 = dma.hbm_to_vmem [thread:$0]  (!%p6634_p5), %s349_s24, 9216, %s351_s28, [#allocation5], %s6539_s17, %s6539_s17, %s6540_s18  }
   0xc   : > { %6400 = dma.hbm_to_vmem [thread:$0]  (!%p6634_p5), %s335_s13, 9216, %s337_s16, [#allocation3], %s6541_s23, %s6541_s23, %s6542_s27  }
   0xd   : > { %s6543_s29 = smov [#allocation6]   ;;  %406 = sbr.rel (%p6623_p3) target bundleno = 1327 (0x52f), region = 60 }
   0xe   : > { %s370_s30 = sshll.u32 %s6543_s29, 4  ;;  %s371_s30 = int_to_ptr.vmem [resolvable:$true] %s370_s30 }
   0xf   : > { %6406 = dma.hbm_to_vmem [thread:$0]  (!%p6634_p5), %s369_s22, 9216, %s371_s30, [#allocation5], %s6539_s17, %s6539_s17, %s6540_s18  }
  0x12   : > { %6526 = dma.done.wait (%p6407_p2), [#allocation3], 9216  }
  0x13   : > { %6528 = vsyncadd (%p6407_p2), [#allocation3], 4294958080 }
  0x14   : > { %6530 = dma.done.wait (%p6407_p2), [#allocation5], 18432  }
  0x15   : > { %6532 = vsyncadd (%p6407_p2), [#allocation5], 4294948864  ;;  %p468_p6 = scmp.lt.s32.totalorder %s6618_s25, 1  ;;  %v4775_v16 = vld [vmem:[#allocation2] sm:$0xf]  ;;  %vm2734_vm0 = vcmask 523264  }
  0x16   : > { %v6089_v17 = vld [vmem:[#allocation2 + $0x4] sm:$0xf0]  ;;  %v6088_v18 = vld [vmem:[#allocation2 + $0x4] sm:$0xf]  ;;  %v4777_v19 = vld [vmem:[#allocation2 + $0x8] sm:$0xf0] }
  0x17   : > { %s7606_s25 = smov (!%p468_p6, %s6618_s25), 1  ;;  %v4871_v20 = vld [vmem:[#allocation2 + $0x40] sm:$0xf]  ;;  %v6097_v21 = vld [vmem:[#allocation2 + $0x44] sm:$0xf0]  ;;  %v4776_v24 = vor.u32 %v6089_v17, %v4775_v16  ;;  %v4780_v25 = vor.u32 %v6088_v18, %v4777_v19  ;;  %vm3736_vm1 = vcmask 130048  }
  0x18   : > { %s6069_s24 = sshll.u32 %s7606_s25, 7  ;;  %v6096_v22 = vld [vmem:[#allocation2 + $0x44] sm:$0xf]  ;;  %v4873_v23 = vld [vmem:[#allocation2 + $0x48] sm:$0xf0]  ;;  %v4872_v26 = vor.u32 %v6097_v21, %v4871_v20  ;;  %s6070_s16 = sshll.u32 %s7606_s25, 6 }
  0x19   : > { %s6665_s13 = scalar_lea.vmem %s7587_s0, %s6069_s24  ;;  %v4876_v27 = vor.u32 %v6096_v22, %v4873_v23  ;;  %v4783_v28 = vld [vmem:[#allocation2 + $0x10] sm:$0xf]  ;;  %v6091_v29 = vld [vmem:[#allocation2 + $0x14] sm:$0xf0]  ;;  %v6090_v30 = vld [vmem:[#allocation2 + $0x14] sm:$0xf]  ;;  %s7227_s19 = scalar_lea.vmem %s7597_s10, %s6070_s16 }
  0x1a   : > { %v6668_v0 = vld [vmem:[%s6665_s13 + $0x38] sm:$0xff]  ;;  %v6676_v2 = vld [vmem:[%s6665_s13 + $0x30] sm:$0xff]  ;;  %v6686_v4 = vld [vmem:[%s6665_s13 + $0x28] sm:$0xff]  ;;  %v4784_v36 = vor.u32 %v6091_v29, %v4783_v28  ;;  %s6071_s29 = sshll.u32 %s7606_s25, 4  ;;  %s4772_s16 = sshll.u32 %s7606_s25, 2 }
  0x1b   : > { %v6671_v1 = vld [vmem:[%s6665_s13 + $0x78] sm:$0xff]  ;;  %664 = vmatpush.bf16.msra.mxu0 %v6668_v0  ;;  %v6679_v3 = vld [vmem:[%s6665_s13 + $0x70] sm:$0xff]  ;;  %779 = vmatpush.bf16.msra.mxu2 %v6668_v0  ;;  %v6689_v5 = vld [vmem:[%s6665_s13 + $0x68] sm:$0xff]  ;;  %s482_s26 = scalar_lea.vmem %s7598_s11, %s6071_s29 }
  0x1c   : > { %693 = vmatpush.bf16.msra.mxu1 %v6671_v1  ;;  %808 = vmatpush.bf16.msra.mxu3 %v6671_v1  ;;  %v6696_v6 = vld [vmem:[%s6665_s13 + $0x20] sm:$0xff]  ;;  %v6706_v8 = vld [vmem:[%s6665_s13 + $0x18] sm:$0xff]  ;;  %v6716_v10 = vld [vmem:[%s6665_s13 + $0x10] sm:$0xff] }
  0x1d   : > { %v6699_v7 = vld [vmem:[%s6665_s13 + $0x60] sm:$0xff]  ;;  %v6709_v9 = vld [vmem:[%s6665_s13 + $0x58] sm:$0xff]  ;;  %v6719_v11 = vld [vmem:[%s6665_s13 + $0x50] sm:$0xff] }
  0x1e   : > { %v6726_v12 = vld [vmem:[%s6665_s13 + $0x8] sm:$0xff]  ;;  %v6734_v14 = vld [vmem:[%s6665_s13] sm:$0xff]  ;;  %v4785_v31 = vld [vmem:[#allocation2 + $0x18] sm:$0xf0] }
  0x1f   : > { %665 = vmatpush.bf16.msra.mxu0 %v6676_v2  ;;  %780 = vmatpush.bf16.msra.mxu2 %v6676_v2  ;;  %v6729_v13 = vld [vmem:[%s6665_s13 + $0x48] sm:$0xff]  ;;  %v6737_v15 = vld [vmem:[%s6665_s13 + $0x40] sm:$0xff]  ;;  %v4879_v32 = vld [vmem:[#allocation2 + $0x50] sm:$0xf]  ;;  %v4788_v37 = vor.u32 %v6090_v30, %v4785_v31 }
  0x20   : > { %694 = vmatpush.bf16.msra.mxu1 %v6679_v3  ;;  %809 = vmatpush.bf16.msra.mxu3 %v6679_v3  ;;  %v6099_v33 = vld [vmem:[#allocation2 + $0x54] sm:$0xf0]  ;;  %v6098_v34 = vld [vmem:[#allocation2 + $0x54] sm:$0xf]  ;;  %v4881_v35 = vld [vmem:[#allocation2 + $0x58] sm:$0xf0] }
  0x21   : > { %v4880_v38 = vor.u32 %v6099_v33, %v4879_v32  ;;  %v4884_v39 = vor.u32 %v6098_v34, %v4881_v35  ;;  %v4791_v40 = vld [vmem:[#allocation2 + $0x20] sm:$0xf]  ;;  %v6093_v41 = vld [vmem:[#allocation2 + $0x24] sm:$0xf0]  ;;  %v6092_v42 = vld [vmem:[#allocation2 + $0x24] sm:$0xf] }
  0x22   : > { %v4793_v43 = vld [vmem:[#allocation2 + $0x28] sm:$0xf0]  ;;  %v4887_v44 = vld [vmem:[#allocation2 + $0x60] sm:$0xf]  ;;  %v6101_v45 = vld [vmem:[#allocation2 + $0x64] sm:$0xf0]  ;;  %v4792_v48 = vor.u32 %v6093_v41, %v4791_v40 }
  0x23   : > { %666 = vmatpush.bf16.msra.mxu0 %v6686_v4  ;;  %781 = vmatpush.bf16.msra.mxu2 %v6686_v4  ;;  %v6100_v46 = vld [vmem:[#allocation2 + $0x64] sm:$0xf]  ;;  %v4889_v47 = vld [vmem:[#allocation2 + $0x68] sm:$0xf0]  ;;  %v4796_v49 = vor.u32 %v6092_v42, %v4793_v43  ;;  %v4888_v50 = vor.u32 %v6101_v45, %v4887_v44  ;;  %v4799_v52 = vld [vmem:[#allocation2 + $0x30] sm:$0xf] }
  0x24   : > { %695 = vmatpush.bf16.msra.mxu1 %v6689_v5  ;;  %810 = vmatpush.bf16.msra.mxu3 %v6689_v5  ;;  %v4892_v51 = vor.u32 %v6100_v46, %v4889_v47  ;;  %v6095_v53 = vld [vmem:[#allocation2 + $0x34] sm:$0xf0]  ;;  %v6094_v54 = vld [vmem:[#allocation2 + $0x34] sm:$0xf]  ;;  %v4801_v55 = vld [vmem:[#allocation2 + $0x38] sm:$0xf0] }
  0x25   : > { %v4895_v56 = vld [vmem:[#allocation2 + $0x70] sm:$0xf]  ;;  %v6103_v57 = vld [vmem:[#allocation2 + $0x74] sm:$0xf0]  ;;  %v6102_v58 = vld [vmem:[#allocation2 + $0x74] sm:$0xf]  ;;  %v4800_v60 = vor.u32 %v6095_v53, %v4799_v52  ;;  %v4804_v61 = vor.u32 %v6094_v54, %v4801_v55 }
  0x26   : > { %v4897_v59 = vld [vmem:[#allocation2 + $0x78] sm:$0xf0]  ;;  %v4896_v62 = vor.u32 %v6103_v57, %v4895_v56  ;;  %v4903_v16 = vld [vmem:[#allocation2 + $0x80] sm:$0xf]  ;;  %v6105_v17 = vld [vmem:[#allocation2 + $0x84] sm:$0xf0] }
  0x27   : > { %667 = vmatpush.bf16.msra.mxu0 %v6696_v6  ;;  %782 = vmatpush.bf16.msra.mxu2 %v6696_v6  ;;  %v4900_v63 = vor.u32 %v6102_v58, %v4897_v59  ;;  %v6104_v18 = vld [vmem:[#allocation2 + $0x84] sm:$0xf]  ;;  %v4905_v19 = vld [vmem:[#allocation2 + $0x88] sm:$0xf0]  ;;  %v4935_v20 = vld [vmem:[#allocation2 + $0xc0] sm:$0xf] }
  0x28   : > { %696 = vmatpush.bf16.msra.mxu1 %v6699_v7  ;;  %811 = vmatpush.bf16.msra.mxu3 %v6699_v7  ;;  %v6113_v21 = vld [vmem:[#allocation2 + $0xc4] sm:$0xf0]  ;;  %v6112_v22 = vld [vmem:[#allocation2 + $0xc4] sm:$0xf]  ;;  %v4937_v23 = vld [vmem:[#allocation2 + $0xc8] sm:$0xf0] }
  0x29   : > { %v4911_v28 = vld [vmem:[#allocation2 + $0x90] sm:$0xf]  ;;  %v6107_v29 = vld [vmem:[#allocation2 + $0x94] sm:$0xf0]  ;;  %v6106_v30 = vld [vmem:[#allocation2 + $0x94] sm:$0xf] }
  0x2a   : > { %v4913_v31 = vld [vmem:[#allocation2 + $0x98] sm:$0xf0]  ;;  %v4943_v32 = vld [vmem:[#allocation2 + $0xd0] sm:$0xf]  ;;  %v6115_v33 = vld [vmem:[#allocation2 + $0xd4] sm:$0xf0] }
  0x2b   : > { %668 = vmatpush.bf16.msra.mxu0 %v6706_v8  ;;  %783 = vmatpush.bf16.msra.mxu2 %v6706_v8  ;;  %v6114_v34 = vld [vmem:[#allocation2 + $0xd4] sm:$0xf]  ;;  %v4945_v35 = vld [vmem:[#allocation2 + $0xd8] sm:$0xf0]  ;;  %v4919_v40 = vld [vmem:[#allocation2 + $0xa0] sm:$0xf] }
  0x2c   : > { %697 = vmatpush.bf16.msra.mxu1 %v6709_v9  ;;  %812 = vmatpush.bf16.msra.mxu3 %v6709_v9  ;;  %v6109_v41 = vld [vmem:[#allocation2 + $0xa4] sm:$0xf0]  ;;  %v6108_v42 = vld [vmem:[#allocation2 + $0xa4] sm:$0xf]  ;;  %v4921_v43 = vld [vmem:[#allocation2 + $0xa8] sm:$0xf0] }
  0x2d   : > { %v4951_v44 = vld [vmem:[#allocation2 + $0xe0] sm:$0xf]  ;;  %v6117_v45 = vld [vmem:[#allocation2 + $0xe4] sm:$0xf0]  ;;  %v6116_v46 = vld [vmem:[#allocation2 + $0xe4] sm:$0xf] }
  0x2e   : > { %v4953_v47 = vld [vmem:[#allocation2 + $0xe8] sm:$0xf0]  ;;  %v4927_v52 = vld [vmem:[#allocation2 + $0xb0] sm:$0xf]  ;;  %v6111_v53 = vld [vmem:[#allocation2 + $0xb4] sm:$0xf0] }
  0x2f   : > { %669 = vmatpush.bf16.msra.mxu0 %v6716_v10  ;;  %784 = vmatpush.bf16.msra.mxu2 %v6716_v10  ;;  %v6110_v54 = vld [vmem:[#allocation2 + $0xb4] sm:$0xf]  ;;  %v4929_v55 = vld [vmem:[#allocation2 + $0xb8] sm:$0xf0]  ;;  %v4959_v56 = vld [vmem:[#allocation2 + $0xf0] sm:$0xf] }
  0x30   : > { %698 = vmatpush.bf16.msra.mxu1 %v6719_v11  ;;  %813 = vmatpush.bf16.msra.mxu3 %v6719_v11  ;;  %v6119_v57 = vld [vmem:[#allocation2 + $0xf4] sm:$0xf0]  ;;  %v6118_v58 = vld [vmem:[#allocation2 + $0xf4] sm:$0xf]  ;;  %v4961_v59 = vld [vmem:[#allocation2 + $0xf8] sm:$0xf0] }
  0x33   : > { %670 = vmatpush.bf16.msra.mxu0 %v6726_v12  ;;  %785 = vmatpush.bf16.msra.mxu2 %v6726_v12 }
  0x34   : > { %699 = vmatpush.bf16.msra.mxu1 %v6729_v13  ;;  %814 = vmatpush.bf16.msra.mxu3 %v6729_v13 }
  0x37   : > { %671 = vmatpush.bf16.msra.mxu0 %v6734_v14  ;;  %786 = vmatpush.bf16.msra.mxu2 %v6734_v14 }
  0x38   : > { %700 = vmatpush.bf16.msra.mxu1 %v6737_v15  ;;  %815 = vmatpush.bf16.msra.mxu3 %v6737_v15 }
  0x3a   : > { %672 = vmatmul.bf16.vlgmr.msra.gmra.mxu0 %v4776_v24  ;;  %787 = vmatmul.bf16.vlgmr.msra.gmra.mxu2 %v4872_v26  ;;  %v4904_v24 = vor.u32 %v6105_v17, %v4903_v16  ;;  %v4936_v26 = vor.u32 %v6113_v21, %v4935_v20  ;;  %v4967_v16 = vld [vmem:[#allocation2 + $0x100] sm:$0xf]  ;;  %v6121_v17 = vld [vmem:[#allocation2 + $0x104] sm:$0xf0] }
  0x3b   : > { %894 = vmatpush.bf16.msrb.mxu0 %v6668_v0  ;;  %701 = vmatmul.bf16.vlgmr.msra.gmra.mxu1 %v4780_v25  ;;  %v4908_v25 = vor.u32 %v6104_v18, %v4905_v19  ;;  %v6120_v18 = vld [vmem:[#allocation2 + $0x104] sm:$0xf]  ;;  %v4969_v19 = vld [vmem:[#allocation2 + $0x108] sm:$0xf0]  ;;  %v4999_v20 = vld [vmem:[#allocation2 + $0x140] sm:$0xf] }
  0x3c   : > { %923 = vmatpush.bf16.msrb.mxu1 %v6671_v1  ;;  %816 = vmatmul.bf16.vlgmr.msra.gmra.mxu3 %v4876_v27  ;;  %v4940_v27 = vor.u32 %v6112_v22, %v4937_v23  ;;  %v6129_v21 = vld [vmem:[#allocation2 + $0x144] sm:$0xf0]  ;;  %v6128_v22 = vld [vmem:[#allocation2 + $0x144] sm:$0xf]  ;;  %v5001_v23 = vld [vmem:[#allocation2 + $0x148] sm:$0xf0] }
  0x3d   : > { %1009 = vmatpush.bf16.msrb.mxu2 %v6668_v0  ;;  %1038 = vmatpush.bf16.msrb.mxu3 %v6671_v1 }
  0x3f   : > { %895 = vmatpush.bf16.msrb.mxu0 %v6676_v2 }
  0x40   : > { %924 = vmatpush.bf16.msrb.mxu1 %v6679_v3 }
  0x41   : > { %1010 = vmatpush.bf16.msrb.mxu2 %v6676_v2  ;;  %1039 = vmatpush.bf16.msrb.mxu3 %v6679_v3 }
  0x43   : > { %896 = vmatpush.bf16.msrb.mxu0 %v6686_v4 }
  0x44   : > { %925 = vmatpush.bf16.msrb.mxu1 %v6689_v5 }
  0x45   : > { %1011 = vmatpush.bf16.msrb.mxu2 %v6686_v4  ;;  %1040 = vmatpush.bf16.msrb.mxu3 %v6689_v5 }
  0x47   : > { %897 = vmatpush.bf16.msrb.mxu0 %v6696_v6 }
  0x48   : > { %926 = vmatpush.bf16.msrb.mxu1 %v6699_v7 }
  0x49   : > { %1012 = vmatpush.bf16.msrb.mxu2 %v6696_v6  ;;  %1041 = vmatpush.bf16.msrb.mxu3 %v6699_v7 }
  0x4a   : > { %677 = vmatmul.bf16.gmra.mxu0 %v4784_v36  ;;  %792 = vmatmul.bf16.gmra.mxu2 %v4880_v38  ;;  %v4912_v36 = vor.u32 %v6107_v29, %v4911_v28  ;;  %v4944_v38 = vor.u32 %v6115_v33, %v4943_v32  ;;  %v5000_v28 = vor.u32 %v6129_v21, %v4999_v20 }
  0x4b   : > { %898 = vmatpush.bf16.msrb.mxu0 %v6706_v8  ;;  %706 = vmatmul.bf16.gmra.mxu1 %v4788_v37  ;;  %v4916_v37 = vor.u32 %v6106_v30, %v4913_v31  ;;  %v5004_v29 = vor.u32 %v6128_v22, %v5001_v23  ;;  %v6133_v22 = vld [vmem:[#allocation2 + $0x164] sm:$0xf0]  ;;  %v6132_v23 = vld [vmem:[#allocation2 + $0x164] sm:$0xf] }
  0x4c   : > { %927 = vmatpush.bf16.msrb.mxu1 %v6709_v9  ;;  %821 = vmatmul.bf16.gmra.mxu3 %v4884_v39  ;;  %v4948_v39 = vor.u32 %v6114_v34, %v4945_v35 }
  0x4d   : > { %1013 = vmatpush.bf16.msrb.mxu2 %v6706_v8  ;;  %1042 = vmatpush.bf16.msrb.mxu3 %v6709_v9 }
  0x4f   : > { %899 = vmatpush.bf16.msrb.mxu0 %v6716_v10 }
  0x50   : > { %928 = vmatpush.bf16.msrb.mxu1 %v6719_v11 }
  0x51   : > { %1014 = vmatpush.bf16.msrb.mxu2 %v6716_v10  ;;  %1043 = vmatpush.bf16.msrb.mxu3 %v6719_v11 }
  0x53   : > { %900 = vmatpush.bf16.msrb.mxu0 %v6726_v12 }
  0x54   : > { %929 = vmatpush.bf16.msrb.mxu1 %v6729_v13 }
  0x55   : > { %1015 = vmatpush.bf16.msrb.mxu2 %v6726_v12  ;;  %1044 = vmatpush.bf16.msrb.mxu3 %v6729_v13 }
  0x57   : > { %901 = vmatpush.bf16.msrb.mxu0 %v6734_v14 }
  0x58   : > { %930 = vmatpush.bf16.msrb.mxu1 %v6737_v15 }
  0x59   : > { %1016 = vmatpush.bf16.msrb.mxu2 %v6734_v14  ;;  %1045 = vmatpush.bf16.msrb.mxu3 %v6737_v15 }
  0x5a   : > { %682 = vmatmul.bf16.gmra.mxu0 %v4792_v48  ;;  %797 = vmatmul.bf16.gmra.mxu2 %v4888_v50  ;;  %v4920_v48 = vor.u32 %v6109_v41, %v4919_v40  ;;  %v4952_v50 = vor.u32 %v6117_v45, %v4951_v44  ;;  %v6123_v40 = vld [vmem:[#allocation2 + $0x114] sm:$0xf0]  ;;  %v6122_v41 = vld [vmem:[#allocation2 + $0x114] sm:$0xf] }
  0x5b   : > { %1124 = vmatpush.bf16.msra.mxu0 %v6668_v0  ;;  %711 = vmatmul.bf16.gmra.mxu1 %v4796_v49  ;;  %v4924_v49 = vor.u32 %v6108_v42, %v4921_v43  ;;  %v4977_v42 = vld [vmem:[#allocation2 + $0x118] sm:$0xf0]  ;;  %v5007_v43 = vld [vmem:[#allocation2 + $0x150] sm:$0xf]  ;;  %v6131_v44 = vld [vmem:[#allocation2 + $0x154] sm:$0xf0] }
  0x5c   : > { %1153 = vmatpush.bf16.msra.mxu1 %v6671_v1  ;;  %826 = vmatmul.bf16.gmra.mxu3 %v4892_v51  ;;  %v4956_v51 = vor.u32 %v6116_v46, %v4953_v47  ;;  %v6130_v45 = vld [vmem:[#allocation2 + $0x154] sm:$0xf]  ;;  %v5009_v46 = vld [vmem:[#allocation2 + $0x158] sm:$0xf0] }
  0x5d   : > { %1239 = vmatpush.bf16.msra.mxu2 %v6668_v0  ;;  %1268 = vmatpush.bf16.msra.mxu3 %v6671_v1 }
  0x5f   : > { %1125 = vmatpush.bf16.msra.mxu0 %v6676_v2 }
  0x60   : > { %1154 = vmatpush.bf16.msra.mxu1 %v6679_v3 }
  0x61   : > { %1240 = vmatpush.bf16.msra.mxu2 %v6676_v2  ;;  %1269 = vmatpush.bf16.msra.mxu3 %v6679_v3 }
  0x63   : > { %1126 = vmatpush.bf16.msra.mxu0 %v6686_v4 }
  0x64   : > { %1155 = vmatpush.bf16.msra.mxu1 %v6689_v5 }
  0x65   : > { %1241 = vmatpush.bf16.msra.mxu2 %v6686_v4  ;;  %1270 = vmatpush.bf16.msra.mxu3 %v6689_v5 }
  0x67   : > { %1127 = vmatpush.bf16.msra.mxu0 %v6696_v6 }
  0x68   : > { %1156 = vmatpush.bf16.msra.mxu1 %v6699_v7 }
  0x69   : > { %1242 = vmatpush.bf16.msra.mxu2 %v6696_v6  ;;  %1271 = vmatpush.bf16.msra.mxu3 %v6699_v7 }
  0x6a   : > { %687 = vmatmul.bf16.gmra.mxu0 %v4800_v60  ;;  %802 = vmatmul.bf16.gmra.mxu2 %v4896_v62  ;;  %v4928_v60 = vor.u32 %v6111_v53, %v4927_v52  ;;  %v4960_v62 = vor.u32 %v6119_v57, %v4959_v56 }
  0x6b   : > { %1128 = vmatpush.bf16.msra.mxu0 %v6706_v8  ;;  %716 = vmatmul.bf16.gmra.mxu1 %v4804_v61  ;;  %v4932_v61 = vor.u32 %v6110_v54, %v4929_v55  ;;  %v5008_v54 = vor.u32 %v6131_v44, %v5007_v43  ;;  %v5012_v55 = vor.u32 %v6130_v45, %v5009_v46  ;;  %v4991_v43 = vld [vmem:[#allocation2 + $0x130] sm:$0xf]  ;;  %v6127_v44 = vld [vmem:[#allocation2 + $0x134] sm:$0xf0]  ;;  %v6126_v45 = vld [vmem:[#allocation2 + $0x134] sm:$0xf] }
  0x6c   : > { %1157 = vmatpush.bf16.msra.mxu1 %v6709_v9  ;;  %831 = vmatmul.bf16.gmra.mxu3 %v4900_v63  ;;  %v4964_v63 = vor.u32 %v6118_v58, %v4961_v59  ;;  %v4993_v46 = vld [vmem:[#allocation2 + $0x138] sm:$0xf0] }
  0x6d   : > { %1243 = vmatpush.bf16.msra.mxu2 %v6706_v8  ;;  %1272 = vmatpush.bf16.msra.mxu3 %v6709_v9 }
  0x6f   : > { %1129 = vmatpush.bf16.msra.mxu0 %v6716_v10 }
  0x70   : > { %1158 = vmatpush.bf16.msra.mxu1 %v6719_v11 }
  0x71   : > { %1244 = vmatpush.bf16.msra.mxu2 %v6716_v10  ;;  %1273 = vmatpush.bf16.msra.mxu3 %v6719_v11 }
  0x73   : > { %1130 = vmatpush.bf16.msra.mxu0 %v6726_v12 }
  0x74   : > { %1159 = vmatpush.bf16.msra.mxu1 %v6729_v13 }
  0x75   : > { %1245 = vmatpush.bf16.msra.mxu2 %v6726_v12  ;;  %1274 = vmatpush.bf16.msra.mxu3 %v6729_v13 }
  0x77   : > { %1131 = vmatpush.bf16.msra.mxu0 %v6734_v14 }
  0x78   : > { %1160 = vmatpush.bf16.msra.mxu1 %v6737_v15 }
  0x79   : > { %1246 = vmatpush.bf16.msra.mxu2 %v6734_v14  ;;  %1275 = vmatpush.bf16.msra.mxu3 %v6737_v15 }
  0x7a   : > { %902 = vmatmul.bf16.vlgmr.msrb.gmra.mxu0 %v4904_v24  ;;  %1017 = vmatmul.bf16.vlgmr.msrb.gmra.mxu2 %v4936_v26  ;;  %v4968_v24 = vor.u32 %v6121_v17, %v4967_v16  ;;  %v4983_v17 = vld [vmem:[#allocation2 + $0x120] sm:$0xf] }
  0x7b   : > { %931 = vmatmul.bf16.vlgmr.msrb.gmra.mxu1 %v4908_v25  ;;  %1354 = vmatpush.bf16.msrb.mxu0 %v6668_v0  ;;  %v4972_v25 = vor.u32 %v6120_v18, %v4969_v19  ;;  %v6125_v18 = vld [vmem:[#allocation2 + $0x124] sm:$0xf0]  ;;  %v4985_v19 = vld [vmem:[#allocation2 + $0x128] sm:$0xf0] }
  0x7c   : > { %1046 = vmatmul.bf16.vlgmr.msrb.gmra.mxu3 %v4940_v27  ;;  %1383 = vmatpush.bf16.msrb.mxu1 %v6671_v1 }
  0x7d   : > { %1469 = vmatpush.bf16.msrb.mxu2 %v6668_v0  ;;  %1498 = vmatpush.bf16.msrb.mxu3 %v6671_v1 }
  0x7f   : > { %1355 = vmatpush.bf16.msrb.mxu0 %v6676_v2 }
  0x80   : > { %1384 = vmatpush.bf16.msrb.mxu1 %v6679_v3 }
  0x81   : > { %1470 = vmatpush.bf16.msrb.mxu2 %v6676_v2  ;;  %1499 = vmatpush.bf16.msrb.mxu3 %v6679_v3 }
  0x83   : > { %1356 = vmatpush.bf16.msrb.mxu0 %v6686_v4 }
  0x84   : > { %1385 = vmatpush.bf16.msrb.mxu1 %v6689_v5 }
  0x85   : > { %1471 = vmatpush.bf16.msrb.mxu2 %v6686_v4  ;;  %1500 = vmatpush.bf16.msrb.mxu3 %v6689_v5 }
  0x87   : > { %1357 = vmatpush.bf16.msrb.mxu0 %v6696_v6 }
  0x88   : > { %1386 = vmatpush.bf16.msrb.mxu1 %v6699_v7 }
  0x89   : > { %1472 = vmatpush.bf16.msrb.mxu2 %v6696_v6  ;;  %1501 = vmatpush.bf16.msrb.mxu3 %v6699_v7 }
  0x8a   : > { %907 = vmatmul.bf16.gmra.mxu0 %v4912_v36  ;;  %1022 = vmatmul.bf16.gmra.mxu2 %v4944_v38 }
  0x8b   : > { %936 = vmatmul.bf16.gmra.mxu1 %v4916_v37  ;;  %1358 = vmatpush.bf16.msrb.mxu0 %v6706_v8 }
  0x8c   : > { %1051 = vmatmul.bf16.gmra.mxu3 %v4948_v39  ;;  %1387 = vmatpush.bf16.msrb.mxu1 %v6709_v9  ;;  %v4975_v39 = vld [vmem:[#allocation2 + $0x110] sm:$0xf] }
  0x8d   : > { %1473 = vmatpush.bf16.msrb.mxu2 %v6706_v8  ;;  %1502 = vmatpush.bf16.msrb.mxu3 %v6709_v9 }
  0x8f   : > { %1359 = vmatpush.bf16.msrb.mxu0 %v6716_v10 }
  0x90   : > { %1388 = vmatpush.bf16.msrb.mxu1 %v6719_v11 }
  0x91   : > { %1474 = vmatpush.bf16.msrb.mxu2 %v6716_v10  ;;  %1503 = vmatpush.bf16.msrb.mxu3 %v6719_v11 }
  0x93   : > { %1360 = vmatpush.bf16.msrb.mxu0 %v6726_v12 }
  0x94   : > { %1389 = vmatpush.bf16.msrb.mxu1 %v6729_v13 }
  0x95   : > { %1475 = vmatpush.bf16.msrb.mxu2 %v6726_v12  ;;  %1504 = vmatpush.bf16.msrb.mxu3 %v6729_v13 }
  0x97   : > { %1361 = vmatpush.bf16.msrb.mxu0 %v6734_v14 }
  0x98   : > { %1390 = vmatpush.bf16.msrb.mxu1 %v6737_v15 }
  0x99   : > { %1476 = vmatpush.bf16.msrb.mxu2 %v6734_v14  ;;  %1505 = vmatpush.bf16.msrb.mxu3 %v6737_v15 }
  0x9a   : > { %912 = vmatmul.bf16.gmra.mxu0 %v4920_v48  ;;  %1027 = vmatmul.bf16.gmra.mxu2 %v4952_v50  ;;  %v4980_v50 = vor.u32 %v6122_v41, %v4977_v42 }
  0x9b   : > { %941 = vmatmul.bf16.gmra.mxu1 %v4924_v49  ;;  %v4976_v49 = vor.u32 %v6123_v40, %v4975_v39 }
  0x9c   : > { %1056 = vmatmul.bf16.gmra.mxu3 %v4956_v51 }
  0xaa   : > { %917 = vmatmul.bf16.gmra.mxu0 %v4928_v60  ;;  %1032 = vmatmul.bf16.gmra.mxu2 %v4960_v62 }
  0xab   : > { %946 = vmatmul.bf16.gmra.mxu1 %v4932_v61 }
  0xac   : > { %1061 = vmatmul.bf16.gmra.mxu3 %v4964_v63 }
  0xb7   : > { %v673_v26 = vpop.f32.mrf.mxu0 }
  0xb8   : > { %v702_v27 = vpop.f32.mrf.mxu1 }
  0xb9   : > { %v703_v30 = vadd.f32 %v702_v27, %v673_v26  ;;  %v4984_v26 = vor.u32 %v6125_v18, %v4983_v17 }
  0xba   : > { %1132 = vmatmul.bf16.vlgmr.msra.gmra.mxu0 %v4968_v24  ;;  %1247 = vmatmul.bf16.vlgmr.msra.gmra.mxu2 %v5000_v28  ;;  %v5017_v24 = vld [vmem:[#allocation2 + $0x168] sm:$0xf0] }
  0xbb   : > { %1161 = vmatmul.bf16.vlgmr.msra.gmra.mxu1 %v4972_v25  ;;  %1584 = vmatpush.bf16.msra.mxu0 %v6668_v0  ;;  %v722_v36 = vpack.c.bf16 %v703_v30, %v703_v30 }
  0xbc   : > { %1276 = vmatmul.bf16.vlgmr.msra.gmra.mxu3 %v5004_v29  ;;  %1613 = vmatpush.bf16.msra.mxu1 %v6671_v1 }
  0xbd   : > { %v788_v31 = vpop.f32.mrf.mxu2  ;;  %v6847_v0 = vunpack.c.l.b16 %v722_v36 }
  0xbf   : > { %v817_v32 = vpop.f32.mrf.mxu3  ;;  %v675_v34 = vpop.f32.mrf.mxu0  ;;  %1585 = vmatpush.bf16.msra.mxu0 %v6676_v2 }
  0xc0   : > { %v818_v33 = vadd.f32 %v817_v32, %v788_v31  ;;  %v704_v35 = vpop.f32.mrf.mxu1  ;;  %1614 = vmatpush.bf16.msra.mxu1 %v6679_v3 }
  0xc1   : > { %v705_v37 = vadd.f32 %v704_v35, %v675_v34 }
  0xc2   : > { %v837_v2 = vpack.c.bf16 %v818_v33, %v818_v33  ;;  %v5020_v33 = vor.u32 %v6132_v23, %v5017_v24 }
  0xc3   : > { %v723_v38 = vpack.c.bf16 %v705_v37, %v705_v37  ;;  %1586 = vmatpush.bf16.msra.mxu0 %v6686_v4 }
  0xc4   : > { %1615 = vmatpush.bf16.msra.mxu1 %v6689_v5  ;;  %v6857_v4 = vunpack.c.l.b16 %v837_v2  ;;  %v5023_v2 = vld [vmem:[#allocation2 + $0x170] sm:$0xf] }
  0xc5   : > { %v6849_v1 = vunpack.c.l.b16 %v723_v38  ;;  %v790_v47 = vpop.f32.mrf.mxu2 }
  0xc7   : > { %v1666_v3 = vpack.c.b16 %v6849_v1, %v6847_v0  ;;  %v819_v48 = vpop.f32.mrf.mxu3  ;;  %v678_v52 = vpop.f32.mrf.mxu0  ;;  %1587 = vmatpush.bf16.msra.mxu0 %v6696_v6  ;;  %v6206_v1 = vld [vmem:[#allocation4 + $0x170] sm:$0xff] }
  0xc8   : > { %v820_v51 = vadd.f32 %v819_v48, %v790_v47  ;;  %v707_v53 = vpop.f32.mrf.mxu1  ;;  %1616 = vmatpush.bf16.msra.mxu1 %v6699_v7 }
  0xc9   : > { %v708_v56 = vadd.f32 %v707_v53, %v678_v52 }
  0xca   : > { %v838_v5 = vpack.c.bf16 %v820_v51, %v820_v51  ;;  %1137 = vmatmul.bf16.gmra.mxu0 %v4976_v49  ;;  %1252 = vmatmul.bf16.gmra.mxu2 %v5008_v54  ;;  %v6135_v49 = vld [vmem:[#allocation2 + $0x174] sm:$0xf0]  ;;  %v5025_v51 = vld [vmem:[#allocation2 + $0x178] sm:$0xf0] }
  0xcb   : > { %1166 = vmatmul.bf16.gmra.mxu1 %v4980_v50  ;;  %1588 = vmatpush.bf16.msra.mxu0 %v6706_v8  ;;  %v724_v62 = vpack.c.bf16 %v708_v56, %v708_v56  ;;  %v6124_v8 = vld [vmem:[#allocation2 + $0x124] sm:$0xf]  ;;  %v6134_v50 = vld [vmem:[#allocation2 + $0x174] sm:$0xf]  ;;  %v4996_v56 = vor.u32 %v6126_v45, %v4993_v46 }
  0xcc   : > { %v6859_v57 = vunpack.c.l.b16 %v838_v5  ;;  %1281 = vmatmul.bf16.gmra.mxu3 %v5012_v55  ;;  %1617 = vmatpush.bf16.msra.mxu1 %v6709_v9  ;;  %v5015_v9 = vld [vmem:[#allocation2 + $0x160] sm:$0xf]  ;;  %v4988_v27 = vor.u32 %v6124_v8, %v4985_v19  ;;  %v4992_v55 = vor.u32 %v6127_v44, %v4991_v43 }
  0xcd   : > { %v793_v59 = vpop.f32.mrf.mxu2  ;;  %v6867_v20 = vunpack.c.l.b16 %v724_v62  ;;  %v5016_v32 = vor.u32 %v6133_v22, %v5015_v9 }
  0xce   : > { %v1690_v58 = vpack.c.b16 %v6859_v57, %v6857_v4  ;;  %v6155_v4 = vld [vmem:[#allocation2 + $0x214] sm:$0xf0]  ;;  %v6181_v57 = vld [vmem:[#allocation4 + $0xa8] sm:$0xff] }
  0xcf   : > { %v822_v6 = vpop.f32.mrf.mxu3  ;;  %v680_v7 = vpop.f32.mrf.mxu0  ;;  %1589 = vmatpush.bf16.msra.mxu0 %v6716_v10 }
  0xd0   : > { %v823_v60 = vadd.f32 %v822_v6, %v793_v59  ;;  %v709_v61 = vpop.f32.mrf.mxu1  ;;  %1618 = vmatpush.bf16.msra.mxu1 %v6719_v11 }
  0xd1   : > { %v710_v63 = vadd.f32 %v709_v61, %v680_v7  ;;  %v5024_v7 = vor.u32 %v6135_v49, %v5023_v2  ;;  %v5028_v61 = vor.u32 %v6134_v50, %v5025_v51  ;;  %v6167_v50 = vld [vmem:[#allocation4 + $0x38] sm:$0xff] }
  0xd2   : > { %v839_v10 = vpack.c.bf16 %v823_v60, %v823_v60  ;;  %2446 = vmatpush.bf16.msra.mxu2 %v6167_v50  ;;  %v6163_v50 = vld [vmem:[#allocation4 + $0x18] sm:$0xff] }
  0xd3   : > { %v725_v16 = vpack.c.bf16 %v710_v63, %v710_v63  ;;  %1590 = vmatpush.bf16.msra.mxu0 %v6726_v12 }
  0xd4   : > { %1619 = vmatpush.bf16.msra.mxu1 %v6729_v13  ;;  %v6877_v12 = vunpack.c.l.b16 %v839_v10 }
  0xd5   : > { %v6869_v21 = vunpack.c.l.b16 %v725_v16  ;;  %v795_v25 = vpop.f32.mrf.mxu2 }
  0xd7   : > { %v824_v11 = vpop.f32.mrf.mxu3  ;;  %v1667_v28 = vpack.c.b16 %v6869_v21, %v6867_v20  ;;  %v683_v30 = vpop.f32.mrf.mxu0  ;;  %1591 = vmatpush.bf16.msra.mxu0 %v6734_v14  ;;  %v6202_v20 = vld [vmem:[#allocation4 + $0x150] sm:$0xff]  ;;  %v5111_v21 = vld [vmem:[#allocation2 + $0x220] sm:$0xf] }
  0xd8   : > { %v825_v29 = vadd.f32 %v824_v11, %v795_v25  ;;  %v712_v31 = vpop.f32.mrf.mxu1  ;;  %1620 = vmatpush.bf16.msra.mxu1 %v6737_v15  ;;  %v5031_v11 = vld [vmem:[#allocation2 + $0x180] sm:$0xf] }
  0xd9   : > { %v713_v34 = vadd.f32 %v712_v31, %v683_v30  ;;  %v5063_v30 = vld [vmem:[#allocation2 + $0x1c0] sm:$0xf] }
  0xda   : > { %v840_v13 = vpack.c.bf16 %v825_v29, %v825_v29  ;;  %1142 = vmatmul.bf16.gmra.mxu0 %v4984_v26  ;;  %1257 = vmatmul.bf16.gmra.mxu2 %v5016_v32  ;;  %v6137_v26 = vld [vmem:[#allocation2 + $0x184] sm:$0xf0]  ;;  %v5033_v29 = vld [vmem:[#allocation2 + $0x188] sm:$0xf0] }
  0xdb   : > { %1171 = vmatmul.bf16.gmra.mxu1 %v4988_v27  ;;  %v726_v14 = vpack.c.bf16 %v713_v34, %v713_v34  ;;  %v6136_v27 = vld [vmem:[#allocation2 + $0x184] sm:$0xf] }
  0xdc   : > { %v6879_v35 = vunpack.c.l.b16 %v840_v13  ;;  %1286 = vmatmul.bf16.gmra.mxu3 %v5020_v33  ;;  %v6145_v33 = vld [vmem:[#allocation2 + $0x1c4] sm:$0xf0]  ;;  %v6144_v34 = vld [vmem:[#allocation2 + $0x1c4] sm:$0xf]  ;;  %v5065_v13 = vld [vmem:[#allocation2 + $0x1c8] sm:$0xf0] }
  0xdd   : > { %v798_v37 = vpop.f32.mrf.mxu2  ;;  %v6883_v47 = vunpack.c.l.b16 %v726_v14  ;;  %v5064_v44 = vor.u32 %v6145_v33, %v5063_v30  ;;  %v5068_v45 = vor.u32 %v6144_v34, %v5065_v13 }
  0xde   : > { %v1691_v36 = vpack.c.b16 %v6879_v35, %v6877_v12  ;;  %v6177_v12 = vld [vmem:[#allocation4 + $0x88] sm:$0xff] }
  0xdf   : > { %v827_v38 = vpop.f32.mrf.mxu3  ;;  %v685_v40 = vpop.f32.mrf.mxu0  ;;  %v6185_v35 = vld [vmem:[#allocation4 + $0xc8] sm:$0xff] }
  0xe0   : > { %v828_v39 = vadd.f32 %v827_v38, %v798_v37  ;;  %v714_v41 = vpop.f32.mrf.mxu1 }
  0xe1   : > { %v715_v42 = vadd.f32 %v714_v41, %v685_v40  ;;  %v5032_v40 = vor.u32 %v6137_v26, %v5031_v11  ;;  %v5036_v41 = vor.u32 %v6136_v27, %v5033_v29  ;;  %v6147_v26 = vld [vmem:[#allocation2 + $0x1d4] sm:$0xf0]  ;;  %v6146_v27 = vld [vmem:[#allocation2 + $0x1d4] sm:$0xf]  ;;  %v5073_v29 = vld [vmem:[#allocation2 + $0x1d8] sm:$0xf0] }
  0xe2   : > { %v841_v52 = vpack.c.bf16 %v828_v39, %v828_v39 }
  0xe3   : > { %v727_v15 = vpack.c.bf16 %v715_v42, %v715_v42 }
  0xe4   : > { %v6889_v63 = vunpack.c.l.b16 %v841_v52  ;;  %v6175_v52 = vld [vmem:[#allocation4 + $0x78] sm:$0xff] }
  0xe5   : > { %v6885_v48 = vunpack.c.l.b16 %v727_v15  ;;  %v800_v53 = vpop.f32.mrf.mxu2  ;;  %2475 = vmatpush.bf16.msra.mxu3 %v6175_v52 }
  0xe7   : > { %v829_v54 = vpop.f32.mrf.mxu3  ;;  %v1668_v5 = vpack.c.b16 %v6885_v48, %v6883_v47  ;;  %v688_v6 = vpop.f32.mrf.mxu0 }
  0xe8   : > { %v830_v59 = vadd.f32 %v829_v54, %v800_v53  ;;  %v717_v60 = vpop.f32.mrf.mxu1 }
  0xe9   : > { %v718_v62 = vadd.f32 %v717_v60, %v688_v6 }
  0xea   : > { %v842_v16 = vpack.c.bf16 %v830_v59, %v830_v59  ;;  %1147 = vmatmul.bf16.gmra.mxu0 %v4992_v55  ;;  %1262 = vmatmul.bf16.gmra.mxu2 %v5024_v7  ;;  %v6174_v59 = vld [vmem:[#allocation4 + $0x70] sm:$0xff] }
  0xeb   : > { %1176 = vmatmul.bf16.gmra.mxu1 %v4996_v56  ;;  %v728_v24 = vpack.c.bf16 %v718_v62, %v718_v62  ;;  %v6166_v56 = vld [vmem:[#allocation4 + $0x30] sm:$0xff]  ;;  %2476 = vmatpush.bf16.msra.mxu3 %v6174_v59 }
  0xec   : > { %v6891_v17 = vunpack.c.l.b16 %v842_v16  ;;  %1291 = vmatmul.bf16.gmra.mxu3 %v5028_v61  ;;  %2447 = vmatpush.bf16.msra.mxu2 %v6166_v56  ;;  %v5039_v16 = vld [vmem:[#allocation2 + $0x190] sm:$0xf] }
  0xed   : > { %v803_v8 = vpop.f32.mrf.mxu2  ;;  %v6895_v31 = vunpack.c.l.b16 %v728_v24  ;;  %v5041_v24 = vld [vmem:[#allocation2 + $0x198] sm:$0xf0] }
  0xee   : > { %v1692_v18 = vpack.c.b16 %v6891_v17, %v6889_v63 }
  0xef   : > { %v832_v19 = vpop.f32.mrf.mxu3  ;;  %v690_v22 = vpop.f32.mrf.mxu0 }
  0xf0   : > { %v833_v9 = vadd.f32 %v832_v19, %v803_v8  ;;  %v719_v23 = vpop.f32.mrf.mxu1  ;;  %v6139_v19 = vld [vmem:[#allocation2 + $0x194] sm:$0xf0] }
  0xf1   : > { %v720_v10 = vadd.f32 %v719_v23, %v690_v22  ;;  %v6173_v22 = vld [vmem:[#allocation4 + $0x68] sm:$0xff]  ;;  %v6138_v23 = vld [vmem:[#allocation2 + $0x194] sm:$0xf] }
  0xf2   : > { %v843_v37 = vpack.c.bf16 %v833_v9, %v833_v9  ;;  %v6165_v9 = vld [vmem:[#allocation4 + $0x28] sm:$0xff]  ;;  %2477 = vmatpush.bf16.msra.mxu3 %v6173_v22 }
  0xf3   : > { %v729_v25 = vpack.c.bf16 %v720_v10, %v720_v10  ;;  %v5071_v10 = vld [vmem:[#allocation2 + $0x1d0] sm:$0xf]  ;;  %2448 = vmatpush.bf16.msra.mxu2 %v6165_v9  ;;  %v6141_v22 = vld [vmem:[#allocation2 + $0x1a4] sm:$0xf0] }
  0xf4   : > { %v6901_v2 = vunpack.c.l.b16 %v843_v37  ;;  %v5040_v37 = vor.u32 %v6139_v19, %v5039_v16  ;;  %v5047_v19 = vld [vmem:[#allocation2 + $0x1a0] sm:$0xf] }
  0xf5   : > { %v6897_v32 = vunpack.c.l.b16 %v729_v25  ;;  %v805_v38 = vpop.f32.mrf.mxu2 }
  0xf7   : > { %v834_v39 = vpop.f32.mrf.mxu3  ;;  %v1669_v14 = vpack.c.b16 %v6897_v32, %v6895_v31  ;;  %v903_v15 = vpop.f32.mrf.mxu0 }
  0xf8   : > { %v835_v42 = vadd.f32 %v834_v39, %v805_v38  ;;  %v932_v43 = vpop.f32.mrf.mxu1  ;;  %v5044_v38 = vor.u32 %v6138_v23, %v5041_v24  ;;  %v6164_v39 = vld [vmem:[#allocation4 + $0x20] sm:$0xff]  ;;  %v6161_v23 = vld [vmem:[#allocation4 + $0x8] sm:$0xff] }
  0xf9   : > { %v933_v46 = vadd.f32 %v932_v43, %v903_v15  ;;  %v5072_v43 = vor.u32 %v6147_v26, %v5071_v10  ;;  %2449 = vmatpush.bf16.msra.mxu2 %v6164_v39  ;;  %v6169_v24 = vld [vmem:[#allocation4 + $0x48] sm:$0xff]  ;;  %v6140_v10 = vld [vmem:[#allocation2 + $0x1a4] sm:$0xf] }
  0xfa   : > { %v844_v49 = vpack.c.bf16 %v835_v42, %v835_v42  ;;  %1362 = vmatmul.bf16.vlgmr.msrb.gmra.mxu0 %v5032_v40  ;;  %1477 = vmatmul.bf16.vlgmr.msrb.gmra.mxu2 %v5064_v44  ;;  %v6172_v40 = vld [vmem:[#allocation4 + $0x60] sm:$0xff]  ;;  %v5076_v44 = vor.u32 %v6146_v27, %v5073_v29  ;;  %v5049_v26 = vld [vmem:[#allocation2 + $0x1a8] sm:$0xf0] }
  0xfb   : > { %1391 = vmatmul.bf16.vlgmr.msrb.gmra.mxu1 %v5036_v41  ;;  %v952_v61 = vpack.c.bf16 %v933_v46, %v933_v46  ;;  %2478 = vmatpush.bf16.msra.mxu3 %v6172_v40  ;;  %v5079_v27 = vld [vmem:[#allocation2 + $0x1e0] sm:$0xf] }
  0xfc   : > { %v6903_v51 = vunpack.c.l.b16 %v844_v49  ;;  %1506 = vmatmul.bf16.vlgmr.msrb.gmra.mxu3 %v5068_v45 }
  0xfd   : > { %v1018_v54 = vpop.f32.mrf.mxu2  ;;  %v6907_v25 = vunpack.c.l.b16 %v952_v61  ;;  %2450 = vmatpush.bf16.msra.mxu2 %v6163_v50 }
  0xfe   : > { %v1693_v53 = vpack.c.b16 %v6903_v51, %v6901_v2 }
  0xff   : > { %v1047_v55 = vpop.f32.mrf.mxu3  ;;  %v905_v60 = vpop.f32.mrf.mxu0 }
 0x100   : > { %v1048_v6 = vadd.f32 %v1047_v55, %v1018_v54  ;;  %v934_v7 = vpop.f32.mrf.mxu1  ;;  %v6171_v54 = vld [vmem:[#allocation4 + $0x58] sm:$0xff] }
 0x101   : > { %v935_v62 = vadd.f32 %v934_v7, %v905_v60  ;;  %2479 = vmatpush.bf16.msra.mxu3 %v6171_v54  ;;  %v6170_v60 = vld [vmem:[#allocation4 + $0x50] sm:$0xff] }
 0x102   : > { %v1067_v30 = vpack.c.bf16 %v1048_v6, %v1048_v6  ;;  %v6162_v6 = vld [vmem:[#allocation4 + $0x10] sm:$0xff] }
 0x103   : > { %v953_v8 = vpack.c.bf16 %v935_v62, %v935_v62  ;;  %2451 = vmatpush.bf16.msra.mxu2 %v6162_v6 }
 0x104   : > { %v6913_v46 = vunpack.c.l.b16 %v1067_v30 }
 0x105   : > { %v6909_v11 = vunpack.c.l.b16 %v953_v8  ;;  %v1020_v34 = vpop.f32.mrf.mxu2  ;;  %2480 = vmatpush.bf16.msra.mxu3 %v6170_v60 }
 0x107   : > { %v1714_v33 = vpack.c.b16 %v6909_v11, %v6907_v25  ;;  %v1049_v13 = vpop.f32.mrf.mxu3  ;;  %v908_v42 = vpop.f32.mrf.mxu0  ;;  %2452 = vmatpush.bf16.msra.mxu2 %v6161_v23  ;;  %v6214_v25 = vld [vmem:[#allocation4 + $0x1b0] sm:$0xff] }
 0x108   : > { %v1050_v41 = vadd.f32 %v1049_v13, %v1020_v34  ;;  %v937_v15 = vpop.f32.mrf.mxu1  ;;  %v6149_v34 = vld [vmem:[#allocation2 + $0x1e4] sm:$0xf0]  ;;  %v6148_v13 = vld [vmem:[#allocation2 + $0x1e4] sm:$0xf]  ;;  %v6222_v11 = vld [vmem:[#allocation4 + $0x1f0] sm:$0xff] }
 0x109   : > { %v938_v45 = vadd.f32 %v937_v15, %v908_v42  ;;  %2481 = vmatpush.bf16.msra.mxu3 %v6169_v24  ;;  %v5052_v42 = vor.u32 %v6140_v10, %v5049_v26  ;;  %v6160_v15 = vld [vmem:[#allocation4] sm:$0xff]  ;;  %v5080_v54 = vor.u32 %v6149_v34, %v5079_v27  ;;  %v5055_v10 = vld [vmem:[#allocation2 + $0x1b0] sm:$0xf]  ;;  %v6143_v26 = vld [vmem:[#allocation2 + $0x1b4] sm:$0xf0] }
 0x10a   : > { %v1068_v49 = vpack.c.bf16 %v1050_v41, %v1050_v41  ;;  %1367 = vmatmul.bf16.gmra.mxu0 %v5040_v37  ;;  %1482 = vmatmul.bf16.gmra.mxu2 %v5072_v43  ;;  %v5081_v37 = vld [vmem:[#allocation2 + $0x1e8] sm:$0xf0]  ;;  %v5048_v41 = vor.u32 %v6141_v22, %v5047_v19  ;;  %v6168_v43 = vld [vmem:[#allocation4 + $0x40] sm:$0xff]  ;;  %v6142_v27 = vld [vmem:[#allocation2 + $0x1b4] sm:$0xf] }
 0x10b   : > { %1396 = vmatmul.bf16.gmra.mxu1 %v5044_v38  ;;  %v954_v16 = vpack.c.bf16 %v938_v45, %v938_v45  ;;  %2453 = vmatpush.bf16.msra.mxu2 %v6160_v15  ;;  %v5057_v34 = vld [vmem:[#allocation2 + $0x1b8] sm:$0xf0] }
 0x10c   : > { %v6915_v52 = vunpack.c.l.b16 %v1068_v49  ;;  %1511 = vmatmul.bf16.gmra.mxu3 %v5076_v44 }
 0x10d   : > { %v1023_v56 = vpop.f32.mrf.mxu2  ;;  %v6919_v29 = vunpack.c.l.b16 %v954_v16  ;;  %2482 = vmatpush.bf16.msra.mxu3 %v6168_v43 }
 0x10e   : > { %v1738_v55 = vpack.c.b16 %v6915_v52, %v6913_v46 }
 0x10f   : > { %v1052_v59 = vpop.f32.mrf.mxu3  ;;  %v910_v61 = vpop.f32.mrf.mxu0 }
 0x110   : > { %v1053_v7 = vadd.f32 %v1052_v59, %v1023_v56  ;;  %v939_v62 = vpop.f32.mrf.mxu1  ;;  %v5084_v56 = vor.u32 %v6148_v13, %v5081_v37  ;;  %v5087_v13 = vld [vmem:[#allocation2 + $0x1f0] sm:$0xf] }
 0x111   : > { %v940_v8 = vadd.f32 %v939_v62, %v910_v61 }
 0x112   : > { %v1069_v38 = vpack.c.bf16 %v1053_v7, %v1053_v7 }
 0x113   : > { %v955_v9 = vpack.c.bf16 %v940_v8, %v940_v8 }
 0x114   : > { %v6925_v6 = vunpack.c.l.b16 %v1069_v38 }
 0x115   : > { %v6921_v30 = vunpack.c.l.b16 %v955_v9  ;;  %v1025_v39 = vpop.f32.mrf.mxu2 }
 0x117   : > { %v1054_v40 = vpop.f32.mrf.mxu3  ;;  %v1715_v44 = vpack.c.b16 %v6921_v30, %v6919_v29  ;;  %v913_v49 = vpop.f32.mrf.mxu0 }
 0x118   : > { %v1055_v45 = vadd.f32 %v1054_v40, %v1025_v39  ;;  %v942_v50 = vpop.f32.mrf.mxu1  ;;  %v6151_v39 = vld [vmem:[#allocation2 + $0x1f4] sm:$0xf0]  ;;  %v6150_v40 = vld [vmem:[#allocation2 + $0x1f4] sm:$0xf] }
 0x119   : > { %v943_v59 = vadd.f32 %v942_v50, %v913_v49  ;;  %v5060_v49 = vor.u32 %v6142_v27, %v5057_v34 }
 0x11a   : > { %v1070_v60 = vpack.c.bf16 %v1055_v45, %v1055_v45  ;;  %1372 = vmatmul.bf16.gmra.mxu0 %v5048_v41  ;;  %1487 = vmatmul.bf16.gmra.mxu2 %v5080_v54  ;;  %v5089_v41 = vld [vmem:[#allocation2 + $0x1f8] sm:$0xf0]  ;;  %v5056_v45 = vor.u32 %v6143_v26, %v5055_v10 }
 0x11b   : > { %1401 = vmatmul.bf16.gmra.mxu1 %v5052_v42  ;;  %v956_v22 = vpack.c.bf16 %v943_v59, %v943_v59 }
 0x11c   : > { %v6927_v7 = vunpack.c.l.b16 %v1070_v60  ;;  %1516 = vmatmul.bf16.gmra.mxu3 %v5084_v56  ;;  %v5088_v60 = vor.u32 %v6151_v39, %v5087_v13 }
 0x11d   : > { %v1028_v62 = vpop.f32.mrf.mxu2  ;;  %v6931_v37 = vunpack.c.l.b16 %v956_v22 }
 0x11e   : > { %v1739_v61 = vpack.c.b16 %v6927_v7, %v6925_v6  ;;  %v6218_v6 = vld [vmem:[#allocation4 + $0x1d0] sm:$0xff] }
 0x11f   : > { %v1057_v16 = vpop.f32.mrf.mxu3  ;;  %v915_v19 = vpop.f32.mrf.mxu0 }
 0x120   : > { %v1058_v8 = vadd.f32 %v1057_v16, %v1028_v62  ;;  %v944_v9 = vpop.f32.mrf.mxu1  ;;  %v5092_v62 = vor.u32 %v6150_v40, %v5089_v41  ;;  %v5095_v40 = vld [vmem:[#allocation2 + $0x200] sm:$0xf]  ;;  %v6153_v41 = vld [vmem:[#allocation2 + $0x204] sm:$0xf0] }
 0x121   : > { %v945_v23 = vadd.f32 %v944_v9, %v915_v19 }
 0x122   : > { %v1071_v42 = vpack.c.bf16 %v1058_v8, %v1058_v8 }
 0x123   : > { %v957_v24 = vpack.c.bf16 %v945_v23, %v945_v23 }
 0x124   : > { %v6937_v19 = vunpack.c.l.b16 %v1071_v42  ;;  %v6152_v42 = vld [vmem:[#allocation2 + $0x204] sm:$0xf] }
 0x125   : > { %v6933_v38 = vunpack.c.l.b16 %v957_v24  ;;  %v1030_v15 = vpop.f32.mrf.mxu2 }
 0x127   : > { %v1059_v43 = vpop.f32.mrf.mxu3  ;;  %v1716_v50 = vpack.c.b16 %v6933_v38, %v6931_v37  ;;  %v918_v56 = vpop.f32.mrf.mxu0 }
 0x128   : > { %v1060_v54 = vadd.f32 %v1059_v43, %v1030_v15  ;;  %v947_v59 = vpop.f32.mrf.mxu1  ;;  %v5097_v15 = vld [vmem:[#allocation2 + $0x208] sm:$0xf0] }
 0x129   : > { %v948_v16 = vadd.f32 %v947_v59, %v918_v56  ;;  %v5096_v59 = vor.u32 %v6153_v41, %v5095_v40  ;;  %v6204_v40 = vld [vmem:[#allocation4 + $0x160] sm:$0xff] }
 0x12a   : > { %v1072_v9 = vpack.c.bf16 %v1060_v54, %v1060_v54  ;;  %1377 = vmatmul.bf16.gmra.mxu0 %v5056_v45  ;;  %1492 = vmatmul.bf16.gmra.mxu2 %v5088_v60  ;;  %v5100_v60 = vor.u32 %v6152_v42, %v5097_v15  ;;  %v6182_v42 = vld [vmem:[#allocation4 + $0xb0] sm:$0xff] }
 0x12b   : > { %1406 = vmatmul.bf16.gmra.mxu1 %v5060_v49  ;;  %v958_v34 = vpack.c.bf16 %v948_v16, %v948_v16  ;;  %v6190_v15 = vld [vmem:[#allocation4 + $0xf0] sm:$0xff] }
 0x12c   : > { %v6939_v22 = vunpack.c.l.b16 %v1072_v9  ;;  %1521 = vmatmul.bf16.gmra.mxu3 %v5092_v62 }
 0x12d   : > { %v1033_v23 = vpop.f32.mrf.mxu2  ;;  %v6943_v43 = vunpack.c.l.b16 %v958_v34  ;;  %v6191_v34 = vld [vmem:[#allocation4 + $0xf8] sm:$0xff] }
 0x12e   : > { %2533 = vmatpush.bf16.msrb.mxu1 %v6191_v34 }
 0x12f   : > { %v1062_v24 = vpop.f32.mrf.mxu3  ;;  %v920_v26 = vpop.f32.mrf.mxu0 }
 0x130   : > { %v1063_v10 = vadd.f32 %v1062_v24, %v1033_v23  ;;  %v949_v27 = vpop.f32.mrf.mxu1 }
 0x131   : > { %v950_v13 = vadd.f32 %v949_v27, %v920_v26  ;;  %v6183_v27 = vld [vmem:[#allocation4 + $0xb8] sm:$0xff] }
 0x132   : > { %v1073_v49 = vpack.c.bf16 %v1063_v10, %v1063_v10  ;;  %v6199_v10 = vld [vmem:[#allocation4 + $0x138] sm:$0xff]  ;;  %2504 = vmatpush.bf16.msrb.mxu0 %v6183_v27  ;;  %2534 = vmatpush.bf16.msrb.mxu1 %v6190_v15  ;;  %v6196_v15 = vld [vmem:[#allocation4 + $0x120] sm:$0xff] }
 0x133   : > { %v959_v39 = vpack.c.bf16 %v950_v13, %v950_v13  ;;  %2562 = vmatpush.bf16.msrb.mxu2 %v6199_v10 }
 0x134   : > { %v6953_v24 = vunpack.c.l.b16 %v1073_v49  ;;  %v6198_v49 = vld [vmem:[#allocation4 + $0x130] sm:$0xff] }
 0x135   : > { %v6945_v45 = vunpack.c.l.b16 %v959_v39  ;;  %v1035_v54 = vpop.f32.mrf.mxu2  ;;  %v6207_v39 = vld [vmem:[#allocation4 + $0x178] sm:$0xff] }
 0x136   : > { %2591 = vmatpush.bf16.msrb.mxu3 %v6207_v39  ;;  %2505 = vmatpush.bf16.msrb.mxu0 %v6182_v42  ;;  %v6180_v39 = vld [vmem:[#allocation4 + $0xa0] sm:$0xff] }
 0x137   : > { %v1064_v56 = vpop.f32.mrf.mxu3  ;;  %v6949_v16 = vpop.f32.mrf.mxu0  ;;  %2563 = vmatpush.bf16.msrb.mxu2 %v6198_v49  ;;  %v6188_v42 = vld [vmem:[#allocation4 + $0xe0] sm:$0xff] }
 0x138   : > { %v1065_v9 = vadd.f32 %v1064_v56, %v1035_v54  ;;  %v6951_v23 = vpop.f32.mrf.mxu1  ;;  %v6197_v56 = vld [vmem:[#allocation4 + $0x128] sm:$0xff] }
 0x139   : > { %v1163_v31 = vadd.f32 %v6951_v23, %v6949_v16 }
 0x13a   : > { %v1074_v26 = vpack.c.bf16 %v1065_v9, %v1065_v9  ;;  %1592 = vmatmul.bf16.vlgmr.msra.gmra.mxu0 %v5096_v59  ;;  %2454 = vmatmul.bf16.vlgmr.msra.gmra.mxu2 %v1666_v3  ;;  %v5103_v3 = vld [vmem:[#allocation2 + $0x210] sm:$0xf]  ;;  %v6154_v59 = vld [vmem:[#allocation2 + $0x214] sm:$0xf]  ;;  %v6205_v9 = vld [vmem:[#allocation4 + $0x168] sm:$0xff] }
 0x13b   : > { %1621 = vmatmul.bf16.vlgmr.msra.gmra.mxu1 %v5100_v60  ;;  %2592 = vmatpush.bf16.msrb.mxu3 %v6206_v1  ;;  %v5105_v60 = vld [vmem:[#allocation2 + $0x218] sm:$0xf0]  ;;  %v5104_v34 = vor.u32 %v6155_v4, %v5103_v3 }
 0x13c   : > { %v6955_v13 = vunpack.c.l.b16 %v1074_v26  ;;  %2483 = vmatmul.bf16.vlgmr.msra.gmra.mxu3 %v1690_v58  ;;  %v6189_v58 = vld [vmem:[#allocation4 + $0xe8] sm:$0xff]  ;;  %2506 = vmatpush.bf16.msrb.mxu0 %v6181_v57  ;;  %v5108_v10 = vor.u32 %v6154_v59, %v5105_v60  ;;  %v6179_v57 = vld [vmem:[#allocation4 + $0x98] sm:$0xff]  ;;  %v6178_v59 = vld [vmem:[#allocation4 + $0x90] sm:$0xff] }
 0x13d   : > { %v6965_v41 = vpop.f32.mrf.mxu2  ;;  %2535 = vmatpush.bf16.msrb.mxu1 %v6189_v58  ;;  %2564 = vmatpush.bf16.msrb.mxu2 %v6197_v56  ;;  %v6187_v58 = vld [vmem:[#allocation4 + $0xd8] sm:$0xff]  ;;  %v6186_v60 = vld [vmem:[#allocation4 + $0xd0] sm:$0xff] }
 0x13e   : > { %v6195_v56 = vld [vmem:[#allocation4 + $0x118] sm:$0xff] }
 0x13f   : > { %v6967_v54 = vpop.f32.mrf.mxu0  ;;  %v6971_v26 = vpop.f32.mrf.mxu3  ;;  %2593 = vmatpush.bf16.msrb.mxu3 %v6205_v9  ;;  %v6203_v3 = vld [vmem:[#allocation4 + $0x158] sm:$0xff]  ;;  %v6194_v9 = vld [vmem:[#allocation4 + $0x110] sm:$0xff] }
 0x140   : > { %v6969_v0 = vpop.f32.mrf.mxu1  ;;  %2507 = vmatpush.bf16.msrb.mxu0 %v6180_v39  ;;  %v6156_v39 = vld [vmem:[#allocation2 + $0x224] sm:$0xf]  ;;  %v1278_v17 = vadd.f32 %v6971_v26, %v6965_v41 }
 0x141   : > { %2536 = vmatpush.bf16.msrb.mxu1 %v6188_v42  ;;  %2565 = vmatpush.bf16.msrb.mxu2 %v6196_v15  ;;  %v5113_v42 = vld [vmem:[#allocation2 + $0x228] sm:$0xf0] }
 0x142   : > { %v6201_v15 = vld [vmem:[#allocation4 + $0x148] sm:$0xff]  ;;  %v1297_v2 = vpack.c.bf16 %v1278_v17, %v1278_v17 }
 0x143   : > { %2594 = vmatpush.bf16.msrb.mxu3 %v6204_v40 }
 0x144   : > { %2508 = vmatpush.bf16.msrb.mxu0 %v6179_v57 }
 0x145   : > { %v6973_v27 = vpop.f32.mrf.mxu2  ;;  %2537 = vmatpush.bf16.msrb.mxu1 %v6187_v58  ;;  %2566 = vmatpush.bf16.msrb.mxu2 %v6195_v56  ;;  %v5116_v56 = vor.u32 %v6156_v39, %v5113_v42  ;;  %v6159_v39 = vld [vmem:[#allocation2 + $0x234] sm:$0xf0]  ;;  %v6158_v42 = vld [vmem:[#allocation2 + $0x234] sm:$0xf] }
 0x147   : > { %v6975_v49 = vpop.f32.mrf.mxu0  ;;  %2595 = vmatpush.bf16.msrb.mxu3 %v6203_v3  ;;  %v1279_v4 = vpop.f32.mrf.mxu3  ;;  %v6176_v3 = vld [vmem:[#allocation4 + $0x80] sm:$0xff] }
 0x148   : > { %v6977_v1 = vpop.f32.mrf.mxu1  ;;  %2509 = vmatpush.bf16.msrb.mxu0 %v6178_v59  ;;  %v6184_v59 = vld [vmem:[#allocation4 + $0xc0] sm:$0xff] }
 0x149   : > { %2538 = vmatpush.bf16.msrb.mxu1 %v6186_v60  ;;  %2567 = vmatpush.bf16.msrb.mxu2 %v6194_v9  ;;  %v6192_v60 = vld [vmem:[#allocation4 + $0x100] sm:$0xff] }
 0x14a   : > { %1597 = vmatmul.bf16.gmra.mxu0 %v5104_v34  ;;  %2459 = vmatmul.bf16.gmra.mxu2 %v1667_v28  ;;  %v6157_v28 = vld [vmem:[#allocation2 + $0x224] sm:$0xf0] }
 0x14b   : > { %1626 = vmatmul.bf16.gmra.mxu1 %v5108_v10  ;;  %2596 = vmatpush.bf16.msrb.mxu3 %v6202_v20  ;;  %v5112_v58 = vor.u32 %v6157_v28, %v5111_v21  ;;  %v6200_v20 = vld [vmem:[#allocation4 + $0x140] sm:$0xff] }
 0x14c   : > { %2488 = vmatmul.bf16.gmra.mxu3 %v1691_v36  ;;  %v6193_v36 = vld [vmem:[#allocation4 + $0x108] sm:$0xff]  ;;  %2510 = vmatpush.bf16.msrb.mxu0 %v6177_v12 }
 0x14d   : > { %v6985_v40 = vpop.f32.mrf.mxu2  ;;  %2539 = vmatpush.bf16.msrb.mxu1 %v6185_v35  ;;  %2568 = vmatpush.bf16.msrb.mxu2 %v6193_v36  ;;  %v5119_v36 = vld [vmem:[#allocation2 + $0x230] sm:$0xf] }
 0x14f   : > { %v6987_v34 = vpop.f32.mrf.mxu0  ;;  %2597 = vmatpush.bf16.msrb.mxu3 %v6201_v15  ;;  %v1282_v8 = vpop.f32.mrf.mxu3  ;;  %v5121_v15 = vld [vmem:[#allocation2 + $0x238] sm:$0xf0] }
 0x150   : > { %v6989_v10 = vpop.f32.mrf.mxu1  ;;  %2511 = vmatpush.bf16.msrb.mxu0 %v6176_v3  ;;  %v5124_v47 = vor.u32 %v6158_v42, %v5121_v15  ;;  %v1280_v3 = vadd.f32 %v1279_v4, %v6973_v27  ;;  %v6223_v42 = vld [vmem:[#allocation4 + $0x1f8] sm:$0xff]  ;;  %v1283_v15 = vadd.f32 %v1282_v8, %v6985_v40 }
 0x151   : > { %2540 = vmatpush.bf16.msrb.mxu1 %v6184_v59  ;;  %2569 = vmatpush.bf16.msrb.mxu2 %v6192_v60  ;;  %v1182_v60 = vpack.c.bf16 %v1163_v31, %v1163_v31 }
 0x152   : > { %v1299_v8 = vpack.c.bf16 %v1283_v15, %v1283_v15 }
 0x153   : > { %2598 = vmatpush.bf16.msrb.mxu3 %v6200_v20  ;;  %v1778_v20 = vunpack.c.l.b16 %v1297_v2  ;;  %v6220_v2 = vld [vmem:[#allocation4 + $0x1e0] sm:$0xff] }
 0x155   : > { %v6991_v57 = vpop.f32.mrf.mxu2  ;;  %2649 = vmatpush.bf16.msra.mxu1 %v6223_v42 }
 0x157   : > { %v6993_v62 = vpop.f32.mrf.mxu0  ;;  %v1284_v35 = vpop.f32.mrf.mxu3 }
 0x158   : > { %v6995_v9 = vpop.f32.mrf.mxu1 }
 0x159   : > { %2650 = vmatpush.bf16.msra.mxu1 %v6222_v11  ;;  %v1173_v7 = vadd.f32 %v6995_v9, %v6993_v62  ;;  %v6228_v11 = vld [vmem:[#allocation4 + $0x220] sm:$0xff] }
 0x15a   : > { %1602 = vmatmul.bf16.gmra.mxu0 %v5112_v58  ;;  %2464 = vmatmul.bf16.gmra.mxu2 %v1668_v5 }
 0x15b   : > { %1631 = vmatmul.bf16.gmra.mxu1 %v5116_v56  ;;  %v5120_v56 = vor.u32 %v6159_v39, %v5119_v36  ;;  %v6215_v39 = vld [vmem:[#allocation4 + $0x1b8] sm:$0xff] }
 0x15c   : > { %2493 = vmatmul.bf16.gmra.mxu3 %v1692_v18  ;;  %v1165_v18 = vadd.f32 %v6969_v0, %v6967_v54  ;;  %v1754_v0 = vunpack.c.l.b16 %v1182_v60  ;;  %2620 = vmatpush.bf16.msra.mxu0 %v6215_v39  ;;  %v6230_v39 = vld [vmem:[#allocation4 + $0x230] sm:$0xff] }
 0x15d   : > { %v7003_v21 = vpop.f32.mrf.mxu2 }
 0x15e   : > { %v1183_v51 = vpack.c.bf16 %v1165_v18, %v1165_v18  ;;  %v1780_v18 = vunpack.c.l.b16 %v1299_v8 }
 0x15f   : > { %v7005_v28 = vpop.f32.mrf.mxu0  ;;  %v7021_v63 = vpop.f32.mrf.mxu3 }
 0x160   : > { %v7007_v12 = vpop.f32.mrf.mxu1  ;;  %v1755_v41 = vunpack.c.l.b16 %v1183_v51  ;;  %2621 = vmatpush.bf16.msra.mxu0 %v6214_v25  ;;  %v1288_v42 = vadd.f32 %v7021_v63, %v7003_v21  ;;  %v6229_v21 = vld [vmem:[#allocation4 + $0x228] sm:$0xff] }
 0x161   : > { %v1175_v15 = vadd.f32 %v7007_v12, %v7005_v28  ;;  %v6209_v12 = vld [vmem:[#allocation4 + $0x188] sm:$0xff] }
 0x162   : > { %v1762_v16 = vpack.c.b16 %v1755_v41, %v1754_v0  ;;  %v1301_v63 = vpack.c.bf16 %v1288_v42, %v1288_v42 }
 0x165   : > { %v7009_v58 = vpop.f32.mrf.mxu2 }
 0x167   : > { %v7011_v48 = vpop.f32.mrf.mxu0  ;;  %v1289_v36 = vpop.f32.mrf.mxu3 }
 0x168   : > { %v7013_v5 = vpop.f32.mrf.mxu1  ;;  %v1290_v29 = vadd.f32 %v1289_v36, %v7009_v58  ;;  %v6217_v58 = vld [vmem:[#allocation4 + $0x1c8] sm:$0xff]  ;;  %v1186_v36 = vpack.c.bf16 %v1173_v7, %v1173_v7  ;;  %v7604_v7 = vpack.c.b16 %v6955_v13, %v6953_v24 }
 0x169   : > { %v1178_v37 = vadd.f32 %v7013_v5, %v7011_v48 }
 0x16a   : > { %1607 = vmatmul.bf16.gmra.mxu0 %v5120_v56  ;;  %2469 = vmatmul.bf16.gmra.mxu2 %v1669_v14  ;;  %v1170_v56 = vadd.f32 %v6989_v10, %v6987_v34  ;;  %v6213_v10 = vld [vmem:[#allocation4 + $0x1a8] sm:$0xff]  ;;  %v1302_v28 = vpack.c.bf16 %v1290_v29, %v1290_v29 }
 0x16b   : > { %1636 = vmatmul.bf16.gmra.mxu1 %v5124_v47  ;;  %v1285_v47 = vadd.f32 %v1284_v35, %v6991_v57  ;;  %v6221_v57 = vld [vmem:[#allocation4 + $0x1e8] sm:$0xff]  ;;  %2622 = vmatpush.bf16.msra.mxu0 %v6213_v10  ;;  %v1758_v10 = vunpack.c.l.b16 %v1186_v36 }
 0x16c   : > { %2498 = vmatmul.bf16.gmra.mxu3 %v1693_v53  ;;  %v1298_v53 = vpack.c.bf16 %v1280_v3, %v1280_v3  ;;  %v1185_v40 = vpack.c.bf16 %v1170_v56, %v1170_v56  ;;  %2651 = vmatpush.bf16.msra.mxu1 %v6221_v57  ;;  %v1783_v9 = vunpack.c.l.b16 %v1302_v28 }
 0x16d   : > { %v7028_v59 = vpop.f32.mrf.mxu2  ;;  %v1300_v34 = vpack.c.bf16 %v1285_v47, %v1285_v47  ;;  %v1187_v47 = vpack.c.bf16 %v1175_v15, %v1175_v15 }
 0x16e   : > { %v1779_v26 = vunpack.c.l.b16 %v1298_v53  ;;  %v1757_v3 = vunpack.c.l.b16 %v1185_v40  ;;  %v6208_v40 = vld [vmem:[#allocation4 + $0x180] sm:$0xff] }
 0x16f   : > { %v7032_v32 = vpop.f32.mrf.mxu0  ;;  %v1781_v31 = vunpack.c.l.b16 %v1300_v34  ;;  %v1759_v62 = vunpack.c.l.b16 %v1187_v47  ;;  %v6216_v34 = vld [vmem:[#allocation4 + $0x1c0] sm:$0xff] }
 0x170   : > { %v7034_v14 = vpop.f32.mrf.mxu1  ;;  %v1786_v23 = vpack.c.b16 %v1779_v26, %v1778_v20  ;;  %2652 = vmatpush.bf16.msra.mxu1 %v6220_v2  ;;  %v6231_v20 = vld [vmem:[#allocation4 + $0x238] sm:$0xff]  ;;  %v6226_v2 = vld [vmem:[#allocation4 + $0x210] sm:$0xff] }
 0x171   : > { %v1787_v26 = vpack.c.b16 %v1781_v31, %v1780_v18  ;;  %2678 = vmatpush.bf16.msra.mxu2 %v6231_v20  ;;  %v6227_v18 = vld [vmem:[#allocation4 + $0x218] sm:$0xff]  ;;  %v1180_v20 = vadd.f32 %v7034_v14, %v7032_v32  ;;  %v6224_v32 = vld [vmem:[#allocation4 + $0x200] sm:$0xff] }
 0x175   : > { %v7036_v54 = vpop.f32.mrf.mxu2  ;;  %2679 = vmatpush.bf16.msra.mxu2 %v6230_v39 }
 0x177   : > { %v7038_v27 = vpop.f32.mrf.mxu0 }
 0x178   : > { %v7040_v4 = vpop.f32.mrf.mxu1 }
 0x179   : > { %2680 = vmatpush.bf16.msra.mxu2 %v6229_v21  ;;  %v1393_v28 = vadd.f32 %v7040_v4, %v7038_v27 }
 0x17a   : > { %2512 = vmatmul.bf16.vlgmr.msrb.gmra.mxu0 %v1714_v33  ;;  %2570 = vmatmul.bf16.vlgmr.msrb.gmra.mxu2 %v1762_v16  ;;  %v1168_v33 = vadd.f32 %v6977_v1, %v6975_v49  ;;  %v6212_v1 = vld [vmem:[#allocation4 + $0x1a0] sm:$0xff]  ;;  %v6211_v16 = vld [vmem:[#allocation4 + $0x198] sm:$0xff] }
 0x17b   : > { %2541 = vmatmul.bf16.vlgmr.msrb.gmra.mxu1 %v1738_v55  ;;  %v7060_v55 = vpop.f32.mrf.mxu3  ;;  %2623 = vmatpush.bf16.msra.mxu0 %v6212_v1  ;;  %v7602_v1 = vpack.c.b16 %v6939_v22, %v6937_v19  ;;  %v6225_v19 = vld [vmem:[#allocation4 + $0x208] sm:$0xff]  ;;  %v1412_v36 = vpack.c.bf16 %v1393_v28, %v1393_v28 }
 0x17c   : > { %2599 = vmatmul.bf16.vlgmr.msrb.gmra.mxu3 %v1786_v23  ;;  %v1184_v35 = vpack.c.bf16 %v1168_v33, %v1168_v33  ;;  %v6219_v23 = vld [vmem:[#allocation4 + $0x1d8] sm:$0xff]  ;;  %v1782_v33 = vunpack.c.l.b16 %v1301_v63 }
 0x17d   : > { %v7052_v17 = vpop.f32.mrf.mxu2  ;;  %2653 = vmatpush.bf16.msra.mxu1 %v6219_v23  ;;  %2681 = vmatpush.bf16.msra.mxu2 %v6228_v11  ;;  %v1189_v23 = vpack.c.bf16 %v1180_v20, %v1180_v20 }
 0x17e   : > { %v1756_v51 = vunpack.c.l.b16 %v1184_v35  ;;  %v1788_v31 = vpack.c.b16 %v1783_v9, %v1782_v33 }
 0x17f   : > { %v7056_v46 = vpop.f32.mrf.mxu0  ;;  %2624 = vmatpush.bf16.msra.mxu0 %v6211_v16 }
 0x180   : > { %v7058_v52 = vpop.f32.mrf.mxu1  ;;  %v1763_v41 = vpack.c.b16 %v1757_v3, %v1756_v51  ;;  %v1764_v3 = vpack.c.b16 %v1759_v62, %v1758_v10  ;;  %v1293_v51 = vadd.f32 %v7060_v55, %v7028_v59  ;;  %v1188_v55 = vpack.c.bf16 %v1178_v37, %v1178_v37 }
 0x181   : > { %2654 = vmatpush.bf16.msra.mxu1 %v6218_v6  ;;  %2682 = vmatpush.bf16.msra.mxu2 %v6227_v18  ;;  %v7603_v6 = vpack.c.b16 %v6945_v45, %v6943_v43  ;;  %v1395_v63 = vadd.f32 %v7058_v52, %v7056_v46  ;;  %v1802_v46 = vunpack.c.l.b16 %v1412_v36 }
 0x182   : > { %v1303_v22 = vpack.c.bf16 %v1293_v51, %v1293_v51  ;;  %v1760_v42 = vunpack.c.l.b16 %v1188_v55 }
 0x183   : > { %v1294_v0 = vpop.f32.mrf.mxu3  ;;  %v1413_v13 = vpack.c.bf16 %v1395_v63, %v1395_v63 }
 0x184   : > { %v1784_v14 = vunpack.c.l.b16 %v1303_v22 }
 0x185   : > { %v7062_v49 = vpop.f32.mrf.mxu2  ;;  %2655 = vmatpush.bf16.msra.mxu1 %v6217_v58  ;;  %2683 = vmatpush.bf16.msra.mxu2 %v6226_v2 }
 0x187   : > { %v7064_v53 = vpop.f32.mrf.mxu0 }
 0x188   : > { %v7066_v60 = vpop.f32.mrf.mxu1 }
 0x189   : > { %2656 = vmatpush.bf16.msra.mxu1 %v6216_v34  ;;  %2684 = vmatpush.bf16.msra.mxu2 %v6225_v19 }
 0x18a   : > { %2517 = vmatmul.bf16.gmra.mxu0 %v1715_v44  ;;  %2575 = vmatmul.bf16.gmra.mxu2 %v1763_v41  ;;  %v6210_v44 = vld [vmem:[#allocation4 + $0x190] sm:$0xff]  ;;  %v1295_v41 = vadd.f32 %v1294_v0, %v7036_v54  ;;  %v1761_v54 = vunpack.c.l.b16 %v1189_v23 }
 0x18b   : > { %2546 = vmatmul.bf16.gmra.mxu1 %v1739_v61  ;;  %2625 = vmatpush.bf16.msra.mxu0 %v6210_v44  ;;  %v1507_v25 = vpop.f32.mrf.mxu3 }
 0x18c   : > { %2604 = vmatmul.bf16.gmra.mxu3 %v1787_v26  ;;  %v1304_v59 = vpack.c.bf16 %v1295_v41, %v1295_v41  ;;  %v1765_v29 = vpack.c.b16 %v1761_v54, %v1760_v42  ;;  %v1508_v21 = vadd.f32 %v1507_v25, %v7052_v17  ;;  %v1803_v25 = vunpack.c.l.b16 %v1413_v13 }
 0x18d   : > { %v7079_v30 = vpop.f32.mrf.mxu2  ;;  %2685 = vmatpush.bf16.msra.mxu2 %v6224_v32 }
 0x18e   : > { %v1785_v0 = vunpack.c.l.b16 %v1304_v59  ;;  %v1527_v24 = vpack.c.bf16 %v1508_v21, %v1508_v21  ;;  %v1810_v27 = vpack.c.b16 %v1803_v25, %v1802_v46 }
 0x18f   : > { %v7083_v61 = vpop.f32.mrf.mxu0  ;;  %2626 = vmatpush.bf16.msra.mxu0 %v6209_v12 }
 0x190   : > { %v7085_v56 = vpop.f32.mrf.mxu1  ;;  %v1789_v44 = vpack.c.b16 %v1785_v0, %v1784_v14  ;;  %v1826_v17 = vunpack.c.l.b16 %v1527_v24 }
 0x193   : > { %2627 = vmatpush.bf16.msra.mxu0 %v6208_v40  ;;  %v1509_v26 = vpop.f32.mrf.mxu3  ;;  %v1400_v40 = vadd.f32 %v7085_v56, %v7083_v61 }
 0x194   : > { %v1510_v47 = vadd.f32 %v1509_v26, %v7062_v49 }
 0x195   : > { %v7087_v8 = vpop.f32.mrf.mxu2  ;;  %v1415_v20 = vpack.c.bf16 %v1400_v40, %v1400_v40 }
 0x196   : > { %v1528_v58 = vpack.c.bf16 %v1510_v47, %v1510_v47 }
 0x197   : > { %v7089_v57 = vpop.f32.mrf.mxu0  ;;  %v1805_v61 = vunpack.c.l.b16 %v1415_v20 }
 0x198   : > { %v7091_v35 = vpop.f32.mrf.mxu1  ;;  %v1827_v33 = vunpack.c.l.b16 %v1528_v58 }
 0x19a   : > { %2522 = vmatmul.bf16.gmra.mxu0 %v1716_v50  ;;  %2580 = vmatmul.bf16.gmra.mxu2 %v1764_v3  ;;  %v1834_v4 = vpack.c.b16 %v1827_v33, %v1826_v17  ;;  %v1398_v3 = vadd.f32 %v7066_v60, %v7064_v53 }
 0x19b   : > { %2551 = vmatmul.bf16.gmra.mxu1 %v7602_v1  ;;  %v1512_v5 = vpop.f32.mrf.mxu3 }
 0x19c   : > { %2609 = vmatmul.bf16.gmra.mxu3 %v1788_v31  ;;  %v1513_v9 = vadd.f32 %v1512_v5, %v7079_v30  ;;  %v1414_v30 = vpack.c.bf16 %v1398_v3, %v1398_v3 }
 0x19d   : > { %v7104_v16 = vpop.f32.mrf.mxu2 }
 0x19e   : > { %v1529_v1 = vpack.c.bf16 %v1513_v9, %v1513_v9  ;;  %v1804_v59 = vunpack.c.l.b16 %v1414_v30 }
 0x19f   : > { %v7108_v38 = vpop.f32.mrf.mxu0 }
 0x1a0   : > { %v7110_v50 = vpop.f32.mrf.mxu1  ;;  %v1828_v22 = vunpack.c.l.b16 %v1529_v1  ;;  %v1811_v54 = vpack.c.b16 %v1805_v61, %v1804_v59 }
 0x1a1   : > { %v1405_v5 = vadd.f32 %v7110_v50, %v7108_v38 }
 0x1a3   : > { %v1514_v11 = vpop.f32.mrf.mxu3  ;;  %v1417_v28 = vpack.c.bf16 %v1405_v5, %v1405_v5 }
 0x1a4   : > { %v1515_v34 = vadd.f32 %v1514_v11, %v7087_v8 }
 0x1a5   : > { %v7112_v39 = vpop.f32.mrf.mxu2  ;;  %v1807_v38 = vunpack.c.l.b16 %v1417_v28 }
 0x1a6   : > { %v1530_v41 = vpack.c.bf16 %v1515_v34, %v1515_v34 }
 0x1a7   : > { %v7114_v15 = vpop.f32.mrf.mxu0 }
 0x1a8   : > { %v7116_v48 = vpop.f32.mrf.mxu1  ;;  %v1829_v56 = vunpack.c.l.b16 %v1530_v41 }
 0x1aa   : > { %2527 = vmatmul.bf16.gmra.mxu0 %v7603_v6  ;;  %2585 = vmatmul.bf16.gmra.mxu2 %v1765_v29  ;;  %v1835_v0 = vpack.c.b16 %v1829_v56, %v1828_v22  ;;  %v1403_v6 = vadd.f32 %v7091_v35, %v7089_v57 }
 0x1ab   : > { %2556 = vmatmul.bf16.gmra.mxu1 %v7604_v7  ;;  %v1517_v10 = vpop.f32.mrf.mxu3 }
 0x1ac   : > { %2614 = vmatmul.bf16.gmra.mxu3 %v1789_v44  ;;  %v1518_v42 = vadd.f32 %v1517_v10, %v7104_v16  ;;  %v1416_v16 = vpack.c.bf16 %v1403_v6, %v1403_v6 }
 0x1ad   : > { %v7130_v12 = vpop.f32.mrf.mxu2 }
 0x1ae   : > { %v1531_v21 = vpack.c.bf16 %v1518_v42, %v1518_v42  ;;  %v1806_v33 = vunpack.c.l.b16 %v1416_v16 }
 0x1af   : > { %v7132_v43 = vpop.f32.mrf.mxu0 }
 0x1b0   : > { %v7134_v45 = vpop.f32.mrf.mxu1  ;;  %v1830_v17 = vunpack.c.l.b16 %v1531_v21 }
 0x1b1   : > { %v1410_v40 = vadd.f32 %v7134_v45, %v7132_v43 }
 0x1b3   : > { %v1519_v55 = vpop.f32.mrf.mxu3  ;;  %v1419_v20 = vpack.c.bf16 %v1410_v40, %v1410_v40 }
 0x1b4   : > { %v1520_v29 = vadd.f32 %v1519_v55, %v7112_v39 }
 0x1b5   : > { %v7136_v52 = vpop.f32.mrf.mxu2  ;;  %v1809_v22 = vunpack.c.l.b16 %v1419_v20 }
 0x1b6   : > { %v1532_v24 = vpack.c.bf16 %v1520_v29, %v1520_v29 }
 0x1b7   : > { %v1593_v49 = vpop.f32.mrf.mxu0 }
 0x1b8   : > { %v1622_v62 = vpop.f32.mrf.mxu1  ;;  %v1831_v50 = vunpack.c.l.b16 %v1532_v24 }
 0x1b9   : > { %v1623_v18 = vadd.f32 %v1622_v62, %v1593_v49  ;;  %v1812_v62 = vpack.c.b16 %v1807_v38, %v1806_v33 }
 0x1ba   : > { %2628 = vmatmul.bf16.vlgmr.msra.gmra.mxu0 %v1810_v27  ;;  %v1836_v27 = vpack.c.b16 %v1831_v50, %v1830_v17 }
 0x1bb   : > { %2657 = vmatmul.bf16.vlgmr.msra.gmra.mxu1 %v1834_v4  ;;  %v1642_v26 = vpack.c.bf16 %v1623_v18, %v1623_v18  ;;  %v1522_v13 = vpop.f32.mrf.mxu3  ;;  %v1408_v18 = vadd.f32 %v7116_v48, %v7114_v15 }
 0x1bc   : > { %v1523_v9 = vadd.f32 %v1522_v13, %v7130_v12 }
 0x1bd   : > { %v7144_v31 = vpop.f32.mrf.mxu2  ;;  %v1850_v8 = vunpack.c.l.b16 %v1642_v26  ;;  %v1418_v30 = vpack.c.bf16 %v1408_v18, %v1408_v18 }
 0x1be   : > { %v1533_v1 = vpack.c.bf16 %v1523_v9, %v1523_v9 }
 0x1bf   : > { %v1595_v2 = vpop.f32.mrf.mxu0  ;;  %v1808_v56 = vunpack.c.l.b16 %v1418_v30 }
 0x1c0   : > { %v1624_v51 = vpop.f32.mrf.mxu1 }
 0x1c1   : > { %v1625_v37 = vadd.f32 %v1624_v51, %v1595_v2  ;;  %v1813_v59 = vpack.c.b16 %v1809_v22, %v1808_v56 }
 0x1c3   : > { %v1643_v19 = vpack.c.bf16 %v1625_v37, %v1625_v37  ;;  %v1524_v4 = vpop.f32.mrf.mxu3 }
 0x1c4   : > { %v1525_v34 = vadd.f32 %v1524_v4, %v7136_v52 }
 0x1c5   : > { %v1851_v23 = vunpack.c.l.b16 %v1643_v19  ;;  %v7146_v53 = vpop.f32.mrf.mxu2  ;;  %v1832_v19 = vunpack.c.l.b16 %v1533_v1 }
 0x1c6   : > { %v1534_v41 = vpack.c.bf16 %v1525_v34, %v1525_v34 }
 0x1c7   : > { %v1858_v32 = vpack.c.b16 %v1851_v23, %v1850_v8  ;;  %v1598_v60 = vpop.f32.mrf.mxu0 }
 0x1c8   : > { %v1627_v14 = vpop.f32.mrf.mxu1  ;;  %v1833_v43 = vunpack.c.l.b16 %v1534_v41 }
 0x1c9   : > { %2686 = vmatmul.bf16.vlgmr.msra.gmra.mxu2 %v1858_v32  ;;  %v1628_v44 = vadd.f32 %v1627_v14, %v1598_v60 }
 0x1ca   : > { %2633 = vmatmul.bf16.gmra.mxu0 %v1811_v54  ;;  %v1837_v55 = vpack.c.b16 %v1833_v43, %v1832_v19 }
 0x1cb   : > { %2662 = vmatmul.bf16.gmra.mxu1 %v1835_v0  ;;  %v1644_v58 = vpack.c.bf16 %v1628_v44, %v1628_v44  ;;  %v2484_v45 = vpop.f32.mrf.mxu3 }
 0x1cd   : > { %v7154_v7 = vpop.f32.mrf.mxu2  ;;  %v1852_v39 = vunpack.c.l.b16 %v1644_v58 }
 0x1cf   : > { %v1600_v63 = vpop.f32.mrf.mxu0 }
 0x1d0   : > { %v1629_v47 = vpop.f32.mrf.mxu1 }
 0x1d1   : > { %v1630_v36 = vadd.f32 %v1629_v47, %v1600_v63 }
 0x1d3   : > { %v1645_v11 = vpack.c.bf16 %v1630_v36, %v1630_v36  ;;  %v2486_v60 = vpop.f32.mrf.mxu3 }
 0x1d5   : > { %v1853_v25 = vunpack.c.l.b16 %v1645_v11  ;;  %v7156_v46 = vpop.f32.mrf.mxu2 }
 0x1d7   : > { %v1859_v57 = vpack.c.b16 %v1853_v25, %v1852_v39  ;;  %v1603_v35 = vpop.f32.mrf.mxu0 }
 0x1d8   : > { %v1632_v49 = vpop.f32.mrf.mxu1 }
 0x1d9   : > { %2691 = vmatmul.bf16.gmra.mxu2 %v1859_v57  ;;  %v1633_v10 = vadd.f32 %v1632_v49, %v1603_v35 }
 0x1da   : > { %2638 = vmatmul.bf16.gmra.mxu0 %v1812_v62 }
 0x1db   : > { %2667 = vmatmul.bf16.gmra.mxu1 %v1836_v27  ;;  %v1646_v26 = vpack.c.bf16 %v1633_v10, %v1633_v10  ;;  %v2489_v24 = vpop.f32.mrf.mxu3 }
 0x1dd   : > { %v7164_v3 = vpop.f32.mrf.mxu2  ;;  %v1854_v52 = vunpack.c.l.b16 %v1646_v26 }
 0x1df   : > { %v1605_v2 = vpop.f32.mrf.mxu0 }
 0x1e0   : > { %v1634_v51 = vpop.f32.mrf.mxu1 }
 0x1e1   : > { %v1635_v37 = vadd.f32 %v1634_v51, %v1605_v2  ;;  %v7205_v51 = vld [vmem:[%s7590_s3] ss:$0 sm:$0xff] }
 0x1e2   : > { %v2456_v41 = vadd.f32 %v7205_v51, %v7144_v31  ;;  %v2458_v43 = vadd.f32 %v7205_v51, %v7146_v53  ;;  %v2461_v31 = vadd.f32 %v7205_v51, %v7154_v7 }
 0x1e3   : > { %v1647_v12 = vpack.c.bf16 %v1635_v37, %v1635_v37  ;;  %v2491_v16 = vpop.f32.mrf.mxu3 }
 0x1e4   : > { %v2485_v30 = vadd.f32 %v2484_v45, %v2456_v41 }
 0x1e5   : > { %v1855_v61 = vunpack.c.l.b16 %v1647_v12  ;;  %v7166_v8 = vpop.f32.mrf.mxu2 }
 0x1e7   : > { %v1860_v15 = vpack.c.b16 %v1855_v61, %v1854_v52  ;;  %v1608_v48 = vpop.f32.mrf.mxu0 }
 0x1e8   : > { %v1637_v23 = vpop.f32.mrf.mxu1 }
 0x1e9   : > { %2696 = vmatmul.bf16.gmra.mxu2 %v1860_v15  ;;  %v1638_v32 = vadd.f32 %v1637_v23, %v1608_v48  ;;  %v2487_v15 = vadd.f32 %v2486_v60, %v2458_v43  ;;  %v2463_v60 = vadd.f32 %v7205_v51, %v7156_v46 }
 0x1ea   : > { %2643 = vmatmul.bf16.gmra.mxu0 %v1813_v59 }
 0x1eb   : > { %2672 = vmatmul.bf16.gmra.mxu1 %v1837_v55  ;;  %v1648_v42 = vpack.c.bf16 %v1638_v32, %v1638_v32  ;;  %v7172_v50 = vpop.f32.mrf.mxu3 }
 0x1ed   : > { %v7168_v14 = vpop.f32.mrf.mxu2  ;;  %v1856_v44 = vunpack.c.l.b16 %v1648_v42 }
 0x1ef   : > { %v1610_v54 = vpop.f32.mrf.mxu0 }
 0x1f0   : > { %v1639_v0 = vpop.f32.mrf.mxu1 }
 0x1f1   : > { %v1640_v5 = vadd.f32 %v1639_v0, %v1610_v54  ;;  %v2490_v0 = vadd.f32 %v2489_v24, %v2461_v31 }
 0x1f3   : > { %v1649_v29 = vpack.c.bf16 %v1640_v5, %v1640_v5  ;;  %v7176_v57 = vpop.f32.mrf.mxu3 }
 0x1f5   : > { %v1857_v6 = vunpack.c.l.b16 %v1649_v29  ;;  %v7170_v21 = vpop.f32.mrf.mxu2 }
 0x1f7   : > { %v1861_v63 = vpack.c.b16 %v1857_v6, %v1856_v44  ;;  %v2513_v47 = vpop.f32.mrf.mxu0 }
 0x1f8   : > { %v2542_v28 = vpop.f32.mrf.mxu1  ;;  %v2514_v19 = vadd.f32 %v2513_v47, %v2485_v30 }
 0x1f9   : > { %2701 = vmatmul.bf16.gmra.mxu2 %v1861_v63 }
 0x1fa   : > { %v2543_v52 = vadd.f32 %v2542_v28, %v2514_v19 }
 0x1fb   : > { %v7188_v9 = vpop.f32.mrf.mxu3 }
 0x1fd   : > { %v2571_v13 = vpop.f32.mrf.mxu2 }
 0x1fe   : > { %v2572_v48 = vadd.f32 %v2571_v13, %v2543_v52 }
 0x1ff   : > { %v2515_v58 = vpop.f32.mrf.mxu0 }
 0x200   : > { %v2544_v36 = vpop.f32.mrf.mxu1  ;;  %v2516_v23 = vadd.f32 %v2515_v58, %v2487_v15  ;;  %v2492_v58 = vadd.f32 %v2491_v16, %v2463_v60 }
 0x202   : > { %v2545_v32 = vadd.f32 %v2544_v36, %v2516_v23 }
 0x203   : > { %v7196_v18 = vpop.f32.mrf.mxu3 }
 0x205   : > { %v2573_v11 = vpop.f32.mrf.mxu2 }
 0x206   : > { %v2574_v42 = vadd.f32 %v2573_v11, %v2545_v32 }
 0x207   : > { %v2518_v17 = vpop.f32.mrf.mxu0 }
 0x208   : > { %v2547_v38 = vpop.f32.mrf.mxu1  ;;  %v2519_v29 = vadd.f32 %v2518_v17, %v2490_v0  ;;  %v2471_v0 = vadd.f32 %v7205_v51, %v7168_v14  ;;  %v2473_v14 = vadd.f32 %v7205_v51, %v7170_v21 }
 0x20a   : > { %v2548_v7 = vadd.f32 %v2547_v38, %v2519_v29 }
 0x20b   : > { %v2600_v26 = vpop.f32.mrf.mxu3 }
 0x20c   : > { %v2601_v45 = vadd.f32 %v2600_v26, %v2572_v48 }
 0x20d   : > { %v2576_v33 = vpop.f32.mrf.mxu2 }
 0x20e   : > { %v2577_v36 = vadd.f32 %v2576_v33, %v2548_v7 }
 0x20f   : > { %v2520_v39 = vpop.f32.mrf.mxu0 }
 0x210   : > { %v7174_v25 = vpop.f32.mrf.mxu1  ;;  %v2521_v46 = vadd.f32 %v2520_v39, %v2492_v58 }
 0x212   : > { %v2550_v19 = vadd.f32 %v7174_v25, %v2521_v46 }
 0x213   : > { %v2602_v61 = vpop.f32.mrf.mxu3 }
 0x214   : > { %v2603_v63 = vadd.f32 %v2602_v61, %v2574_v42 }
 0x215   : > { %v7182_v62 = vpop.f32.mrf.mxu2 }
 0x216   : > { %v2579_v43 = vadd.f32 %v7182_v62, %v2550_v19 }
 0x217   : > { %v7178_v35 = vpop.f32.mrf.mxu0 }
 0x218   : > { %v7180_v49 = vpop.f32.mrf.mxu1 }
 0x21b   : > { %v2605_v5 = vpop.f32.mrf.mxu3 }
 0x21c   : > { %v2606_v30 = vadd.f32 %v2605_v5, %v2577_v36 }
 0x21d   : > { %v7190_v40 = vpop.f32.mrf.mxu2 }
 0x21f   : > { %v7184_v27 = vpop.f32.mrf.mxu0 }
 0x220   : > { %v7186_v4 = vpop.f32.mrf.mxu1 }
 0x223   : > { %v2607_v11 = vpop.f32.mrf.mxu3 }
 0x224   : > { %v2608_v25 = vadd.f32 %v2607_v11, %v2579_v43 }
 0x225   : > { %v7198_v1 = vpop.f32.mrf.mxu2 }
 0x227   : > { %v7192_v34 = vpop.f32.mrf.mxu0 }
 0x228   : > { %v7194_v10 = vpop.f32.mrf.mxu1 }
 0x22b   : > { %v2610_v15 = vpop.f32.mrf.mxu3 }
 0x22d   : > { %v7211_v12 = vpop.f32.mrf.mxu2 }
 0x22f   : > { %v7200_v2 = vpop.f32.mrf.mxu0 }
 0x230   : > { %v7207_v20 = vpop.f32.mrf.mxu1 }
 0x235   : > { %v7215_v59 = vpop.f32.mrf.mxu2 }
 0x237   : > { %v2629_v37 = vpop.f32.mrf.mxu0 }
 0x238   : > { %v2658_v22 = vpop.f32.mrf.mxu1  ;;  %v2630_v54 = vadd.f32 %v2629_v37, %v2601_v45  ;;  %v2466_v37 = vadd.f32 %v7205_v51, %v7164_v3 }
 0x23a   : > { %v2659_v44 = vadd.f32 %v2658_v22, %v2630_v54  ;;  %v2495_v33 = vadd.f32 %v7172_v50, %v2466_v37 }
 0x23c   : > { %v2524_v52 = vadd.f32 %v7178_v35, %v2495_v33 }
 0x23e   : > { %v2553_v50 = vadd.f32 %v7180_v49, %v2524_v52 }
 0x23f   : > { %v2631_v56 = vpop.f32.mrf.mxu0 }
 0x240   : > { %v2660_v55 = vpop.f32.mrf.mxu1  ;;  %v2632_v28 = vadd.f32 %v2631_v56, %v2603_v63  ;;  %v2468_v56 = vadd.f32 %v7205_v51, %v7166_v8 }
 0x242   : > { %v2661_v17 = vadd.f32 %v2660_v55, %v2632_v28  ;;  %v2497_v45 = vadd.f32 %v7176_v57, %v2468_v56  ;;  %v2582_v55 = vadd.f32 %v7190_v40, %v2553_v50 }
 0x244   : > { %v2526_v8 = vadd.f32 %v7184_v27, %v2497_v45  ;;  %v2611_v49 = vadd.f32 %v2610_v15, %v2582_v55  ;;  %v6236_v45 = vld [vmem:[%s7591_s4 + $0x20] sm:$0xff]  ;;  %v6247_v55 = vld [vmem:[#allocation6 + $0x30] sm:$0xff] }
 0x246   : > { %v2555_v5 = vadd.f32 %v7186_v4, %v2526_v8  ;;  %v6235_v8 = vld [vmem:[%s7591_s4 + $0x18] sm:$0xff] }
 0x247   : > { %v2634_v53 = vpop.f32.mrf.mxu0 }
 0x248   : > { %v2663_v13 = vpop.f32.mrf.mxu1  ;;  %v2635_v22 = vadd.f32 %v2634_v53, %v2606_v30  ;;  %v2612_v53 = vpop.f32.mrf.mxu3 }
 0x24a   : > { %v2664_v3 = vadd.f32 %v2663_v13, %v2635_v22 }
 0x24c   : > { %v2687_v6 = vpop.f32.mrf.mxu2 }
 0x24d   : > { %v7222_v47 = vadd.f32 %v2687_v6, %v2659_v44  ;;  %v2500_v44 = vadd.f32 %v7188_v9, %v2471_v0  ;;  %v2584_v6 = vadd.f32 %v7198_v1, %v2555_v5  ;;  %v2502_v9 = vadd.f32 %v7196_v18, %v2473_v14  ;;  %v6244_v0 = vld [vmem:[#allocation6 + $0x18] sm:$0xff]  ;;  %v6255_v5 = vld [vmem:[#allocation6 + $0x70] sm:$0xff]  ;;  %v6262_v14 = vld [vmem:[#allocation6 + $0xa8] sm:$0xff] }
 0x24f   : > { %v2707_v24 = vmax.f32 %v7222_v47, 0.0  ;;  %v2636_v41 = vpop.f32.mrf.mxu0  ;;  %v2529_v27 = vadd.f32 %v7192_v34, %v2500_v44  ;;  %v2613_v7 = vadd.f32 %v2612_v53, %v2584_v6  ;;  %v2531_v11 = vadd.f32 %v7200_v2, %v2502_v9  ;;  %v6237_v47 = vld [vmem:[%s7591_s4 + $0x28] sm:$0xff]  ;;  %v6263_v44 = vld [vmem:[#allocation6 + $0xb0] sm:$0xff]  ;;  %v6253_v6 = vld [vmem:[#allocation6 + $0x60] sm:$0xff] }
 0x250   : > { %v2665_v39 = vpop.f32.mrf.mxu1  ;;  %v2637_v62 = vadd.f32 %v2636_v41, %v2608_v25  ;;  %v2615_v46 = vpop.f32.mrf.mxu3  ;;  %v6242_v53 = vld [vmem:[#allocation6 + $0x8] sm:$0xff]  ;;  %v6272_v9 = vld [vmem:[#allocation6 + $0xf8] sm:$0xff] }
 0x251   : > { %2715 = vst [vmem:[%s7227_s19] sm:$0xff] %v2707_v24  ;;  %v2558_v13 = vadd.f32 %v7194_v10, %v2529_v27  ;;  %v6280_v27 = vld [vmem:[#allocation6 + $0x138] sm:$0xff] }
 0x252   : > { %v2666_v35 = vadd.f32 %v2665_v39, %v2637_v62  ;;  %v6232_v62 = vld [vmem:[%s7591_s4] sm:$0xff] }
 0x253   : > { %v2587_v1 = vadd.f32 %v7211_v12, %v2558_v13  ;;  %v6250_v13 = vld [vmem:[#allocation6 + $0x48] sm:$0xff] }
 0x254   : > { %v2689_v26 = vpop.f32.mrf.mxu2 }
 0x255   : > { %v7235_v38 = vadd.f32 %v2689_v26, %v2661_v17  ;;  %v2616_v21 = vadd.f32 %v2615_v46, %v2587_v1  ;;  %v2560_v26 = vadd.f32 %v7207_v20, %v2531_v11  ;;  %v6259_v1 = vld [vmem:[#allocation6 + $0x90] sm:$0xff]  ;;  %v6276_v11 = vld [vmem:[#allocation6 + $0x118] sm:$0xff] }
 0x256   : > { %v6271_v46 = vld [vmem:[#allocation6 + $0xf0] sm:$0xff] }
 0x257   : > { %v2708_v16 = vmax.f32 %v7235_v38, 0.0  ;;  %v2639_v23 = vpop.f32.mrf.mxu0  ;;  %v2589_v19 = vadd.f32 %v7215_v59, %v2560_v26  ;;  %v6238_v38 = vld [vmem:[%s7591_s4 + $0x30] sm:$0xff]  ;;  %v6270_v26 = vld [vmem:[#allocation6 + $0xe8] sm:$0xff] }
 0x258   : > { %v2668_v32 = vpop.f32.mrf.mxu1  ;;  %v2640_v57 = vadd.f32 %v2639_v23, %v2611_v49  ;;  %v2617_v18 = vpop.f32.mrf.mxu3  ;;  %v6256_v49 = vld [vmem:[#allocation6 + $0x78] sm:$0xff] }
 0x259   : > { %2716 = vst [vmem:[%s7227_s19 + $0x8] sm:$0xff] %v2708_v16  ;;  %v2618_v43 = vadd.f32 %v2617_v18, %v2589_v19  ;;  %v2723_v50 = vpack.c.bf16 %v2708_v16, %v2707_v24  ;;  %v6233_v24 = vld [vmem:[%s7591_s4 + $0x8] sm:$0xff]  ;;  %v6240_v16 = vld [vmem:[%s7591_s4 + $0x40] sm:$0xff] }
 0x25a   : > { %v2669_v60 = vadd.f32 %v2668_v32, %v2640_v57  ;;  %v6246_v32 = vld [vmem:[#allocation6 + $0x28] sm:$0xff]  ;;  %v6269_v19 = vld [vmem:[#allocation6 + $0xe0] sm:$0xff] }
 0x25b   : > { %v6254_v57 = vld [vmem:[#allocation6 + $0x68] sm:$0xff] }
 0x25c   : > { %v2692_v61 = vpop.f32.mrf.mxu2 }
 0x25d   : > { %v7247_v48 = vadd.f32 %v2692_v61, %v2664_v3 }
 0x25f   : > { %v2709_v31 = vmax.f32 %v7247_v48, 0.0  ;;  %v2641_v40 = vpop.f32.mrf.mxu0  ;;  %v6234_v48 = vld [vmem:[%s7591_s4 + $0x10] sm:$0xff] }
 0x260   : > { %v2670_v4 = vpop.f32.mrf.mxu1  ;;  %v2642_v58 = vadd.f32 %v2641_v40, %v2613_v7  ;;  %v6241_v40 = vld [vmem:[#allocation6] sm:$0xff] }
 0x261   : > { %2717 = vst [vmem:[%s7227_s19 + $0x10] sm:$0xff] %v2709_v31  ;;  %v6261_v7 = vld [vmem:[#allocation6 + $0xa0] sm:$0xff] }
 0x262   : > { %v2671_v17 = vadd.f32 %v2670_v4, %v2642_v58  ;;  %v6278_v4 = vld [vmem:[#allocation6 + $0x128] sm:$0xff]  ;;  %v6277_v58 = vld [vmem:[#allocation6 + $0x120] sm:$0xff] }
 0x264   : > { %v2694_v54 = vpop.f32.mrf.mxu2 }
 0x265   : > { %v2695_v42 = vadd.f32 %v2694_v54, %v2666_v35  ;;  %v6239_v35 = vld [vmem:[%s7591_s4 + $0x38] sm:$0xff]  ;;  %v6245_v54 = vld [vmem:[#allocation6 + $0x20] sm:$0xff] }
 0x267   : > { %v2710_v29 = vmax.f32 %v2695_v42, 0.0  ;;  %v2644_v34 = vpop.f32.mrf.mxu0  ;;  %v6243_v42 = vld [vmem:[#allocation6 + $0x10] sm:$0xff] }
 0x268   : > { %v2645_v10 = vadd.f32 %v2644_v34, %v2616_v21  ;;  %v2673_v30 = vpop.f32.mrf.mxu1  ;;  %v6249_v34 = vld [vmem:[#allocation6 + $0x40] sm:$0xff]  ;;  %v6287_v21 = vld [vmem:[#allocation6 + $0x170] sm:$0xff] }
 0x269   : > { %2718 = vst [vmem:[%s7227_s19 + $0x18] sm:$0xff] %v2710_v29  ;;  %v2724_v23 = vpack.c.bf16 %v2710_v29, %v2709_v31  ;;  %v6248_v31 = vld [vmem:[#allocation6 + $0x38] sm:$0xff] }
 0x26a   : > { %v2674_v12 = vadd.f32 %v2673_v30, %v2645_v10  ;;  %v6264_v29 = vld [vmem:[#allocation6 + $0xb8] sm:$0xff]  ;;  %v6274_v10 = vld [vmem:[#allocation6 + $0x108] sm:$0xff]  ;;  %v6257_v30 = vld [vmem:[#allocation6 + $0x80] sm:$0xff] }
 0x26c   : > { %v2697_v63 = vpop.f32.mrf.mxu2 }
 0x26d   : > { %v2698_v28 = vadd.f32 %v2697_v63, %v2669_v60  ;;  %v6252_v60 = vld [vmem:[#allocation6 + $0x58] sm:$0xff]  ;;  %v6279_v63 = vld [vmem:[#allocation6 + $0x130] sm:$0xff] }
 0x26f   : > { %v2711_v36 = vmax.f32 %v2698_v28, 0.0  ;;  %v2646_v22 = vpop.f32.mrf.mxu0  ;;  %v6251_v28 = vld [vmem:[#allocation6 + $0x50] sm:$0xff] }
 0x270   : > { %v2647_v39 = vadd.f32 %v2646_v22, %v2618_v43  ;;  %v2675_v3 = vpop.f32.mrf.mxu1  ;;  %v6273_v22 = vld [vmem:[#allocation6 + $0x100] sm:$0xff] }
 0x271   : > { %2719 = vst [vmem:[%s7227_s19 + $0x20] sm:$0xff] %v2711_v36 }
 0x272   : > { %v2676_v61 = vadd.f32 %v2675_v3, %v2647_v39  ;;  %v6295_v39 = vld [vmem:[#allocation6 + $0x1b0] sm:$0xff]  ;;  %v6284_v3 = vld [vmem:[#allocation6 + $0x158] sm:$0xff] }
 0x274   : > { %v2699_v41 = vpop.f32.mrf.mxu2 }
 0x275   : > { %v2700_v51 = vadd.f32 %v2699_v41, %v2671_v17  ;;  %v6288_v17 = vld [vmem:[#allocation6 + $0x178] sm:$0xff]  ;;  %v6275_v41 = vld [vmem:[#allocation6 + $0x110] sm:$0xff] }
 0x277   : > { %v2712_v37 = vmax.f32 %v2700_v51, 0.0  ;;  %v6258_v51 = vld [vmem:[#allocation6 + $0x88] sm:$0xff] }
 0x279   : > { %2720 = vst [vmem:[%s7227_s19 + $0x28] sm:$0xff] %v2712_v37  ;;  %v2725_v59 = vpack.c.bf16 %v2712_v37, %v2711_v36  ;;  %v6260_v36 = vld [vmem:[#allocation6 + $0x98] sm:$0xff]  ;;  %v6286_v37 = vld [vmem:[#allocation6 + $0x168] sm:$0xff] }
 0x27c   : > { %v2702_v33 = vpop.f32.mrf.mxu2 }
 0x27d   : > { %v2703_v2 = vadd.f32 %v2702_v33, %v2674_v12  ;;  %v6296_v12 = vld [vmem:[#allocation6 + $0x1b8] sm:$0xff]  ;;  %v6285_v33 = vld [vmem:[#allocation6 + $0x160] sm:$0xff] }
 0x27f   : > { %v2713_v52 = vmax.f32 %v2703_v2, 0.0  ;;  %v6268_v2 = vld [vmem:[#allocation6 + $0xd8] sm:$0xff] }
 0x281   : > { %2721 = vst [vmem:[%s7227_s19 + $0x30] sm:$0xff] %v2713_v52 }
 0x284   : > { %v2704_v56 = vpop.f32.mrf.mxu2 }
 0x285   : > { %v2705_v20 = vadd.f32 %v2704_v56, %v2676_v61 }
 0x287   : > { %v2714_v25 = vmax.f32 %v2705_v20, 0.0  ;;  %v6294_v20 = vld [vmem:[#allocation6 + $0x1a8] sm:$0xff] }
 0x289   : > { %2722 = vst [vmem:[%s7227_s19 + $0x38] sm:$0xff] %v2714_v25  ;;  %v2726_v15 = vpack.c.bf16 %v2714_v25, %v2713_v52  ;;  %v6267_v52 = vld [vmem:[#allocation6 + $0xd0] sm:$0xff]  ;;  %s486_s19 = scalar_lea.vmem %s7599_s12, %s4772_s16 }
 0x28b   : > { %2742 = vmatpush.bf16.msra.mxu3 %v2726_v15  ;;  %2850 = vmatpush.bf16.msrb.mxu1 %v2726_v15 }
 0x28c   : > { %2904 = vmatpush.bf16.msrb.mxu2 %v2726_v15  ;;  %2958 = vmatpush.bf16.msrb.mxu0 %v2726_v15 }
 0x28f   : > { %2743 = vmatpush.bf16.msra.mxu3 %v2725_v59  ;;  %2851 = vmatpush.bf16.msrb.mxu1 %v2725_v59 }
 0x290   : > { %2905 = vmatpush.bf16.msrb.mxu2 %v2725_v59  ;;  %2959 = vmatpush.bf16.msrb.mxu0 %v2725_v59 }
 0x293   : > { %2744 = vmatpush.bf16.msra.mxu3 %v2724_v23  ;;  %2852 = vmatpush.bf16.msrb.mxu1 %v2724_v23 }
 0x294   : > { %2906 = vmatpush.bf16.msrb.mxu2 %v2724_v23  ;;  %2960 = vmatpush.bf16.msrb.mxu0 %v2724_v23 }
 0x297   : > { %2745 = vmatpush.bf16.msra.mxu3 %v2723_v50  ;;  %2853 = vmatpush.bf16.msrb.mxu1 %v2723_v50 }
 0x298   : > { %2907 = vmatpush.bf16.msrb.mxu2 %v2723_v50  ;;  %2961 = vmatpush.bf16.msrb.mxu0 %v2723_v50 }
 0x29a   : > { %5417 = vmatmul.msk.bf16.vlgmr.msra.gmra.mxu3 %vm2734_vm0, %v6232_v62  ;;  %5445 = vmatmul.msk.bf16.vlgmr.msrb.gmra.mxu1 %vm2734_vm0, %v6236_v45  ;;  %v6293_v62 = vld [vmem:[#allocation6 + $0x1a0] sm:$0xff]  ;;  %v6312_v45 = vld [vmem:[#allocation6 + $0x238] sm:$0xff] }
 0x29b   : > { %2769 = vmatpush.bf16.msrb.mxu3 %v2726_v15  ;;  %2877 = vmatpush.bf16.msra.mxu1 %v2726_v15 }
 0x29c   : > { %5459 = vmatmul.msk.bf16.vlgmr.msrb.gmra.mxu2 %vm2734_vm0, %v6238_v38  ;;  %5473 = vmatmul.msk.bf16.vlgmr.msrb.gmra.mxu0 %vm2734_vm0, %v6240_v16  ;;  %v6282_v38 = vld [vmem:[#allocation6 + $0x148] sm:$0xff]  ;;  %v6265_v16 = vld [vmem:[#allocation6 + $0xc0] sm:$0xff] }
 0x29d   : > { %3618 = vmatpush.bf16.msra.mxu2 %v6256_v49  ;;  %3646 = vmatpush.bf16.msra.mxu0 %v6272_v9  ;;  %v6303_v49 = vld [vmem:[#allocation6 + $0x1f0] sm:$0xff]  ;;  %v6300_v9 = vld [vmem:[#allocation6 + $0x1d8] sm:$0xff] }
 0x29f   : > { %2770 = vmatpush.bf16.msrb.mxu3 %v2725_v59  ;;  %2878 = vmatpush.bf16.msra.mxu1 %v2725_v59 }
 0x2a1   : > { %3619 = vmatpush.bf16.msra.mxu2 %v6255_v5  ;;  %3647 = vmatpush.bf16.msra.mxu0 %v6271_v46 }
 0x2a3   : > { %2771 = vmatpush.bf16.msrb.mxu3 %v2724_v23  ;;  %2879 = vmatpush.bf16.msra.mxu1 %v2724_v23 }
 0x2a5   : > { %3620 = vmatpush.bf16.msra.mxu2 %v6254_v57  ;;  %3648 = vmatpush.bf16.msra.mxu0 %v6270_v26  ;;  %v6299_v26 = vld [vmem:[#allocation6 + $0x1d0] sm:$0xff] }
 0x2a7   : > { %2772 = vmatpush.bf16.msrb.mxu3 %v2723_v50  ;;  %2880 = vmatpush.bf16.msra.mxu1 %v2723_v50 }
 0x2a9   : > { %3621 = vmatpush.bf16.msra.mxu2 %v6253_v6  ;;  %3649 = vmatpush.bf16.msra.mxu0 %v6269_v19  ;;  %v6302_v6 = vld [vmem:[#allocation6 + $0x1e8] sm:$0xff] }
 0x2aa   : > { %5452 = vmatmul.msk.bf16.vlgmr.msra.gmra.mxu1 %vm2734_vm0, %v6237_v47  ;;  %5424 = vmatmul.msk.bf16.vlgmr.msrb.gmra.mxu3 %vm2734_vm0, %v6233_v24 }
 0x2ab   : > { %2796 = vmatpush.bf16.msra.mxu3 %v2726_v15  ;;  %3604 = vmatpush.bf16.msrb.mxu1 %v6248_v31  ;;  %v6304_v31 = vld [vmem:[#allocation6 + $0x1f8] sm:$0xff] }
 0x2ad   : > { %3622 = vmatpush.bf16.msra.mxu2 %v6252_v60  ;;  %3650 = vmatpush.bf16.msra.mxu0 %v6268_v2 }
 0x2af   : > { %2797 = vmatpush.bf16.msra.mxu3 %v2725_v59  ;;  %3605 = vmatpush.bf16.msrb.mxu1 %v6247_v55  ;;  %v6311_v55 = vld [vmem:[#allocation6 + $0x230] sm:$0xff] }
 0x2b1   : > { %3623 = vmatpush.bf16.msra.mxu2 %v6251_v28  ;;  %3651 = vmatpush.bf16.msra.mxu0 %v6267_v52 }
 0x2b3   : > { %2798 = vmatpush.bf16.msra.mxu3 %v2724_v23  ;;  %3606 = vmatpush.bf16.msrb.mxu1 %v6246_v32 }
 0x2b5   : > { %3624 = vmatpush.bf16.msra.mxu2 %v6250_v13  ;;  %v6301_v13 = vld [vmem:[#allocation6 + $0x1e0] sm:$0xff] }
 0x2b7   : > { %2799 = vmatpush.bf16.msra.mxu3 %v2723_v50  ;;  %3607 = vmatpush.bf16.msrb.mxu1 %v6245_v54 }
 0x2b9   : > { %3625 = vmatpush.bf16.msra.mxu2 %v6249_v34 }
 0x2ba   : > { %5431 = vmatmul.msk.bf16.vlgmr.msra.gmra.mxu3 %vm2734_vm0, %v6234_v48  ;;  %v6292_v48 = vld [vmem:[#allocation6 + $0x198] sm:$0xff] }
 0x2bb   : > { %2823 = vmatpush.bf16.msrb.mxu3 %v2726_v15  ;;  %3608 = vmatpush.bf16.msrb.mxu1 %v6244_v0  ;;  %v6291_v0 = vld [vmem:[#allocation6 + $0x190] sm:$0xff] }
 0x2bd   : > { %3674 = vmatpush.bf16.msrb.mxu2 %v6288_v17 }
 0x2bf   : > { %2824 = vmatpush.bf16.msrb.mxu3 %v2725_v59  ;;  %3609 = vmatpush.bf16.msrb.mxu1 %v6243_v42  ;;  %v6310_v42 = vld [vmem:[#allocation6 + $0x228] sm:$0xff] }
 0x2c1   : > { %3675 = vmatpush.bf16.msrb.mxu2 %v6287_v21 }
 0x2c3   : > { %2825 = vmatpush.bf16.msrb.mxu3 %v2724_v23  ;;  %3610 = vmatpush.bf16.msrb.mxu1 %v6242_v53 }
 0x2c5   : > { %3676 = vmatpush.bf16.msrb.mxu2 %v6286_v37 }
 0x2c7   : > { %2826 = vmatpush.bf16.msrb.mxu3 %v2723_v50  ;;  %3611 = vmatpush.bf16.msrb.mxu1 %v6241_v40 }
 0x2c9   : > { %3677 = vmatpush.bf16.msrb.mxu2 %v6285_v33  ;;  %v6298_v33 = vld [vmem:[#allocation6 + $0x1c8] sm:$0xff] }
 0x2ca   : > { %5438 = vmatmul.msk.bf16.vlgmr.msrb.gmra.mxu3 %vm2734_vm0, %v6235_v8 }
 0x2cb   : > { %2931 = vmatpush.bf16.msra.mxu3 %v2726_v15  ;;  %3660 = vmatpush.bf16.msra.mxu1 %v6280_v27  ;;  %v6283_v15 = vld [vmem:[#allocation6 + $0x150] sm:$0xff]  ;;  %v6309_v27 = vld [vmem:[#allocation6 + $0x220] sm:$0xff] }
 0x2cd   : > { %3678 = vmatpush.bf16.msrb.mxu2 %v6284_v3 }
 0x2cf   : > { %2932 = vmatpush.bf16.msra.mxu3 %v2725_v59  ;;  %3661 = vmatpush.bf16.msra.mxu1 %v6279_v63 }
 0x2d1   : > { %3679 = vmatpush.bf16.msrb.mxu2 %v6283_v15 }
 0x2d3   : > { %2933 = vmatpush.bf16.msra.mxu3 %v2724_v23  ;;  %3662 = vmatpush.bf16.msra.mxu1 %v6278_v4  ;;  %v6289_v4 = vld [vmem:[#allocation6 + $0x180] sm:$0xff] }
 0x2d5   : > { %3680 = vmatpush.bf16.msrb.mxu2 %v6282_v38 }
 0x2d7   : > { %2934 = vmatpush.bf16.msra.mxu3 %v2723_v50  ;;  %3663 = vmatpush.bf16.msra.mxu1 %v6277_v58  ;;  %v6266_v50 = vld [vmem:[#allocation6 + $0xc8] sm:$0xff]  ;;  %v6308_v58 = vld [vmem:[#allocation6 + $0x218] sm:$0xff] }
 0x2d8   : > { %3652 = vmatpush.bf16.msra.mxu0 %v6266_v50 }
 0x2da   : > { %5466 = vmatmul.msk.bf16.vlgmr.msra.gmra.mxu3 %vm2734_vm0, %v6239_v35  ;;  %v6281_v35 = vld [vmem:[#allocation6 + $0x140] sm:$0xff] }
 0x2db   : > { %3632 = vmatpush.bf16.msrb.mxu3 %v6264_v29  ;;  %3664 = vmatpush.bf16.msra.mxu1 %v6276_v11 }
 0x2dc   : > { %3653 = vmatpush.bf16.msra.mxu0 %v6265_v16  ;;  %3681 = vmatpush.bf16.msrb.mxu2 %v6281_v35 }
 0x2df   : > { %3633 = vmatpush.bf16.msrb.mxu3 %v6263_v44  ;;  %3665 = vmatpush.bf16.msra.mxu1 %v6275_v41  ;;  %v6290_v44 = vld [vmem:[#allocation6 + $0x188] sm:$0xff] }
 0x2e0   : > { %3702 = vmatpush.bf16.msrb.mxu0 %v6304_v31 }
 0x2e3   : > { %3634 = vmatpush.bf16.msrb.mxu3 %v6262_v14  ;;  %3666 = vmatpush.bf16.msra.mxu1 %v6274_v10  ;;  %v6306_v10 = vld [vmem:[#allocation6 + $0x208] sm:$0xff] }
 0x2e4   : > { %3703 = vmatpush.bf16.msrb.mxu0 %v6303_v49 }
 0x2e7   : > { %3635 = vmatpush.bf16.msrb.mxu3 %v6261_v7  ;;  %3667 = vmatpush.bf16.msra.mxu1 %v6273_v22 }
 0x2e8   : > { %3704 = vmatpush.bf16.msrb.mxu0 %v6302_v6 }
 0x2eb   : > { %3636 = vmatpush.bf16.msrb.mxu3 %v6260_v36 }
 0x2ec   : > { %3705 = vmatpush.bf16.msrb.mxu0 %v6301_v13 }
 0x2ef   : > { %3637 = vmatpush.bf16.msrb.mxu3 %v6259_v1  ;;  %v6307_v1 = vld [vmem:[#allocation6 + $0x210] sm:$0xff] }
 0x2f0   : > { %3706 = vmatpush.bf16.msrb.mxu0 %v6300_v9 }
 0x2f3   : > { %3638 = vmatpush.bf16.msrb.mxu3 %v6258_v51 }
 0x2f4   : > { %3707 = vmatpush.bf16.msrb.mxu0 %v6299_v26 }
 0x2f7   : > { %3639 = vmatpush.bf16.msrb.mxu3 %v6257_v30 }
 0x2f8   : > { %3708 = vmatpush.bf16.msrb.mxu0 %v6298_v33 }
 0x2fb   : > { %3688 = vmatpush.bf16.msra.mxu3 %v6296_v12 }
 0x2ff   : > { %3689 = vmatpush.bf16.msra.mxu3 %v6295_v39 }
 0x303   : > { %3690 = vmatpush.bf16.msra.mxu3 %v6294_v20  ;;  %v6297_v20 = vld [vmem:[#allocation6 + $0x1c0] sm:$0xff] }
 0x304   : > { %3709 = vmatpush.bf16.msrb.mxu0 %v6297_v20  ;;  %v5765_v20 = vld [vmem:[%s7594_s7 + $0x4] sm:$0x3] }
 0x307   : > { %3691 = vmatpush.bf16.msra.mxu3 %v6293_v62 }
 0x30b   : > { %3692 = vmatpush.bf16.msra.mxu3 %v6292_v48 }
 0x30f   : > { %3693 = vmatpush.bf16.msra.mxu3 %v6291_v0 }
 0x313   : > { %3694 = vmatpush.bf16.msra.mxu3 %v6290_v44 }
 0x317   : > { %v2855_v43 = vpop.f32.mrf.mxu1  ;;  %3695 = vmatpush.bf16.msra.mxu3 %v6289_v4 }
 0x318   : > { %v2860_v32 = vpack.c.bf16 %v2855_v43, %v2855_v43  ;;  %v6305_v43 = vld [vmem:[#allocation6 + $0x200] sm:$0xff] }
 0x319   : > { %v2963_v5 = vpop.f32.mrf.mxu0 }
 0x31a   : > { %v2996_v53 = vunpack.c.l.b16 %v2860_v32  ;;  %v2968_v17 = vpack.c.bf16 %v2963_v5, %v2963_v5 }
 0x31c   : > { %v3020_v30 = vunpack.c.l.b16 %v2968_v17 }
 0x31d   : > { %v2747_v18 = vpop.f32.mrf.mxu3 }
 0x31e   : > { %v2752_v61 = vpack.c.bf16 %v2747_v18, %v2747_v18 }
 0x31f   : > { %v2857_v24 = vpop.f32.mrf.mxu1  ;;  %v2909_v37 = vpop.f32.mrf.mxu2 }
 0x320   : > { %v2972_v59 = vunpack.c.l.b16 %v2752_v61  ;;  %v2861_v54 = vpack.c.bf16 %v2857_v24, %v2857_v24 }
 0x321   : > { %v2965_v46 = vpop.f32.mrf.mxu0 }
 0x322   : > { %v2997_v57 = vunpack.c.l.b16 %v2861_v54  ;;  %v2969_v41 = vpack.c.bf16 %v2965_v46, %v2965_v46 }
 0x324   : > { %v2998_v14 = vpack.c.b16 %v2997_v57, %v2996_v53  ;;  %v3021_v19 = vunpack.c.l.b16 %v2969_v41 }
 0x325   : > { %v2749_v56 = vpop.f32.mrf.mxu3 }
 0x326   : > { %v2753_v25 = vpack.c.bf16 %v2749_v56, %v2749_v56  ;;  %v3022_v52 = vpack.c.b16 %v3021_v19, %v3020_v30 }
 0x327   : > { %v2882_v29 = vpop.f32.mrf.mxu1 }
 0x328   : > { %v2973_v23 = vunpack.c.l.b16 %v2753_v25  ;;  %v2887_v21 = vpack.c.bf16 %v2882_v29, %v2882_v29 }
 0x32a   : > { %v2974_v47 = vpack.c.b16 %v2973_v23, %v2972_v59  ;;  %v3002_v12 = vunpack.c.l.b16 %v2887_v21  ;;  %v2911_v59 = vpop.f32.mrf.mxu2  ;;  %v2914_v23 = vpack.c.bf16 %v2909_v37, %v2909_v37 }
 0x32b   : > { %v2915_v50 = vpack.c.bf16 %v2911_v59, %v2911_v59  ;;  %v6319_v59 = vld [vmem:[%s7595_s8 + $0x30] sm:$0xff] }
 0x32c   : > { %3612 = vmatmul.bf16.vlgmr.msrb.gmra.mxu1 %v2974_v47 }
 0x32d   : > { %3716 = vmatpush.bf16.msrb.mxu1 %v6312_v45  ;;  %v2774_v8 = vpop.f32.mrf.mxu3  ;;  %v3008_v45 = vunpack.c.l.b16 %v2914_v23  ;;  %v3009_v47 = vunpack.c.l.b16 %v2915_v50  ;;  %v6328_v23 = vld [vmem:[%s7595_s8 + $0x78] sm:$0xff]  ;;  %v6327_v50 = vld [vmem:[%s7595_s8 + $0x70] sm:$0xff] }
 0x32e   : > { %v2779_v40 = vpack.c.bf16 %v2774_v8, %v2774_v8 }
 0x32f   : > { %v2884_v11 = vpop.f32.mrf.mxu1  ;;  %v3010_v31 = vpack.c.b16 %v3009_v47, %v3008_v45  ;;  %v6326_v45 = vld [vmem:[%s7595_s8 + $0x68] sm:$0xff]  ;;  %v6317_v47 = vld [vmem:[%s7595_s8 + $0x20] sm:$0xff] }
 0x330   : > { %v2978_v7 = vunpack.c.l.b16 %v2779_v40  ;;  %v2888_v51 = vpack.c.bf16 %v2884_v11, %v2884_v11  ;;  %v6429_v40 = vld [vmem:[%s7593_s6] ss:$0 sm:$0xff] }
 0x331   : > { %3717 = vmatpush.bf16.msrb.mxu1 %v6311_v55 }
 0x332   : > { %v3003_v22 = vunpack.c.l.b16 %v2888_v51 }
 0x334   : > { %v3004_v56 = vpack.c.b16 %v3003_v22, %v3002_v12 }
 0x335   : > { %3718 = vmatpush.bf16.msrb.mxu1 %v6310_v42  ;;  %v2776_v60 = vpop.f32.mrf.mxu3 }
 0x336   : > { %v2780_v63 = vpack.c.bf16 %v2776_v60, %v2776_v60 }
 0x338   : > { %v2979_v28 = vunpack.c.l.b16 %v2780_v63 }
 0x339   : > { %3719 = vmatpush.bf16.msrb.mxu1 %v6309_v27 }
 0x33a   : > { %v2980_v36 = vpack.c.b16 %v2979_v28, %v2978_v7 }
 0x33c   : > { %3668 = vmatmul.bf16.vlgmr.msra.gmra.mxu1 %v2998_v14  ;;  %3626 = vmatmul.bf16.vlgmr.msra.gmra.mxu2 %v2980_v36 }
 0x33d   : > { %3720 = vmatpush.bf16.msrb.mxu1 %v6308_v58  ;;  %v2801_v34 = vpop.f32.mrf.mxu3 }
 0x33e   : > { %v2806_v18 = vpack.c.bf16 %v2801_v34, %v2801_v34 }
 0x340   : > { %v2984_v3 = vunpack.c.l.b16 %v2806_v18 }
 0x341   : > { %3721 = vmatpush.bf16.msrb.mxu1 %v6307_v1 }
 0x345   : > { %3722 = vmatpush.bf16.msrb.mxu1 %v6306_v10  ;;  %v2803_v2 = vpop.f32.mrf.mxu3 }
 0x346   : > { %v2807_v39 = vpack.c.bf16 %v2803_v2, %v2803_v2 }
 0x348   : > { %v2985_v61 = vunpack.c.l.b16 %v2807_v39 }
 0x349   : > { %3723 = vmatpush.bf16.msrb.mxu1 %v6305_v43 }
 0x34a   : > { %v2986_v25 = vpack.c.b16 %v2985_v61, %v2984_v3  ;;  %v3735_v61 = vld [vmem:[%s7594_s7] sm:$0x3] }
 0x34c   : > { %3724 = vmatmul.bf16.vlgmr.msrb.gmra.mxu1 %v3022_v52  ;;  %3640 = vmatmul.bf16.vlgmr.msrb.gmra.mxu3 %v2986_v25  ;;  %v5773_v25 = vld [vmem:[%s7594_s7 + $0xc] sm:$0x3] }
 0x34d   : > { %3682 = vmatmul.bf16.vlgmr.msrb.gmra.mxu2 %v3004_v56  ;;  %v2828_v15 = vpop.f32.mrf.mxu3  ;;  %v5763_v56 = vld [vmem:[%s7594_s7 + $0x2] sm:$0x3] }
 0x34e   : > { %v2833_v62 = vpack.c.bf16 %v2828_v15, %v2828_v15  ;;  %v6320_v15 = vld [vmem:[%s7595_s8 + $0x38] sm:$0xff] }
 0x350   : > { %v2990_v16 = vunpack.c.l.b16 %v2833_v62  ;;  %v6318_v62 = vld [vmem:[%s7595_s8 + $0x28] sm:$0xff] }
 0x355   : > { %v2830_v24 = vpop.f32.mrf.mxu3 }
 0x356   : > { %v2834_v38 = vpack.c.bf16 %v2830_v24, %v2830_v24  ;;  %v5767_v24 = vld [vmem:[%s7594_s7 + $0x6] sm:$0x3] }
 0x358   : > { %v2991_v48 = vunpack.c.l.b16 %v2834_v38  ;;  %v6336_v38 = vld [vmem:[%s7595_s8 + $0xb8] sm:$0xff] }
 0x35a   : > { %v2992_v55 = vpack.c.b16 %v2991_v48, %v2990_v16  ;;  %v5769_v16 = vld [vmem:[%s7594_s7 + $0x8] sm:$0x3]  ;;  %v6344_v48 = vld [vmem:[%s7595_s8 + $0xf8] sm:$0xff] }
 0x35c   : > { %3654 = vmatmul.bf16.vlgmr.msra.gmra.mxu0 %v2992_v55  ;;  %3696 = vmatmul.bf16.vlgmr.msra.gmra.mxu3 %v3010_v31  ;;  %v5771_v31 = vld [vmem:[%s7594_s7 + $0xa] sm:$0x3]  ;;  %v6316_v55 = vld [vmem:[%s7595_s8 + $0x18] sm:$0xff] }
 0x35d   : > { %v2936_v8 = vpop.f32.mrf.mxu3 }
 0x35e   : > { %v2941_v35 = vpack.c.bf16 %v2936_v8, %v2936_v8  ;;  %v6325_v8 = vld [vmem:[%s7595_s8 + $0x60] sm:$0xff] }
 0x360   : > { %v3014_v0 = vunpack.c.l.b16 %v2941_v35  ;;  %v6335_v35 = vld [vmem:[%s7595_s8 + $0xb0] sm:$0xff] }
 0x365   : > { %v2938_v32 = vpop.f32.mrf.mxu3 }
 0x366   : > { %v2942_v54 = vpack.c.bf16 %v2938_v32, %v2938_v32  ;;  %v6343_v32 = vld [vmem:[%s7595_s8 + $0xf0] sm:$0xff] }
 0x368   : > { %v3015_v49 = vunpack.c.l.b16 %v2942_v54  ;;  %v6315_v54 = vld [vmem:[%s7595_s8 + $0x10] sm:$0xff] }
 0x36a   : > { %v3016_v42 = vpack.c.b16 %v3015_v49, %v3014_v0  ;;  %v6324_v0 = vld [vmem:[%s7595_s8 + $0x58] sm:$0xff]  ;;  %v6334_v49 = vld [vmem:[%s7595_s8 + $0xa8] sm:$0xff] }
 0x36c   : > { %3710 = vmatmul.bf16.vlgmr.msrb.gmra.mxu0 %v3016_v42  ;;  %v6342_v42 = vld [vmem:[%s7595_s8 + $0xe8] sm:$0xff] }
 0x3a9   : > { %v3613_v5 = vpop.f32.mrf.mxu1 }
 0x3aa   : > { %v3614_v44 = vadd.f32 %v6429_v40, %v3613_v5  ;;  %v6314_v5 = vld [vmem:[%s7595_s8 + $0x8] sm:$0xff] }
 0x3b1   : > { %v3615_v57 = vpop.f32.mrf.mxu1 }
 0x3b2   : > { %v3616_v4 = vadd.f32 %v6429_v40, %v3615_v57  ;;  %v6333_v57 = vld [vmem:[%s7595_s8 + $0xa0] sm:$0xff] }
 0x3b3   : > { %v6313_v40 = vld [vmem:[%s7595_s8] sm:$0xff] }
 0x3b9   : > { %v3669_v6 = vpop.f32.mrf.mxu1 }
 0x3bf   : > { %v3627_v53 = vpop.f32.mrf.mxu2 }
 0x3c0   : > { %v3628_v27 = vadd.f32 %v3627_v53, %v3614_v44  ;;  %v6323_v53 = vld [vmem:[%s7595_s8 + $0x50] sm:$0xff]  ;;  %v6352_v44 = vld [vmem:[%s7595_s8 + $0x138] sm:$0xff] }
 0x3c1   : > { %v3671_v36 = vpop.f32.mrf.mxu1 }
 0x3c7   : > { %v3629_v60 = vpop.f32.mrf.mxu2 }
 0x3c8   : > { %v3630_v13 = vadd.f32 %v3629_v60, %v3616_v4  ;;  %v5777_v60 = vld [vmem:[%s7594_s7 + $0x10] sm:$0x3]  ;;  %v6350_v4 = vld [vmem:[%s7595_s8 + $0x128] sm:$0xff] }
 0x3c9   : > { %v3725_v26 = vpop.f32.mrf.mxu1 }
 0x3cf   : > { %v3641_v29 = vpop.f32.mrf.mxu3 }
 0x3d0   : > { %v3642_v7 = vadd.f32 %v3641_v29, %v3628_v27  ;;  %v3683_v9 = vpop.f32.mrf.mxu2  ;;  %v6341_v29 = vld [vmem:[%s7595_s8 + $0xe0] sm:$0xff]  ;;  %v6332_v27 = vld [vmem:[%s7595_s8 + $0x98] sm:$0xff] }
 0x3d1   : > { %v3727_v2 = vpop.f32.mrf.mxu1 }
 0x3d7   : > { %v3643_v63 = vpop.f32.mrf.mxu3 }
 0x3d8   : > { %v3644_v46 = vadd.f32 %v3643_v63, %v3630_v13  ;;  %v3685_v37 = vpop.f32.mrf.mxu2  ;;  %v6340_v63 = vld [vmem:[%s7595_s8 + $0xd8] sm:$0xff]  ;;  %v6330_v13 = vld [vmem:[%s7595_s8 + $0x88] sm:$0xff] }
 0x3d9   : > { %v3655_v14 = vpop.f32.mrf.mxu0 }
 0x3da   : > { %v3656_v28 = vadd.f32 %v3655_v14, %v3642_v7  ;;  %v6351_v14 = vld [vmem:[%s7595_s8 + $0x130] sm:$0xff] }
 0x3db   : > { %v6331_v7 = vld [vmem:[%s7595_s8 + $0x90] sm:$0xff] }
 0x3dc   : > { %v3670_v58 = vadd.f32 %v3669_v6, %v3656_v28  ;;  %v5775_v6 = vld [vmem:[%s7594_s7 + $0xe] sm:$0x3]  ;;  %v6339_v28 = vld [vmem:[%s7595_s8 + $0xd0] sm:$0xff] }
 0x3de   : > { %v3684_v11 = vadd.f32 %v3683_v9, %v3670_v58  ;;  %v6338_v58 = vld [vmem:[%s7595_s8 + $0xc8] sm:$0xff]  ;;  %v6348_v9 = vld [vmem:[%s7595_s8 + $0x118] sm:$0xff] }
 0x3df   : > { %v3697_v34 = vpop.f32.mrf.mxu3 }
 0x3e0   : > { %v3698_v41 = vadd.f32 %v3697_v34, %v3684_v11  ;;  %v6368_v34 = vld [vmem:[%s7595_s8 + $0x1b8] sm:$0xff]  ;;  %v6347_v11 = vld [vmem:[%s7595_s8 + $0x110] sm:$0xff] }
 0x3e1   : > { %v3657_v1 = vpop.f32.mrf.mxu0 }
 0x3e2   : > { %v3658_v17 = vadd.f32 %v3657_v1, %v3644_v46  ;;  %v6322_v1 = vld [vmem:[%s7595_s8 + $0x48] sm:$0xff]  ;;  %v6329_v46 = vld [vmem:[%s7595_s8 + $0x80] sm:$0xff] }
 0x3e4   : > { %v3672_v21 = vadd.f32 %v3671_v36, %v3658_v17  ;;  %v6349_v36 = vld [vmem:[%s7595_s8 + $0x120] sm:$0xff] }
 0x3e5   : > { %v6321_v17 = vld [vmem:[%s7595_s8 + $0x40] sm:$0xff] }
 0x3e6   : > { %v3686_v30 = vadd.f32 %v3685_v37, %v3672_v21  ;;  %v6367_v21 = vld [vmem:[%s7595_s8 + $0x1b0] sm:$0xff] }
 0x3e7   : > { %v3699_v18 = vpop.f32.mrf.mxu3  ;;  %v6359_v37 = vld [vmem:[%s7595_s8 + $0x170] sm:$0xff] }
 0x3e8   : > { %v3700_v22 = vadd.f32 %v3699_v18, %v3686_v30  ;;  %v6366_v30 = vld [vmem:[%s7595_s8 + $0x1a8] sm:$0xff] }
 0x3e9   : > { %v3711_v51 = vpop.f32.mrf.mxu0  ;;  %v6358_v18 = vld [vmem:[%s7595_s8 + $0x168] sm:$0xff] }
 0x3ea   : > { %v3712_v10 = vadd.f32 %v3711_v51, %v3698_v41  ;;  %v6360_v41 = vld [vmem:[%s7595_s8 + $0x178] sm:$0xff]  ;;  %v6346_v51 = vld [vmem:[%s7595_s8 + $0x108] sm:$0xff] }
 0x3ec   : > { %v3726_v19 = vadd.f32 %v3725_v26, %v3712_v10  ;;  %v6337_v26 = vld [vmem:[%s7595_s8 + $0xc0] sm:$0xff]  ;;  %v6376_v10 = vld [vmem:[%s7595_s8 + $0x1f8] sm:$0xff] }
 0x3ee   : > { %v3730_v12 = vmax.f32 %v3726_v19, 0.0  ;;  %v6345_v19 = vld [vmem:[%s7595_s8 + $0x100] sm:$0xff] }
 0x3f0   : > { %3732 = vst [vmem:[%s482_s26] sm:$0xff] %v3730_v12 }
 0x3f1   : > { %v3713_v33 = vpop.f32.mrf.mxu0 }
 0x3f2   : > { %v3714_v43 = vadd.f32 %v3713_v33, %v3700_v22  ;;  %v6375_v22 = vld [vmem:[%s7595_s8 + $0x1f0] sm:$0xff]  ;;  %v6374_v33 = vld [vmem:[%s7595_s8 + $0x1e8] sm:$0xff] }
 0x3f4   : > { %v3728_v39 = vadd.f32 %v3727_v2, %v3714_v43  ;;  %v6357_v43 = vld [vmem:[%s7595_s8 + $0x160] sm:$0xff]  ;;  %v6364_v2 = vld [vmem:[%s7595_s8 + $0x198] sm:$0xff] }
 0x3f6   : > { %v3731_v52 = vmax.f32 %v3728_v39, 0.0  ;;  %v6356_v39 = vld [vmem:[%s7595_s8 + $0x158] sm:$0xff] }
 0x3f8   : > { %3733 = vst [vmem:[%s482_s26 + $0x8] sm:$0xff] %v3731_v52  ;;  %v3734_v3 = vpack.c.bf16 %v3731_v52, %v3730_v12  ;;  %v6365_v12 = vld [vmem:[%s7595_s8 + $0x1a0] sm:$0xff]  ;;  %v6363_v52 = vld [vmem:[%s7595_s8 + $0x190] sm:$0xff] }
 0x3fa   : > { %3747 = vmatpush.bf16.msra.mxu2 %v3734_v3  ;;  %3766 = vmatpush.bf16.msrb.mxu3 %v3734_v3 }
 0x3fb   : > { %3785 = vmatpush.bf16.msra.mxu0 %v3734_v3  ;;  %3861 = vmatpush.bf16.msra.mxu1 %v3734_v3 }
 0x3fd   : > { %5762 = vmatmul.msk.bf16.vlgmr.msra.gmra.mxu2 %vm3736_vm1, %v3735_v61  ;;  %5764 = vmatmul.msk.bf16.vlgmr.msrb.gmra.mxu3 %vm3736_vm1, %v5763_v56  ;;  %v6355_v61 = vld [vmem:[%s7595_s8 + $0x150] sm:$0xff]  ;;  %v6362_v56 = vld [vmem:[%s7595_s8 + $0x188] sm:$0xff] }
 0x3fe   : > { %3804 = vmatpush.bf16.msrb.mxu2 %v3734_v3  ;;  %3823 = vmatpush.bf16.msra.mxu3 %v3734_v3 }
 0x3ff   : > { %3842 = vmatpush.bf16.msrb.mxu0 %v3734_v3  ;;  %5774 = vmatmul.msk.bf16.vlgmr.msra.gmra.mxu1 %vm3736_vm1, %v5773_v25  ;;  %v6354_v25 = vld [vmem:[%s7595_s8 + $0x148] sm:$0xff] }
 0x400   : > { %5766 = vmatmul.msk.bf16.vlgmr.msra.gmra.mxu0 %vm3736_vm1, %v5765_v20  ;;  %4499 = vmatpush.bf16.msrb.mxu1 %v6328_v23  ;;  %v6372_v20 = vld [vmem:[%s7595_s8 + $0x1d8] sm:$0xff]  ;;  %v6370_v23 = vld [vmem:[%s7595_s8 + $0x1c8] sm:$0xff] }
 0x402   : > { %3880 = vmatpush.bf16.msra.mxu2 %v3734_v3  ;;  %3899 = vmatpush.bf16.msrb.mxu3 %v3734_v3  ;;  %v6373_v3 = vld [vmem:[%s7595_s8 + $0x1e0] sm:$0xff] }
 0x403   : > { %4486 = vmatpush.bf16.msra.mxu0 %v6320_v15  ;;  %v6361_v15 = vld [vmem:[%s7595_s8 + $0x180] sm:$0xff] }
 0x404   : > { %4500 = vmatpush.bf16.msrb.mxu1 %v6327_v50  ;;  %v6353_v50 = vld [vmem:[%s7595_s8 + $0x140] sm:$0xff] }
 0x407   : > { %4487 = vmatpush.bf16.msra.mxu0 %v6319_v59  ;;  %v6371_v59 = vld [vmem:[%s7595_s8 + $0x1d0] sm:$0xff] }
 0x408   : > { %4501 = vmatpush.bf16.msrb.mxu1 %v6326_v45 }
 0x40b   : > { %4488 = vmatpush.bf16.msra.mxu0 %v6318_v62 }
 0x40c   : > { %4502 = vmatpush.bf16.msrb.mxu1 %v6325_v8  ;;  %v6383_v8 = vld [vmem:[%s7595_s8 + $0x230] sm:$0xff] }
 0x40d   : > { %5768 = vmatmul.msk.bf16.vlgmr.msrb.gmra.mxu2 %vm3736_vm1, %v5767_v24  ;;  %5770 = vmatmul.msk.bf16.vlgmr.msra.gmra.mxu3 %vm3736_vm1, %v5769_v16  ;;  %v6369_v16 = vld [vmem:[%s7595_s8 + $0x1c0] sm:$0xff] }
 0x40e   : > { %4512 = vmatpush.bf16.msrb.mxu2 %v6336_v38  ;;  %4525 = vmatpush.bf16.msra.mxu3 %v6344_v48  ;;  %v6384_v38 = vld [vmem:[%s7595_s8 + $0x238] sm:$0xff] }
 0x40f   : > { %4489 = vmatpush.bf16.msra.mxu0 %v6317_v47 }
 0x410   : > { %5772 = vmatmul.msk.bf16.vlgmr.msrb.gmra.mxu0 %vm3736_vm1, %v5771_v31  ;;  %4503 = vmatpush.bf16.msrb.mxu1 %v6324_v0  ;;  %v6382_v0 = vld [vmem:[%s7595_s8 + $0x228] sm:$0xff] }
 0x412   : > { %4513 = vmatpush.bf16.msrb.mxu2 %v6335_v35  ;;  %4526 = vmatpush.bf16.msra.mxu3 %v6343_v32 }
 0x413   : > { %4490 = vmatpush.bf16.msra.mxu0 %v6316_v55 }
 0x414   : > { %4504 = vmatpush.bf16.msrb.mxu1 %v6323_v53 }
 0x416   : > { %4514 = vmatpush.bf16.msrb.mxu2 %v6334_v49  ;;  %4527 = vmatpush.bf16.msra.mxu3 %v6342_v42 }
 0x417   : > { %4491 = vmatpush.bf16.msra.mxu0 %v6315_v54 }
 0x418   : > { %4505 = vmatpush.bf16.msrb.mxu1 %v6322_v1 }
 0x41a   : > { %4515 = vmatpush.bf16.msrb.mxu2 %v6333_v57  ;;  %4528 = vmatpush.bf16.msra.mxu3 %v6341_v29 }
 0x41b   : > { %4492 = vmatpush.bf16.msra.mxu0 %v6314_v5  ;;  %v6381_v5 = vld [vmem:[%s7595_s8 + $0x220] sm:$0xff] }
 0x41c   : > { %4506 = vmatpush.bf16.msrb.mxu1 %v6321_v17 }
 0x41d   : > { %5776 = vmatmul.msk.bf16.vlgmr.msra.gmra.mxu2 %vm3736_vm1, %v5775_v6  ;;  %5778 = vmatmul.msk.bf16.vlgmr.msrb.gmra.mxu3 %vm3736_vm1, %v5777_v60  ;;  %v6380_v6 = vld [vmem:[%s7595_s8 + $0x218] sm:$0xff] }
 0x41e   : > { %4516 = vmatpush.bf16.msrb.mxu2 %v6332_v27  ;;  %4529 = vmatpush.bf16.msra.mxu3 %v6340_v63  ;;  %v6379_v63 = vld [vmem:[%s7595_s8 + $0x210] sm:$0xff] }
 0x41f   : > { %4493 = vmatpush.bf16.msra.mxu0 %v6313_v40 }
 0x420   : > { %4551 = vmatpush.bf16.msra.mxu1 %v6360_v41 }
 0x422   : > { %4517 = vmatpush.bf16.msrb.mxu2 %v6331_v7  ;;  %4530 = vmatpush.bf16.msra.mxu3 %v6339_v28  ;;  %v6378_v28 = vld [vmem:[%s7595_s8 + $0x208] sm:$0xff] }
 0x423   : > { %4538 = vmatpush.bf16.msrb.mxu0 %v6352_v44 }
 0x424   : > { %4552 = vmatpush.bf16.msra.mxu1 %v6359_v37 }
 0x426   : > { %4518 = vmatpush.bf16.msrb.mxu2 %v6330_v13  ;;  %4531 = vmatpush.bf16.msra.mxu3 %v6338_v58 }
 0x427   : > { %4539 = vmatpush.bf16.msrb.mxu0 %v6351_v14 }
 0x428   : > { %4553 = vmatpush.bf16.msra.mxu1 %v6358_v18 }
 0x42a   : > { %4519 = vmatpush.bf16.msrb.mxu2 %v6329_v46  ;;  %4532 = vmatpush.bf16.msra.mxu3 %v6337_v26  ;;  %v6430_v26 = vld [vmem:[%s7596_s9] ss:$0 sm:$0xff] }
 0x42b   : > { %4540 = vmatpush.bf16.msrb.mxu0 %v6350_v4  ;;  %v6377_v4 = vld [vmem:[%s7595_s8 + $0x200] sm:$0xff] }
 0x42c   : > { %4554 = vmatpush.bf16.msra.mxu1 %v6357_v43 }
 0x42e   : > { %4564 = vmatpush.bf16.msra.mxu2 %v6368_v34  ;;  %4577 = vmatpush.bf16.msrb.mxu3 %v6376_v10 }
 0x42f   : > { %4541 = vmatpush.bf16.msrb.mxu0 %v6349_v36 }
 0x430   : > { %4555 = vmatpush.bf16.msra.mxu1 %v6356_v39 }
 0x432   : > { %4565 = vmatpush.bf16.msra.mxu2 %v6367_v21  ;;  %4578 = vmatpush.bf16.msrb.mxu3 %v6375_v22 }
 0x433   : > { %4542 = vmatpush.bf16.msrb.mxu0 %v6348_v9 }
 0x434   : > { %4556 = vmatpush.bf16.msra.mxu1 %v6355_v61 }
 0x436   : > { %4566 = vmatpush.bf16.msra.mxu2 %v6366_v30  ;;  %4579 = vmatpush.bf16.msrb.mxu3 %v6374_v33 }
 0x437   : > { %4543 = vmatpush.bf16.msrb.mxu0 %v6347_v11 }
 0x438   : > { %4557 = vmatpush.bf16.msra.mxu1 %v6354_v25 }
 0x43a   : > { %4567 = vmatpush.bf16.msra.mxu2 %v6365_v12  ;;  %4580 = vmatpush.bf16.msrb.mxu3 %v6373_v3 }
 0x43b   : > { %4544 = vmatpush.bf16.msrb.mxu0 %v6346_v51 }
 0x43c   : > { %4558 = vmatpush.bf16.msra.mxu1 %v6353_v50 }
 0x43e   : > { %4568 = vmatpush.bf16.msra.mxu2 %v6364_v2  ;;  %4581 = vmatpush.bf16.msrb.mxu3 %v6372_v20 }
 0x43f   : > { %4545 = vmatpush.bf16.msrb.mxu0 %v6345_v19 }
 0x442   : > { %4569 = vmatpush.bf16.msra.mxu2 %v6363_v52  ;;  %4582 = vmatpush.bf16.msrb.mxu3 %v6371_v59 }
 0x446   : > { %4570 = vmatpush.bf16.msra.mxu2 %v6362_v56  ;;  %4583 = vmatpush.bf16.msrb.mxu3 %v6370_v23 }
 0x44a   : > { %4571 = vmatpush.bf16.msra.mxu2 %v6361_v15  ;;  %4584 = vmatpush.bf16.msrb.mxu3 %v6369_v16 }
 0x47c   : > { %v3863_v47 = vpop.f32.mrf.mxu1 }
 0x47d   : > { %v3787_v62 = vpop.f32.mrf.mxu0  ;;  %v3867_v42 = vpack.c.bf16 %v3863_v47, %v3863_v47 }
 0x47e   : > { %v3791_v45 = vpack.c.bf16 %v3787_v62, %v3787_v62 }
 0x480   : > { %4520 = vmatmul.bf16.vlgmr.msrb.gmra.mxu2 %v3791_v45  ;;  %v3749_v24 = vpop.f32.mrf.mxu2  ;;  %v3768_v31 = vpop.f32.mrf.mxu3 }
 0x481   : > { %v3753_v48 = vpack.c.bf16 %v3749_v24, %v3749_v24  ;;  %v3772_v55 = vpack.c.bf16 %v3768_v31, %v3768_v31 }
 0x483   : > { %4494 = vmatmul.bf16.vlgmr.msra.gmra.mxu0 %v3753_v48  ;;  %4507 = vmatmul.bf16.vlgmr.msrb.gmra.mxu1 %v3772_v55 }
 0x484   : > { %4590 = vmatpush.bf16.msra.mxu0 %v6384_v38  ;;  %v3865_v32 = vpop.f32.mrf.mxu1 }
 0x485   : > { %v3789_v35 = vpop.f32.mrf.mxu0 }
 0x488   : > { %v3751_v54 = vpop.f32.mrf.mxu2  ;;  %4591 = vmatpush.bf16.msra.mxu0 %v6383_v8  ;;  %v3770_v49 = vpop.f32.mrf.mxu3 }
 0x48c   : > { %4592 = vmatpush.bf16.msra.mxu0 %v6382_v0 }
 0x48d   : > { %v3844_v53 = vpop.f32.mrf.mxu0 }
 0x48e   : > { %v3848_v29 = vpack.c.bf16 %v3844_v53, %v3844_v53 }
 0x490   : > { %4572 = vmatmul.bf16.vlgmr.msra.gmra.mxu2 %v3867_v42  ;;  %v3806_v57 = vpop.f32.mrf.mxu2  ;;  %4593 = vmatpush.bf16.msra.mxu0 %v6381_v5  ;;  %v3825_v44 = vpop.f32.mrf.mxu3 }
 0x491   : > { %v3810_v40 = vpack.c.bf16 %v3806_v57, %v3806_v57  ;;  %v3829_v27 = vpack.c.bf16 %v3825_v44, %v3825_v44 }
 0x493   : > { %4533 = vmatmul.bf16.vlgmr.msra.gmra.mxu3 %v3810_v40  ;;  %4546 = vmatmul.bf16.vlgmr.msrb.gmra.mxu0 %v3829_v27 }
 0x494   : > { %4559 = vmatmul.bf16.vlgmr.msra.gmra.mxu1 %v3848_v29  ;;  %4594 = vmatpush.bf16.msra.mxu0 %v6380_v6 }
 0x495   : > { %v3846_v60 = vpop.f32.mrf.mxu0 }
 0x498   : > { %v3808_v14 = vpop.f32.mrf.mxu2  ;;  %v3827_v7 = vpop.f32.mrf.mxu3  ;;  %4595 = vmatpush.bf16.msra.mxu0 %v6379_v63 }
 0x49c   : > { %4596 = vmatpush.bf16.msra.mxu0 %v6378_v28 }
 0x4a0   : > { %v3882_v13 = vpop.f32.mrf.mxu2  ;;  %v3901_v36 = vpop.f32.mrf.mxu3  ;;  %4597 = vmatpush.bf16.msra.mxu0 %v6377_v4 }
 0x4a1   : > { %v3886_v58 = vpack.c.bf16 %v3882_v13, %v3882_v13  ;;  %v3905_v9 = vpack.c.bf16 %v3901_v36, %v3901_v36 }
 0x4a3   : > { %4585 = vmatmul.bf16.vlgmr.msrb.gmra.mxu3 %v3886_v58  ;;  %4598 = vmatmul.bf16.vlgmr.msra.gmra.mxu0 %v3905_v9 }
 0x4a8   : > { %v3884_v1 = vpop.f32.mrf.mxu2  ;;  %v3903_v46 = vpop.f32.mrf.mxu3 }
 0x500   : > { %v4495_v34 = vpop.f32.mrf.mxu0  ;;  %v4508_v11 = vpop.f32.mrf.mxu1 }
 0x501   : > { %v4496_v10 = vadd.f32 %v6430_v26, %v4495_v34 }
 0x503   : > { %v4521_v17 = vpop.f32.mrf.mxu2  ;;  %v4509_v18 = vadd.f32 %v4508_v11, %v4496_v10 }
 0x505   : > { %v4522_v22 = vadd.f32 %v4521_v17, %v4509_v18 }
 0x508   : > { %v4497_v41 = vpop.f32.mrf.mxu0  ;;  %v4510_v21 = vpop.f32.mrf.mxu1 }
 0x50b   : > { %v4523_v51 = vpop.f32.mrf.mxu2 }
 0x510   : > { %v4547_v37 = vpop.f32.mrf.mxu0 }
 0x511   : > { %v4560_v30 = vpop.f32.mrf.mxu1 }
 0x513   : > { %v4573_v19 = vpop.f32.mrf.mxu2 }
 0x516   : > { %v4534_v12 = vpop.f32.mrf.mxu3 }
 0x517   : > { %v4535_v33 = vadd.f32 %v4534_v12, %v4522_v22 }
 0x518   : > { %v4549_v43 = vpop.f32.mrf.mxu0 }
 0x519   : > { %v4562_v2 = vpop.f32.mrf.mxu1  ;;  %v4548_v52 = vadd.f32 %v4547_v37, %v4535_v33 }
 0x51b   : > { %v4575_v39 = vpop.f32.mrf.mxu2  ;;  %v4561_v61 = vadd.f32 %v4560_v30, %v4548_v52 }
 0x51d   : > { %v4574_v20 = vadd.f32 %v4573_v19, %v4561_v61 }
 0x51e   : > { %v4536_v3 = vpop.f32.mrf.mxu3 }
 0x520   : > { %v4599_v56 = vpop.f32.mrf.mxu0 }
 0x526   : > { %v4586_v25 = vpop.f32.mrf.mxu3 }
 0x527   : > { %v4587_v15 = vadd.f32 %v4586_v25, %v4574_v20 }
 0x528   : > { %v4601_v23 = vpop.f32.mrf.mxu0 }
 0x529   : > { %v4600_v59 = vadd.f32 %v4599_v56, %v4587_v15 }
 0x52b   : > { %v4603_v50 = vmax.f32 %v4600_v59, 0.0 }
 0x52d   : > { %4604 = vst [vmem:[%s486_s19] sm:$0xf] %v4603_v50 }
 0x52e   : > { %v4588_v62 = vpop.f32.mrf.mxu3 }
 0x52f PF: > { %s25_s21 = sadd.s32 1, %s6535_s21  }
 0x530   : > { %p22_p7 = scmp.ge.s32.totalorder %s25_s21, 4  }
 0x532   :  { %24 = sbr.rel (!%p22_p7) target bundleno = 2 (0x2), region = 151 }
 0x537   :  { %4656 = vsyncpa [#allocation3], 1 }
 0x538   :  { %4658 = vsyncpa [#allocation3 + $0x1], 1 }
 0x539   :  { %4659 = vsyncpa [#allocation5], 1 }

</bundles_post_ra>
